<compile_context>
chip_gen: v5e
topology: v5e:2x2
jax: 0.10.0
libtpu: 0.0.40
codegen_flags: <defaults>
</compile_context>

<pallas_src>
import math

import jax
import jax.numpy as jnp
from jax.experimental import pallas as pl
from jax.experimental.pallas import tpu as pltpu

# ----------------------------- model dims (scaled-down ViT-B/16) -------------
IMG = 16          # input spatial size (PyTorch: 224)
PATCH = 8         # patch size (PyTorch: 16)
C_IN = 1          # module prepends Conv2d(1, 3, 1)
C_MID = 3
D = 48            # transformer hidden dim (PyTorch: 768)
HEADS = 4         # encoder heads (PyTorch: 12)
DH = D // HEADS   # 12
MLP = 96          # MLP dim (PyTorch: 3072)
LAYERS = 2        # encoder depth (PyTorch: 12)
NC = 40           # feature_extractor output dim == hidden_size1 (PyTorch: 1000)
ATT_HEADS = 10    # top-level nn.MultiheadAttention heads
ADH = NC // ATT_HEADS
N_PATCH = (IMG // PATCH) ** 2
SEQ = N_PATCH + 1
B = 2             # batch size used in this script
BS = B * SEQ
LN_EPS = 1e-6


# ----------------------------- in-kernel helpers ------------------------------
def _ln(x, g, b, eps=LN_EPS):
    mu = jnp.mean(x, axis=-1, keepdims=True)
    var = jnp.mean((x - mu) ** 2, axis=-1, keepdims=True)
    return (x - mu) * jax.lax.rsqrt(var + eps) * g + b


def _gelu(y):
    # exact GELU, matches torch.nn.GELU default
    return 0.5 * y * (1.0 + jax.lax.erf(y * (1.0 / math.sqrt(2.0))))


def _softmax_rows(s):
    m = jnp.max(s, axis=-1, keepdims=True)
    p = jnp.exp(s - m)
    return p * pl.reciprocal(jnp.sum(p, axis=-1, keepdims=True), approx=True)


def _fs(shape):
    """Full-array BlockSpec for a grid=(1,) call."""
    return pl.BlockSpec(shape, lambda *_: (0,) * len(shape))


# ----------------------------- stem kernel ------------------------------------
def _stem_kernel(wpre_ref, bpre_ref, patches_ref, patch_w_ref, patch_b_ref,
                 cls_ref, pos_ref, o_ref):
    p = patches_ref[...]                              # (B*NP, PATCH*PATCH)
    # 1x1 conv (1 -> 3 channels) fused as per-channel scale + bias, channel-major
    chans = [p * wpre_ref[0, c] + bpre_ref[0, c] for c in range(C_MID)]
    p3 = jnp.concatenate(chans, axis=-1)              # (B*NP, C_MID*PATCH*PATCH)
    tokens = jnp.dot(p3, patch_w_ref[...], preferred_element_type=jnp.float32)
    tokens = tokens + patch_b_ref[...]                # (B*NP, D)
    pos = pos_ref[...]                                # (SEQ, D)
    cls = cls_ref[...]                                # (1, D)
    rows = []
    for b in range(B):
        rows.append(cls + pos[0:1, :])
        rows.append(tokens[b * N_PATCH:(b + 1) * N_PATCH, :] + pos[1:SEQ, :])
    o_ref[...] = jnp.concatenate(rows, axis=0)        # (B*SEQ, D)


def stem(patches, wpre, bpre, patch_w, patch_b, cls, pos):
    return pl.pallas_call(
        _stem_kernel,
        out_shape=jax.ShapeDtypeStruct((BS, D), jnp.float32),
        grid=(1,),
        in_specs=[
            pl.BlockSpec(memory_space=pltpu.MemorySpace.SMEM),   # conv_pre w
            pl.BlockSpec(memory_space=pltpu.MemorySpace.SMEM),   # conv_pre b
            _fs((B * N_PATCH, PATCH * PATCH)),
            _fs((C_MID * PATCH * PATCH, D)),
            _fs((1, D)),
            _fs((1, D)),
            _fs((SEQ, D)),
        ],
        out_specs=_fs((BS, D)),
    )(wpre, bpre, patches, patch_w, patch_b, cls, pos)


# ----------------------------- fused encoder block ----------------------------
def _block_kernel(x_ref, g1_ref, b1_ref, wqkv_ref, bqkv_ref, wo_ref, bo_ref,
                  g2_ref, b2_ref, w1_ref, bb1_ref, w2_ref, bb2_ref, o_ref):
    x = x_ref[...]                                            # (BS, D)

    # --- pre-LN self-attention ---
    y = _ln(x, g1_ref[...], b1_ref[...])
    qkv = jnp.dot(y, wqkv_ref[...], preferred_element_type=jnp.float32)
    qkv = qkv + bqkv_ref[...]                                 # (BS, 3D), lane-dense
    scale = 1.0 / math.sqrt(DH)
    q = qkv[:, 0:D] * scale                                   # scale folded into q
    k = qkv[:, D:2 * D]
    v = qkv[:, 2 * D:3 * D]

    batch_rows = []
    for b in range(B):                                        # static, unrolled
        r0 = b * SEQ
        heads = []
        for h in range(HEADS):                                # static, unrolled
            c0 = h * DH
            qh = q[r0:r0 + SEQ, c0:c0 + DH]                   # (SEQ, DH)
            kh = k[r0:r0 + SEQ, c0:c0 + DH]
            vh = v[r0:r0 + SEQ, c0:c0 + DH]
            s = jnp.dot(qh, kh.T, preferred_element_type=jnp.float32)
            p = _softmax_rows(s)
            heads.append(jnp.dot(p, vh, preferred_element_type=jnp.float32))
        batch_rows.append(jnp.concatenate(heads, axis=-1))    # (SEQ, D)
    att = jnp.concatenate(batch_rows, axis=0)                 # (BS, D)
    att = jnp.dot(att, wo_ref[...], preferred_element_type=jnp.float32) + bo_ref[...]
    x = x + att                                               # residual 1

    # --- pre-LN MLP ---
    y = _ln(x, g2_ref[...], b2_ref[...])
    h1 = jnp.dot(y, w1_ref[...], preferred_element_type=jnp.float32) + bb1_ref[...]
    h1 = _gelu(h1)
    h2 = jnp.dot(h1, w2_ref[...], preferred_element_type=jnp.float32) + bb2_ref[...]
    o_ref[...] = x + h2                                       # residual 2


def encoder_block(seq, lp):
    return pl.pallas_call(
        _block_kernel,
        out_shape=jax.ShapeDtypeStruct((BS, D), jnp.float32),
        grid=(1,),
        in_specs=[
            _fs((BS, D)),
            _fs((1, D)), _fs((1, D)),
            _fs((D, 3 * D)), _fs((1, 3 * D)),
            _fs((D, D)), _fs((1, D)),
            _fs((1, D)), _fs((1, D)),
            _fs((D, MLP)), _fs((1, MLP)),
            _fs((MLP, D)), _fs((1, D)),
        ],
        out_specs=_fs((BS, D)),
    )(seq, lp["ln1_g"], lp["ln1_b"], lp["Wqkv"], lp["bqkv"], lp["Wo"], lp["bo"],
      lp["ln2_g"], lp["ln2_b"], lp["W1"], lp["b1"], lp["W2"], lp["b2"])


# ----------------------------- fused tail kernel ------------------------------
def _tail_kernel(x_ref, g_ref, b_ref, hw_ref, hb_ref,
                 wq_ref, bq_ref, wkv_ref, bkv_ref, wo_ref, bo_ref,
                 cw_ref, cb_ref, o_ref):
    # final encoder LN
    x = _ln(x_ref[...], g_ref[...], b_ref[...])               # (BS, D)
    # class tokens (row 0 of each batch) -> ViT head Linear(D, NC)
    cls_rows = jnp.concatenate([x[b * SEQ:b * SEQ + 1, :] for b in range(B)], axis=0)
    feat = jnp.dot(cls_rows, hw_ref[...], preferred_element_type=jnp.float32)
    feat = feat + hb_ref[...]                                 # (B, NC)

    # features.unsqueeze(1): (L=B, N=1, E); query = mean over L
    query = jnp.mean(feat, axis=0, keepdims=True)             # (1, NC)

    # top-level nn.MultiheadAttention(NC, ATT_HEADS)
    scale = 1.0 / math.sqrt(ADH)
    q = (jnp.dot(query, wq_ref[...], preferred_element_type=jnp.float32)
         + bq_ref[...]) * scale                               # (1, NC)
    kv = jnp.dot(feat, wkv_ref[...], preferred_element_type=jnp.float32)
    kv = kv + bkv_ref[...]                                    # (B, 2*NC)
    k = kv[:, 0:NC]
    v = kv[:, NC:2 * NC]

    heads = []
    for h in range(ATT_HEADS):                                # static, unrolled
        c0 = h * ADH
        qh = q[:, c0:c0 + ADH]                                # (1, ADH)
        kh = k[:, c0:c0 + ADH]                                # (B, ADH)
        vh = v[:, c0:c0 + ADH]
        s = jnp.dot(qh, kh.T, preferred_element_type=jnp.float32)   # (1, B)
        p = _softmax_rows(s)
        heads.append(jnp.dot(p, vh, preferred_element_type=jnp.float32))
    o = jnp.concatenate(heads, axis=-1)                       # (1, NC)
    # TODO(synk): att_map (averaged attention weights) is computed implicitly and
    # discarded, matching the module's forward which only returns `out`.
    o = jnp.dot(o, wo_ref[...], preferred_element_type=jnp.float32) + bo_ref[...]

    # classifier Linear(NC, 1)
    o_ref[...] = jnp.dot(o, cw_ref[...], preferred_element_type=jnp.float32) + cb_ref[...]


def tail(seq, p):
    return pl.pallas_call(
        _tail_kernel,
        out_shape=jax.ShapeDtypeStruct((1, 1), jnp.float32),
        grid=(1,),
        in_specs=[
            _fs((BS, D)),
            _fs((1, D)), _fs((1, D)),
            _fs((D, NC)), _fs((1, NC)),
            _fs((NC, NC)), _fs((1, NC)),
            _fs((NC, 2 * NC)), _fs((1, 2 * NC)),
            _fs((NC, NC)), _fs((1, NC)),
            _fs((NC, 1)), _fs((1, 1)),
        ],
        out_specs=_fs((1, 1)),
    )(seq, p["ln_g"], p["ln_b"], p["head_w"], p["head_b"],
      p["att_Wq"], p["att_bq"], p["att_Wkv"], p["att_bkv"],
      p["att_Wo"], p["att_bo"], p["clf_w"], p["clf_b"])


# ----------------------------- forward ----------------------------------------
def vit_mha_forward(params, x):
    assert x.shape == (B, C_IN, IMG, IMG), x.shape
    # Patch layout shuffle left to XLA (2 KB); everything else runs in Pallas.
    patches = (x.reshape(B, IMG // PATCH, PATCH, IMG // PATCH, PATCH)
                 .transpose(0, 1, 3, 2, 4)
                 .reshape(B * N_PATCH, PATCH * PATCH))

    # stem: 1x1 conv + patch embed + class token + pos emb (one kernel)
    seq = stem(patches, params["conv_pre_w"], params["conv_pre_b"],
               params["patch_w"], params["patch_b"],
               params["cls_tok"], params["pos_emb"])           # (B*SEQ, D)

    # encoder: one fused kernel per layer
    for lp in params["layers"]:
        seq = encoder_block(seq, lp)

    # tail: final LN + head + top-level MHA + classifier (one kernel)
    return tail(seq, params)                                   # (1, 1)


# ----------------------------- deterministic parameter init -------------------
def init_params(key):
    keys = iter(jax.random.split(key, 64))

    def nrm(shape, scale=0.05):
        return scale * jax.random.normal(next(keys), shape, jnp.float32)

    def zeros(shape):
        return jnp.zeros(shape, jnp.float32)

    def ones(shape):
        return jnp.ones(shape, jnp.float32)

    params = {
        "conv_pre_w": nrm((1, C_MID)),
        "conv_pre_b": zeros((1, C_MID)),
        "patch_w": nrm((C_MID * PATCH * PATCH, D)),   # (c, ph, pw)-major rows
        "patch_b": zeros((1, D)),
        "cls_tok": nrm((1, D)),
        "pos_emb": nrm((SEQ, D)),
        "ln_g": ones((1, D)),
        "ln_b": zeros((1, D)),
        "head_w": nrm((D, NC)),
        "head_b": zeros((1, NC)),
        "att_Wq": nrm((NC, NC)),
        "att_bq": zeros((1, NC)),
        "att_Wkv": nrm((NC, 2 * NC)),                 # fused K|V projection
        "att_bkv": zeros((1, 2 * NC)),
        "att_Wo": nrm((NC, NC)),
        "att_bo": zeros((1, NC)),
        "clf_w": nrm((NC, 1)),
        "clf_b": zeros((1, 1)),
        "layers": [],
    }
    for _ in range(LAYERS):
        params["layers"].append({
            "ln1_g": ones((1, D)), "ln1_b": zeros((1, D)),
            "Wqkv": nrm((D, 3 * D)), "bqkv": zeros((1, 3 * D)),   # fused Q|K|V
            "Wo": nrm((D, D)), "bo": zeros((1, D)),
            "ln2_g": ones((1, D)), "ln2_b": zeros((1, D)),
            "W1": nrm((D, MLP)), "b1": zeros((1, MLP)),
            "W2": nrm((MLP, D)), "b2": zeros((1, D)),
        })
    return params


# ----------------------------- main --------------------------------------------
if __name__ == "__main__":
    key = jax.random.PRNGKey(0)
    # Input matches the module: NCHW with 1 channel (Conv2d(1, 3, 1) front-end).
    x = jax.random.normal(key, (B, C_IN, IMG, IMG), jnp.float32)
    params = init_params(jax.random.PRNGKey(1))

    fwd = jax.jit(vit_mha_forward)
    out = jax.block_until_ready(fwd(params, x))
    assert out.shape == (1, 1), out.shape
    assert bool(jnp.all(jnp.isfinite(out)))
    print("KERNEL_OK")
</pallas_src>

<mosaic_0001>
module attributes {stable_mosaic.version = 11 : i64} {
  func.func @_stem_kernel(%arg0: i32, %arg1: memref<1x3xf32, #tpu.memory_space<smem>>, %arg2: memref<1x3xf32, #tpu.memory_space<smem>>, %arg3: memref<8x64xf32, #tpu.memory_space<vmem>>, %arg4: memref<192x48xf32, #tpu.memory_space<vmem>>, %arg5: memref<1x48xf32, #tpu.memory_space<vmem>>, %arg6: memref<1x48xf32, #tpu.memory_space<vmem>>, %arg7: memref<5x48xf32, #tpu.memory_space<vmem>>, %arg8: memref<10x48xf32, #tpu.memory_space<vmem>>) attributes {dimension_semantics = [#tpu.dimension_semantics<arbitrary>], iteration_bounds = array<i64: 1>, scalar_prefetch = 0 : i64, scratch_operands = 0 : i64, tpu.core_type = #tpu.core_type<tc>, window_params = [{transform_indices = @transform_0, window_bounds = array<i64: 1, 3>}, {transform_indices = @transform_1, window_bounds = array<i64: 1, 3>}, {pipeline_mode = #tpu.pipeline_mode<synchronous>, transform_indices = @transform_2, window_bounds = array<i64: 8, 64>}, {pipeline_mode = #tpu.pipeline_mode<synchronous>, transform_indices = @transform_3, window_bounds = array<i64: 192, 48>}, {pipeline_mode = #tpu.pipeline_mode<synchronous>, transform_indices = @transform_4, window_bounds = array<i64: 1, 48>}, {pipeline_mode = #tpu.pipeline_mode<synchronous>, transform_indices = @transform_5, window_bounds = array<i64: 1, 48>}, {pipeline_mode = #tpu.pipeline_mode<synchronous>, transform_indices = @transform_6, window_bounds = array<i64: 5, 48>}, {pipeline_mode = #tpu.pipeline_mode<synchronous>, transform_indices = @transform_7, window_bounds = array<i64: 10, 48>}]} {
    %c0 = arith.constant 0 : index
    %c0_0 = arith.constant 0 : index
    %0 = vector.load %arg3[%c0, %c0_0] : memref<8x64xf32, #tpu.memory_space<vmem>>, vector<8x64xf32>
    %c0_1 = arith.constant 0 : index
    %c0_2 = arith.constant 0 : index
    %1 = memref.load %arg1[%c0_1, %c0_2] : memref<1x3xf32, #tpu.memory_space<smem>>
    %2 = vector.broadcast %1 : f32 to vector<8x64xf32>
    %3 = arith.mulf %0, %2 : vector<8x64xf32>
    %c0_3 = arith.constant 0 : index
    %c0_4 = arith.constant 0 : index
    %4 = memref.load %arg2[%c0_3, %c0_4] : memref<1x3xf32, #tpu.memory_space<smem>>
    %5 = vector.broadcast %4 : f32 to vector<8x64xf32>
    %6 = arith.addf %3, %5 : vector<8x64xf32>
    %c0_5 = arith.constant 0 : index
    %c1 = arith.constant 1 : index
    %7 = memref.load %arg1[%c0_5, %c1] : memref<1x3xf32, #tpu.memory_space<smem>>
    %8 = vector.broadcast %7 : f32 to vector<8x64xf32>
    %9 = arith.mulf %0, %8 : vector<8x64xf32>
    %c0_6 = arith.constant 0 : index
    %c1_7 = arith.constant 1 : index
    %10 = memref.load %arg2[%c0_6, %c1_7] : memref<1x3xf32, #tpu.memory_space<smem>>
    %11 = vector.broadcast %10 : f32 to vector<8x64xf32>
    %12 = arith.addf %9, %11 : vector<8x64xf32>
    %c0_8 = arith.constant 0 : index
    %c2 = arith.constant 2 : index
    %13 = memref.load %arg1[%c0_8, %c2] : memref<1x3xf32, #tpu.memory_space<smem>>
    %14 = vector.broadcast %13 : f32 to vector<8x64xf32>
    %15 = arith.mulf %0, %14 : vector<8x64xf32>
    %c0_9 = arith.constant 0 : index
    %c2_10 = arith.constant 2 : index
    %16 = memref.load %arg2[%c0_9, %c2_10] : memref<1x3xf32, #tpu.memory_space<smem>>
    %17 = vector.broadcast %16 : f32 to vector<8x64xf32>
    %18 = arith.addf %15, %17 : vector<8x64xf32>
    %19 = tpu.concatenate %6, %12, %18 in 1 : vector<8x64xf32>, vector<8x64xf32>, vector<8x64xf32> -> vector<8x192xf32>
    %c0_11 = arith.constant 0 : index
    %c0_12 = arith.constant 0 : index
    %20 = vector.load %arg4[%c0_11, %c0_12] : memref<192x48xf32, #tpu.memory_space<vmem>>, vector<192x48xf32>
    %cst = arith.constant dense<0.000000e+00> : vector<8x48xf32>
    %21 = tpu.matmul %19, %20, %cst {dimension_numbers = #tpu.dot_dimension_numbers<[1], [0], [0], [1], [0, 0, 1, 1], [], []>} : vector<8x192xf32>, vector<192x48xf32>, vector<8x48xf32> -> vector<8x48xf32>
    %c0_13 = arith.constant 0 : index
    %c0_14 = arith.constant 0 : index
    %22 = vector.load %arg5[%c0_13, %c0_14] : memref<1x48xf32, #tpu.memory_space<vmem>>, vector<1x48xf32>
    %23 = vector.broadcast %22 : vector<1x48xf32> to vector<8x48xf32>
    %24 = arith.addf %21, %23 : vector<8x48xf32>
    %c0_15 = arith.constant 0 : index
    %c0_16 = arith.constant 0 : index
    %25 = vector.load %arg7[%c0_15, %c0_16] : memref<5x48xf32, #tpu.memory_space<vmem>>, vector<5x48xf32>
    %c0_17 = arith.constant 0 : index
    %c0_18 = arith.constant 0 : index
    %26 = vector.load %arg6[%c0_17, %c0_18] : memref<1x48xf32, #tpu.memory_space<vmem>>, vector<1x48xf32>
    %27 = vector.extract_strided_slice %25 {offsets = [0, 0], sizes = [1, 48], strides = [1, 1]} : vector<5x48xf32> to vector<1x48xf32>
    %28 = arith.addf %26, %27 : vector<1x48xf32>
    %29 = vector.extract_strided_slice %24 {offsets = [0, 0], sizes = [4, 48], strides = [1, 1]} : vector<8x48xf32> to vector<4x48xf32>
    %30 = vector.extract_strided_slice %25 {offsets = [1, 0], sizes = [4, 48], strides = [1, 1]} : vector<5x48xf32> to vector<4x48xf32>
    %31 = arith.addf %29, %30 : vector<4x48xf32>
    %32 = vector.extract_strided_slice %25 {offsets = [0, 0], sizes = [1, 48], strides = [1, 1]} : vector<5x48xf32> to vector<1x48xf32>
    %33 = arith.addf %26, %32 : vector<1x48xf32>
    %34 = vector.extract_strided_slice %24 {offsets = [4, 0], sizes = [4, 48], strides = [1, 1]} : vector<8x48xf32> to vector<4x48xf32>
    %35 = vector.extract_strided_slice %25 {offsets = [1, 0], sizes = [4, 48], strides = [1, 1]} : vector<5x48xf32> to vector<4x48xf32>
    %36 = arith.addf %34, %35 : vector<4x48xf32>
    %37 = tpu.concatenate %28, %31, %33, %36 in 0 : vector<1x48xf32>, vector<4x48xf32>, vector<1x48xf32>, vector<4x48xf32> -> vector<10x48xf32>
    %c0_19 = arith.constant 0 : index
    %c0_20 = arith.constant 0 : index
    %38 = vector.load %arg8[%c0_19, %c0_20] : memref<10x48xf32, #tpu.memory_space<vmem>>, vector<10x48xf32>
    tpu.vector_store %arg8[%c0_19, %c0_20], %37 {strides = array<i32>} : memref<10x48xf32, #tpu.memory_space<vmem>>, vector<10x48xf32>,
    return
  }
  func.func @transform_0(%arg0: i32) -> (i32, i32) {
    %c0_i32 = arith.constant 0 : i32
    %c0_i32_0 = arith.constant 0 : i32
    %c0_i32_1 = arith.constant 0 : i32
    return %c0_i32, %c0_i32_0 : i32, i32
  }
  func.func @transform_1(%arg0: i32) -> (i32, i32) {
    %c0_i32 = arith.constant 0 : i32
    %c0_i32_0 = arith.constant 0 : i32
    %c0_i32_1 = arith.constant 0 : i32
    return %c0_i32, %c0_i32_0 : i32, i32
  }
  func.func @transform_2(%arg0: i32) -> (i32, i32) {
    %c0_i32 = arith.constant 0 : i32
    %c0_i32_0 = arith.constant 0 : i32
    %c0_i32_1 = arith.constant 0 : i32
    return %c0_i32, %c0_i32_0 : i32, i32
  }
  func.func @transform_3(%arg0: i32) -> (i32, i32) {
    %c0_i32 = arith.constant 0 : i32
    %c0_i32_0 = arith.constant 0 : i32
    %c0_i32_1 = arith.constant 0 : i32
    return %c0_i32, %c0_i32_0 : i32, i32
  }
  func.func @transform_4(%arg0: i32) -> (i32, i32) {
    %c0_i32 = arith.constant 0 : i32
    %c0_i32_0 = arith.constant 0 : i32
    %c0_i32_1 = arith.constant 0 : i32
    return %c0_i32, %c0_i32_0 : i32, i32
  }
  func.func @transform_5(%arg0: i32) -> (i32, i32) {
    %c0_i32 = arith.constant 0 : i32
    %c0_i32_0 = arith.constant 0 : i32
    %c0_i32_1 = arith.constant 0 : i32
    return %c0_i32, %c0_i32_0 : i32, i32
  }
  func.func @transform_6(%arg0: i32) -> (i32, i32) {
    %c0_i32 = arith.constant 0 : i32
    %c0_i32_0 = arith.constant 0 : i32
    %c0_i32_1 = arith.constant 0 : i32
    return %c0_i32, %c0_i32_0 : i32, i32
  }
  func.func @transform_7(%arg0: i32) -> (i32, i32) {
    %c0_i32 = arith.constant 0 : i32
    %c0_i32_0 = arith.constant 0 : i32
    %c0_i32_1 = arith.constant 0 : i32
    return %c0_i32, %c0_i32_0 : i32, i32
  }
}

module attributes {stable_mosaic.version = 11 : i64} {
  func.func @_block_kernel(%arg0: i32, %arg1: memref<10x48xf32, #tpu.memory_space<vmem>>, %arg2: memref<1x48xf32, #tpu.memory_space<vmem>>, %arg3: memref<1x48xf32, #tpu.memory_space<vmem>>, %arg4: memref<48x144xf32, #tpu.memory_space<vmem>>, %arg5: memref<1x144xf32, #tpu.memory_space<vmem>>, %arg6: memref<48x48xf32, #tpu.memory_space<vmem>>, %arg7: memref<1x48xf32, #tpu.memory_space<vmem>>, %arg8: memref<1x48xf32, #tpu.memory_space<vmem>>, %arg9: memref<1x48xf32, #tpu.memory_space<vmem>>, %arg10: memref<48x96xf32, #tpu.memory_space<vmem>>, %arg11: memref<1x96xf32, #tpu.memory_space<vmem>>, %arg12: memref<96x48xf32, #tpu.memory_space<vmem>>, %arg13: memref<1x48xf32, #tpu.memory_space<vmem>>, %arg14: memref<10x48xf32, #tpu.memory_space<vmem>>) attributes {dimension_semantics = [#tpu.dimension_semantics<arbitrary>], iteration_bounds = array<i64: 1>, scalar_prefetch = 0 : i64, scratch_operands = 0 : i64, tpu.core_type = #tpu.core_type<tc>, window_params = [{pipeline_mode = #tpu.pipeline_mode<synchronous>, transform_indices = @transform_0, window_bounds = array<i64: 10, 48>}, {pipeline_mode = #tpu.pipeline_mode<synchronous>, transform_indices = @transform_1, window_bounds = array<i64: 1, 48>}, {pipeline_mode = #tpu.pipeline_mode<synchronous>, transform_indices = @transform_2, window_bounds = array<i64: 1, 48>}, {pipeline_mode = #tpu.pipeline_mode<synchronous>, transform_indices = @transform_3, window_bounds = array<i64: 48, 144>}, {pipeline_mode = #tpu.pipeline_mode<synchronous>, transform_indices = @transform_4, window_bounds = array<i64: 1, 144>}, {pipeline_mode = #tpu.pipeline_mode<synchronous>, transform_indices = @transform_5, window_bounds = array<i64: 48, 48>}, {pipeline_mode = #tpu.pipeline_mode<synchronous>, transform_indices = @transform_6, window_bounds = array<i64: 1, 48>}, {pipeline_mode = #tpu.pipeline_mode<synchronous>, transform_indices = @transform_7, window_bounds = array<i64: 1, 48>}, {pipeline_mode = #tpu.pipeline_mode<synchronous>, transform_indices = @transform_8, window_bounds = array<i64: 1, 48>}, {pipeline_mode = #tpu.pipeline_mode<synchronous>, transform_indices = @transform_9, window_bounds = array<i64: 48, 96>}, {pipeline_mode = #tpu.pipeline_mode<synchronous>, transform_indices = @transform_10, window_bounds = array<i64: 1, 96>}, {pipeline_mode = #tpu.pipeline_mode<synchronous>, transform_indices = @transform_11, window_bounds = array<i64: 96, 48>}, {pipeline_mode = #tpu.pipeline_mode<synchronous>, transform_indices = @transform_12, window_bounds = array<i64: 1, 48>}, {pipeline_mode = #tpu.pipeline_mode<synchronous>, transform_indices = @transform_13, window_bounds = array<i64: 10, 48>}]} {
    %c0 = arith.constant 0 : index
    %c0_0 = arith.constant 0 : index
    %0 = vector.load %arg1[%c0, %c0_0] : memref<10x48xf32, #tpu.memory_space<vmem>>, vector<10x48xf32>
    %c0_1 = arith.constant 0 : index
    %c0_2 = arith.constant 0 : index
    %1 = vector.load %arg2[%c0_1, %c0_2] : memref<1x48xf32, #tpu.memory_space<vmem>>, vector<1x48xf32>
    %c0_3 = arith.constant 0 : index
    %c0_4 = arith.constant 0 : index
    %2 = vector.load %arg3[%c0_3, %c0_4] : memref<1x48xf32, #tpu.memory_space<vmem>>, vector<1x48xf32>
    %cst = arith.constant dense<0.000000e+00> : vector<10xf32>
    %3 = vector.multi_reduction <add>, %0, %cst [1] : vector<10x48xf32> to vector<10xf32>
    %4 = vector.shape_cast %3 : vector<10xf32> to vector<10x1xf32>
    %cst_5 = arith.constant 4.800000e+01 : f32
    %5 = vector.broadcast %cst_5 : f32 to vector<10x1xf32>
    %6 = arith.divf %4, %5 : vector<10x1xf32>
    %7 = vector.broadcast %6 : vector<10x1xf32> to vector<10x48xf32>
    %8 = arith.subf %0, %7 : vector<10x48xf32>
    %9 = arith.mulf %8, %8 : vector<10x48xf32>
    %cst_6 = arith.constant dense<0.000000e+00> : vector<10xf32>
    %10 = vector.multi_reduction <add>, %9, %cst_6 [1] : vector<10x48xf32> to vector<10xf32>
    %11 = vector.shape_cast %10 : vector<10xf32> to vector<10x1xf32>
    %cst_7 = arith.constant 4.800000e+01 : f32
    %12 = vector.broadcast %cst_7 : f32 to vector<10x1xf32>
    %13 = arith.divf %11, %12 : vector<10x1xf32>
    %14 = vector.broadcast %6 : vector<10x1xf32> to vector<10x48xf32>
    %15 = arith.subf %0, %14 : vector<10x48xf32>
    %cst_8 = arith.constant 9.99999997E-7 : f32
    %16 = vector.broadcast %cst_8 : f32 to vector<10x1xf32>
    %17 = arith.addf %13, %16 : vector<10x1xf32>
    %18 = math.rsqrt %17 : vector<10x1xf32>
    %19 = vector.broadcast %18 : vector<10x1xf32> to vector<10x48xf32>
    %20 = arith.mulf %15, %19 : vector<10x48xf32>
    %21 = vector.broadcast %1 : vector<1x48xf32> to vector<10x48xf32>
    %22 = arith.mulf %20, %21 : vector<10x48xf32>
    %23 = vector.broadcast %2 : vector<1x48xf32> to vector<10x48xf32>
    %24 = arith.addf %22, %23 : vector<10x48xf32>
    %c0_9 = arith.constant 0 : index
    %c0_10 = arith.constant 0 : index
    %25 = vector.load %arg4[%c0_9, %c0_10] : memref<48x144xf32, #tpu.memory_space<vmem>>, vector<48x144xf32>
    %cst_11 = arith.constant dense<0.000000e+00> : vector<10x144xf32>
    %26 = tpu.matmul %24, %25, %cst_11 {dimension_numbers = #tpu.dot_dimension_numbers<[1], [0], [0], [1], [0, 0, 1, 1], [], []>} : vector<10x48xf32>, vector<48x144xf32>, vector<10x144xf32> -> vector<10x144xf32>
    %c0_12 = arith.constant 0 : index
    %c0_13 = arith.constant 0 : index
    %27 = vector.load %arg5[%c0_12, %c0_13] : memref<1x144xf32, #tpu.memory_space<vmem>>, vector<1x144xf32>
    %28 = vector.broadcast %27 : vector<1x144xf32> to vector<10x144xf32>
    %29 = arith.addf %26, %28 : vector<10x144xf32>
    %30 = vector.extract_strided_slice %29 {offsets = [0, 0], sizes = [10, 48], strides = [1, 1]} : vector<10x144xf32> to vector<10x48xf32>
    %cst_14 = arith.constant 0.288675129 : f32
    %31 = vector.broadcast %cst_14 : f32 to vector<10x48xf32>
    %32 = arith.mulf %30, %31 : vector<10x48xf32>
    %33 = vector.extract_strided_slice %29 {offsets = [0, 48], sizes = [10, 48], strides = [1, 1]} : vector<10x144xf32> to vector<10x48xf32>
    %34 = vector.extract_strided_slice %29 {offsets = [0, 96], sizes = [10, 48], strides = [1, 1]} : vector<10x144xf32> to vector<10x48xf32>
    %35 = vector.extract_strided_slice %32 {offsets = [0, 0], sizes = [5, 12], strides = [1, 1]} : vector<10x48xf32> to vector<5x12xf32>
    %36 = vector.extract_strided_slice %33 {offsets = [0, 0], sizes = [5, 12], strides = [1, 1]} : vector<10x48xf32> to vector<5x12xf32>
    %37 = vector.extract_strided_slice %34 {offsets = [0, 0], sizes = [5, 12], strides = [1, 1]} : vector<10x48xf32> to vector<5x12xf32>
    %38 = tpu.transpose %36, [1, 0] : vector<5x12xf32> -> vector<12x5xf32>
    %cst_15 = arith.constant dense<0.000000e+00> : vector<5x5xf32>
    %39 = tpu.matmul %35, %38, %cst_15 {dimension_numbers = #tpu.dot_dimension_numbers<[1], [0], [0], [1], [0, 0, 1, 1], [], []>} : vector<5x12xf32>, vector<12x5xf32>, vector<5x5xf32> -> vector<5x5xf32>
    %cst_16 = arith.constant dense<0xFF800000> : vector<5xf32>
    %40 = vector.multi_reduction <maximumf>, %39, %cst_16 [1] : vector<5x5xf32> to vector<5xf32>
    %41 = vector.shape_cast %40 : vector<5xf32> to vector<5x1xf32>
    %42 = vector.broadcast %41 : vector<5x1xf32> to vector<5x5xf32>
    %43 = arith.subf %39, %42 : vector<5x5xf32>
    %44 = math.exp %43 : vector<5x5xf32>
    %cst_17 = arith.constant dense<0.000000e+00> : vector<5xf32>
    %45 = vector.multi_reduction <add>, %44, %cst_17 [1] : vector<5x5xf32> to vector<5xf32>
    %46 = vector.shape_cast %45 : vector<5xf32> to vector<5x1xf32>
    %47 = tpu.reciprocal %46 {approx = true} : vector<5x1xf32> -> vector<5x1xf32>
    %48 = vector.broadcast %47 : vector<5x1xf32> to vector<5x5xf32>
    %49 = arith.mulf %44, %48 : vector<5x5xf32>
    %cst_18 = arith.constant dense<0.000000e+00> : vector<5x12xf32>
    %50 = tpu.matmul %49, %37, %cst_18 {dimension_numbers = #tpu.dot_dimension_numbers<[1], [0], [0], [1], [0, 0, 1, 1], [], []>} : vector<5x5xf32>, vector<5x12xf32>, vector<5x12xf32> -> vector<5x12xf32>
    %51 = vector.extract_strided_slice %32 {offsets = [0, 12], sizes = [5, 12], strides = [1, 1]} : vector<10x48xf32> to vector<5x12xf32>
    %52 = vector.extract_strided_slice %33 {offsets = [0, 12], sizes = [5, 12], strides = [1, 1]} : vector<10x48xf32> to vector<5x12xf32>
    %53 = vector.extract_strided_slice %34 {offsets = [0, 12], sizes = [5, 12], strides = [1, 1]} : vector<10x48xf32> to vector<5x12xf32>
    %54 = tpu.transpose %52, [1, 0] : vector<5x12xf32> -> vector<12x5xf32>
    %cst_19 = arith.constant dense<0.000000e+00> : vector<5x5xf32>
    %55 = tpu.matmul %51, %54, %cst_19 {dimension_numbers = #tpu.dot_dimension_numbers<[1], [0], [0], [1], [0, 0, 1, 1], [], []>} : vector<5x12xf32>, vector<12x5xf32>, vector<5x5xf32> -> vector<5x5xf32>
    %cst_20 = arith.constant dense<0xFF800000> : vector<5xf32>
    %56 = vector.multi_reduction <maximumf>, %55, %cst_20 [1] : vector<5x5xf32> to vector<5xf32>
    %57 = vector.shape_cast %56 : vector<5xf32> to vector<5x1xf32>
    %58 = vector.broadcast %57 : vector<5x1xf32> to vector<5x5xf32>
    %59 = arith.subf %55, %58 : vector<5x5xf32>
    %60 = math.exp %59 : vector<5x5xf32>
    %cst_21 = arith.constant dense<0.000000e+00> : vector<5xf32>
    %61 = vector.multi_reduction <add>, %60, %cst_21 [1] : vector<5x5xf32> to vector<5xf32>
    %62 = vector.shape_cast %61 : vector<5xf32> to vector<5x1xf32>
    %63 = tpu.reciprocal %62 {approx = true} : vector<5x1xf32> -> vector<5x1xf32>
    %64 = vector.broadcast %63 : vector<5x1xf32> to vector<5x5xf32>
    %65 = arith.mulf %60, %64 : vector<5x5xf32>
    %cst_22 = arith.constant dense<0.000000e+00> : vector<5x12xf32>
    %66 = tpu.matmul %65, %53, %cst_22 {dimension_numbers = #tpu.dot_dimension_numbers<[1], [0], [0], [1], [0, 0, 1, 1], [], []>} : vector<5x5xf32>, vector<5x12xf32>, vector<5x12xf32> -> vector<5x12xf32>
    %67 = vector.extract_strided_slice %32 {offsets = [0, 24], sizes = [5, 12], strides = [1, 1]} : vector<10x48xf32> to vector<5x12xf32>
    %68 = vector.extract_strided_slice %33 {offsets = [0, 24], sizes = [5, 12], strides = [1, 1]} : vector<10x48xf32> to vector<5x12xf32>
    %69 = vector.extract_strided_slice %34 {offsets = [0, 24], sizes = [5, 12], strides = [1, 1]} : vector<10x48xf32> to vector<5x12xf32>
    %70 = tpu.transpose %68, [1, 0] : vector<5x12xf32> -> vector<12x5xf32>
    %cst_23 = arith.constant dense<0.000000e+00> : vector<5x5xf32>
    %71 = tpu.matmul %67, %70, %cst_23 {dimension_numbers = #tpu.dot_dimension_numbers<[1], [0], [0], [1], [0, 0, 1, 1], [], []>} : vector<5x12xf32>, vector<12x5xf32>, vector<5x5xf32> -> vector<5x5xf32>
    %cst_24 = arith.constant dense<0xFF800000> : vector<5xf32>
    %72 = vector.multi_reduction <maximumf>, %71, %cst_24 [1] : vector<5x5xf32> to vector<5xf32>
    %73 = vector.shape_cast %72 : vector<5xf32> to vector<5x1xf32>
    %74 = vector.broadcast %73 : vector<5x1xf32> to vector<5x5xf32>
    %75 = arith.subf %71, %74 : vector<5x5xf32>
    %76 = math.exp %75 : vector<5x5xf32>
    %cst_25 = arith.constant dense<0.000000e+00> : vector<5xf32>
    %77 = vector.multi_reduction <add>, %76, %cst_25 [1] : vector<5x5xf32> to vector<5xf32>
    %78 = vector.shape_cast %77 : vector<5xf32> to vector<5x1xf32>
    %79 = tpu.reciprocal %78 {approx = true} : vector<5x1xf32> -> vector<5x1xf32>
    %80 = vector.broadcast %79 : vector<5x1xf32> to vector<5x5xf32>
    %81 = arith.mulf %76, %80 : vector<5x5xf32>
    %cst_26 = arith.constant dense<0.000000e+00> : vector<5x12xf32>
    %82 = tpu.matmul %81, %69, %cst_26 {dimension_numbers = #tpu.dot_dimension_numbers<[1], [0], [0], [1], [0, 0, 1, 1], [], []>} : vector<5x5xf32>, vector<5x12xf32>, vector<5x12xf32> -> vector<5x12xf32>
    %83 = vector.extract_strided_slice %32 {offsets = [0, 36], sizes = [5, 12], strides = [1, 1]} : vector<10x48xf32> to vector<5x12xf32>
    %84 = vector.extract_strided_slice %33 {offsets = [0, 36], sizes = [5, 12], strides = [1, 1]} : vector<10x48xf32> to vector<5x12xf32>
    %85 = vector.extract_strided_slice %34 {offsets = [0, 36], sizes = [5, 12], strides = [1, 1]} : vector<10x48xf32> to vector<5x12xf32>
    %86 = tpu.transpose %84, [1, 0] : vector<5x12xf32> -> vector<12x5xf32>
    %cst_27 = arith.constant dense<0.000000e+00> : vector<5x5xf32>
    %87 = tpu.matmul %83, %86, %cst_27 {dimension_numbers = #tpu.dot_dimension_numbers<[1], [0], [0], [1], [0, 0, 1, 1], [], []>} : vector<5x12xf32>, vector<12x5xf32>, vector<5x5xf32> -> vector<5x5xf32>
    %cst_28 = arith.constant dense<0xFF800000> : vector<5xf32>
    %88 = vector.multi_reduction <maximumf>, %87, %cst_28 [1] : vector<5x5xf32> to vector<5xf32>
    %89 = vector.shape_cast %88 : vector<5xf32> to vector<5x1xf32>
    %90 = vector.broadcast %89 : vector<5x1xf32> to vector<5x5xf32>
    %91 = arith.subf %87, %90 : vector<5x5xf32>
    %92 = math.exp %91 : vector<5x5xf32>
    %cst_29 = arith.constant dense<0.000000e+00> : vector<5xf32>
    %93 = vector.multi_reduction <add>, %92, %cst_29 [1] : vector<5x5xf32> to vector<5xf32>
    %94 = vector.shape_cast %93 : vector<5xf32> to vector<5x1xf32>
    %95 = tpu.reciprocal %94 {approx = true} : vector<5x1xf32> -> vector<5x1xf32>
    %96 = vector.broadcast %95 : vector<5x1xf32> to vector<5x5xf32>
    %97 = arith.mulf %92, %96 : vector<5x5xf32>
    %cst_30 = arith.constant dense<0.000000e+00> : vector<5x12xf32>
    %98 = tpu.matmul %97, %85, %cst_30 {dimension_numbers = #tpu.dot_dimension_numbers<[1], [0], [0], [1], [0, 0, 1, 1], [], []>} : vector<5x5xf32>, vector<5x12xf32>, vector<5x12xf32> -> vector<5x12xf32>
    %99 = tpu.concatenate %50, %66, %82, %98 in 1 : vector<5x12xf32>, vector<5x12xf32>, vector<5x12xf32>, vector<5x12xf32> -> vector<5x48xf32>
    %100 = vector.extract_strided_slice %32 {offsets = [5, 0], sizes = [5, 12], strides = [1, 1]} : vector<10x48xf32> to vector<5x12xf32>
    %101 = vector.extract_strided_slice %33 {offsets = [5, 0], sizes = [5, 12], strides = [1, 1]} : vector<10x48xf32> to vector<5x12xf32>
    %102 = vector.extract_strided_slice %34 {offsets = [5, 0], sizes = [5, 12], strides = [1, 1]} : vector<10x48xf32> to vector<5x12xf32>
    %103 = tpu.transpose %101, [1, 0] : vector<5x12xf32> -> vector<12x5xf32>
    %cst_31 = arith.constant dense<0.000000e+00> : vector<5x5xf32>
    %104 = tpu.matmul %100, %103, %cst_31 {dimension_numbers = #tpu.dot_dimension_numbers<[1], [0], [0], [1], [0, 0, 1, 1], [], []>} : vector<5x12xf32>, vector<12x5xf32>, vector<5x5xf32> -> vector<5x5xf32>
    %cst_32 = arith.constant dense<0xFF800000> : vector<5xf32>
    %105 = vector.multi_reduction <maximumf>, %104, %cst_32 [1] : vector<5x5xf32> to vector<5xf32>
    %106 = vector.shape_cast %105 : vector<5xf32> to vector<5x1xf32>
    %107 = vector.broadcast %106 : vector<5x1xf32> to vector<5x5xf32>
    %108 = arith.subf %104, %107 : vector<5x5xf32>
    %109 = math.exp %108 : vector<5x5xf32>
    %cst_33 = arith.constant dense<0.000000e+00> : vector<5xf32>
    %110 = vector.multi_reduction <add>, %109, %cst_33 [1] : vector<5x5xf32> to vector<5xf32>
    %111 = vector.shape_cast %110 : vector<5xf32> to vector<5x1xf32>
    %112 = tpu.reciprocal %111 {approx = true} : vector<5x1xf32> -> vector<5x1xf32>
    %113 = vector.broadcast %112 : vector<5x1xf32> to vector<5x5xf32>
    %114 = arith.mulf %109, %113 : vector<5x5xf32>
    %cst_34 = arith.constant dense<0.000000e+00> : vector<5x12xf32>
    %115 = tpu.matmul %114, %102, %cst_34 {dimension_numbers = #tpu.dot_dimension_numbers<[1], [0], [0], [1], [0, 0, 1, 1], [], []>} : vector<5x5xf32>, vector<5x12xf32>, vector<5x12xf32> -> vector<5x12xf32>
    %116 = vector.extract_strided_slice %32 {offsets = [5, 12], sizes = [5, 12], strides = [1, 1]} : vector<10x48xf32> to vector<5x12xf32>
    %117 = vector.extract_strided_slice %33 {offsets = [5, 12], sizes = [5, 12], strides = [1, 1]} : vector<10x48xf32> to vector<5x12xf32>
    %118 = vector.extract_strided_slice %34 {offsets = [5, 12], sizes = [5, 12], strides = [1, 1]} : vector<10x48xf32> to vector<5x12xf32>
    %119 = tpu.transpose %117, [1, 0] : vector<5x12xf32> -> vector<12x5xf32>
    %cst_35 = arith.constant dense<0.000000e+00> : vector<5x5xf32>
    %120 = tpu.matmul %116, %119, %cst_35 {dimension_numbers = #tpu.dot_dimension_numbers<[1], [0], [0], [1], [0, 0, 1, 1], [], []>} : vector<5x12xf32>, vector<12x5xf32>, vector<5x5xf32> -> vector<5x5xf32>
    %cst_36 = arith.constant dense<0xFF800000> : vector<5xf32>
    %121 = vector.multi_reduction <maximumf>, %120, %cst_36 [1] : vector<5x5xf32> to vector<5xf32>
    %122 = vector.shape_cast %121 : vector<5xf32> to vector<5x1xf32>
    %123 = vector.broadcast %122 : vector<5x1xf32> to vector<5x5xf32>
    %124 = arith.subf %120, %123 : vector<5x5xf32>
    %125 = math.exp %124 : vector<5x5xf32>
    %cst_37 = arith.constant dense<0.000000e+00> : vector<5xf32>
    %126 = vector.multi_reduction <add>, %125, %cst_37 [1] : vector<5x5xf32> to vector<5xf32>
    %127 = vector.shape_cast %126 : vector<5xf32> to vector<5x1xf32>
    %128 = tpu.reciprocal %127 {approx = true} : vector<5x1xf32> -> vector<5x1xf32>
    %129 = vector.broadcast %128 : vector<5x1xf32> to vector<5x5xf32>
    %130 = arith.mulf %125, %129 : vector<5x5xf32>
    %cst_38 = arith.constant dense<0.000000e+00> : vector<5x12xf32>
    %131 = tpu.matmul %130, %118, %cst_38 {dimension_numbers = #tpu.dot_dimension_numbers<[1], [0], [0], [1], [0, 0, 1, 1], [], []>} : vector<5x5xf32>, vector<5x12xf32>, vector<5x12xf32> -> vector<5x12xf32>
    %132 = vector.extract_strided_slice %32 {offsets = [5, 24], sizes = [5, 12], strides = [1, 1]} : vector<10x48xf32> to vector<5x12xf32>
    %133 = vector.extract_strided_slice %33 {offsets = [5, 24], sizes = [5, 12], strides = [1, 1]} : vector<10x48xf32> to vector<5x12xf32>
    %134 = vector.extract_strided_slice %34 {offsets = [5, 24], sizes = [5, 12], strides = [1, 1]} : vector<10x48xf32> to vector<5x12xf32>
    %135 = tpu.transpose %133, [1, 0] : vector<5x12xf32> -> vector<12x5xf32>
    %cst_39 = arith.constant dense<0.000000e+00> : vector<5x5xf32>
    %136 = tpu.matmul %132, %135, %cst_39 {dimension_numbers = #tpu.dot_dimension_numbers<[1], [0], [0], [1], [0, 0, 1, 1], [], []>} : vector<5x12xf32>, vector<12x5xf32>, vector<5x5xf32> -> vector<5x5xf32>
    %cst_40 = arith.constant dense<0xFF800000> : vector<5xf32>
    %137 = vector.multi_reduction <maximumf>, %136, %cst_40 [1] : vector<5x5xf32> to vector<5xf32>
    %138 = vector.shape_cast %137 : vector<5xf32> to vector<5x1xf32>
    %139 = vector.broadcast %138 : vector<5x1xf32> to vector<5x5xf32>
    %140 = arith.subf %136, %139 : vector<5x5xf32>
    %141 = math.exp %140 : vector<5x5xf32>
    %cst_41 = arith.constant dense<0.000000e+00> : vector<5xf32>
    %142 = vector.multi_reduction <add>, %141, %cst_41 [1] : vector<5x5xf32> to vector<5xf32>
    %143 = vector.shape_cast %142 : vector<5xf32> to vector<5x1xf32>
    %144 = tpu.reciprocal %143 {approx = true} : vector<5x1xf32> -> vector<5x1xf32>
    %145 = vector.broadcast %144 : vector<5x1xf32> to vector<5x5xf32>
    %146 = arith.mulf %141, %145 : vector<5x5xf32>
    %cst_42 = arith.constant dense<0.000000e+00> : vector<5x12xf32>
    %147 = tpu.matmul %146, %134, %cst_42 {dimension_numbers = #tpu.dot_dimension_numbers<[1], [0], [0], [1], [0, 0, 1, 1], [], []>} : vector<5x5xf32>, vector<5x12xf32>, vector<5x12xf32> -> vector<5x12xf32>
    %148 = vector.extract_strided_slice %32 {offsets = [5, 36], sizes = [5, 12], strides = [1, 1]} : vector<10x48xf32> to vector<5x12xf32>
    %149 = vector.extract_strided_slice %33 {offsets = [5, 36], sizes = [5, 12], strides = [1, 1]} : vector<10x48xf32> to vector<5x12xf32>
    %150 = vector.extract_strided_slice %34 {offsets = [5, 36], sizes = [5, 12], strides = [1, 1]} : vector<10x48xf32> to vector<5x12xf32>
    %151 = tpu.transpose %149, [1, 0] : vector<5x12xf32> -> vector<12x5xf32>
    %cst_43 = arith.constant dense<0.000000e+00> : vector<5x5xf32>
    %152 = tpu.matmul %148, %151, %cst_43 {dimension_numbers = #tpu.dot_dimension_numbers<[1], [0], [0], [1], [0, 0, 1, 1], [], []>} : vector<5x12xf32>, vector<12x5xf32>, vector<5x5xf32> -> vector<5x5xf32>
    %cst_44 = arith.constant dense<0xFF800000> : vector<5xf32>
    %153 = vector.multi_reduction <maximumf>, %152, %cst_44 [1] : vector<5x5xf32> to vector<5xf32>
    %154 = vector.shape_cast %153 : vector<5xf32> to vector<5x1xf32>
    %155 = vector.broadcast %154 : vector<5x1xf32> to vector<5x5xf32>
    %156 = arith.subf %152, %155 : vector<5x5xf32>
    %157 = math.exp %156 : vector<5x5xf32>
    %cst_45 = arith.constant dense<0.000000e+00> : vector<5xf32>
    %158 = vector.multi_reduction <add>, %157, %cst_45 [1] : vector<5x5xf32> to vector<5xf32>
    %159 = vector.shape_cast %158 : vector<5xf32> to vector<5x1xf32>
    %160 = tpu.reciprocal %159 {approx = true} : vector<5x1xf32> -> vector<5x1xf32>
    %161 = vector.broadcast %160 : vector<5x1xf32> to vector<5x5xf32>
    %162 = arith.mulf %157, %161 : vector<5x5xf32>
    %cst_46 = arith.constant dense<0.000000e+00> : vector<5x12xf32>
    %163 = tpu.matmul %162, %150, %cst_46 {dimension_numbers = #tpu.dot_dimension_numbers<[1], [0], [0], [1], [0, 0, 1, 1], [], []>} : vector<5x5xf32>, vector<5x12xf32>, vector<5x12xf32> -> vector<5x12xf32>
    %164 = tpu.concatenate %115, %131, %147, %163 in 1 : vector<5x12xf32>, vector<5x12xf32>, vector<5x12xf32>, vector<5x12xf32> -> vector<5x48xf32>
    %165 = tpu.concatenate %99, %164 in 0 : vector<5x48xf32>, vector<5x48xf32> -> vector<10x48xf32>
    %c0_47 = arith.constant 0 : index
    %c0_48 = arith.constant 0 : index
    %166 = vector.load %arg6[%c0_47, %c0_48] : memref<48x48xf32, #tpu.memory_space<vmem>>, vector<48x48xf32>
    %cst_49 = arith.constant dense<0.000000e+00> : vector<10x48xf32>
    %167 = tpu.matmul %165, %166, %cst_49 {dimension_numbers = #tpu.dot_dimension_numbers<[1], [0], [0], [1], [0, 0, 1, 1], [], []>} : vector<10x48xf32>, vector<48x48xf32>, vector<10x48xf32> -> vector<10x48xf32>
    %c0_50 = arith.constant 0 : index
    %c0_51 = arith.constant 0 : index
    %168 = vector.load %arg7[%c0_50, %c0_51] : memref<1x48xf32, #tpu.memory_space<vmem>>, vector<1x48xf32>
    %169 = vector.broadcast %168 : vector<1x48xf32> to vector<10x48xf32>
    %170 = arith.addf %167, %169 : vector<10x48xf32>
    %171 = arith.addf %0, %170 : vector<10x48xf32>
    %c0_52 = arith.constant 0 : index
    %c0_53 = arith.constant 0 : index
    %172 = vector.load %arg8[%c0_52, %c0_53] : memref<1x48xf32, #tpu.memory_space<vmem>>, vector<1x48xf32>
    %c0_54 = arith.constant 0 : index
    %c0_55 = arith.constant 0 : index
    %173 = vector.load %arg9[%c0_54, %c0_55] : memref<1x48xf32, #tpu.memory_space<vmem>>, vector<1x48xf32>
    %cst_56 = arith.constant dense<0.000000e+00> : vector<10xf32>
    %174 = vector.multi_reduction <add>, %171, %cst_56 [1] : vector<10x48xf32> to vector<10xf32>
    %175 = vector.shape_cast %174 : vector<10xf32> to vector<10x1xf32>
    %cst_57 = arith.constant 4.800000e+01 : f32
    %176 = vector.broadcast %cst_57 : f32 to vector<10x1xf32>
    %177 = arith.divf %175, %176 : vector<10x1xf32>
    %178 = vector.broadcast %177 : vector<10x1xf32> to vector<10x48xf32>
    %179 = arith.subf %171, %178 : vector<10x48xf32>
    %180 = arith.mulf %179, %179 : vector<10x48xf32>
    %cst_58 = arith.constant dense<0.000000e+00> : vector<10xf32>
    %181 = vector.multi_reduction <add>, %180, %cst_58 [1] : vector<10x48xf32> to vector<10xf32>
    %182 = vector.shape_cast %181 : vector<10xf32> to vector<10x1xf32>
    %cst_59 = arith.constant 4.800000e+01 : f32
    %183 = vector.broadcast %cst_59 : f32 to vector<10x1xf32>
    %184 = arith.divf %182, %183 : vector<10x1xf32>
    %185 = vector.broadcast %177 : vector<10x1xf32> to vector<10x48xf32>
    %186 = arith.subf %171, %185 : vector<10x48xf32>
    %cst_60 = arith.constant 9.99999997E-7 : f32
    %187 = vector.broadcast %cst_60 : f32 to vector<10x1xf32>
    %188 = arith.addf %184, %187 : vector<10x1xf32>
    %189 = math.rsqrt %188 : vector<10x1xf32>
    %190 = vector.broadcast %189 : vector<10x1xf32> to vector<10x48xf32>
    %191 = arith.mulf %186, %190 : vector<10x48xf32>
    %192 = vector.broadcast %172 : vector<1x48xf32> to vector<10x48xf32>
    %193 = arith.mulf %191, %192 : vector<10x48xf32>
    %194 = vector.broadcast %173 : vector<1x48xf32> to vector<10x48xf32>
    %195 = arith.addf %193, %194 : vector<10x48xf32>
    %c0_61 = arith.constant 0 : index
    %c0_62 = arith.constant 0 : index
    %196 = vector.load %arg10[%c0_61, %c0_62] : memref<48x96xf32, #tpu.memory_space<vmem>>, vector<48x96xf32>
    %cst_63 = arith.constant dense<0.000000e+00> : vector<10x96xf32>
    %197 = tpu.matmul %195, %196, %cst_63 {dimension_numbers = #tpu.dot_dimension_numbers<[1], [0], [0], [1], [0, 0, 1, 1], [], []>} : vector<10x48xf32>, vector<48x96xf32>, vector<10x96xf32> -> vector<10x96xf32>
    %c0_64 = arith.constant 0 : index
    %c0_65 = arith.constant 0 : index
    %198 = vector.load %arg11[%c0_64, %c0_65] : memref<1x96xf32, #tpu.memory_space<vmem>>, vector<1x96xf32>
    %199 = vector.broadcast %198 : vector<1x96xf32> to vector<10x96xf32>
    %200 = arith.addf %197, %199 : vector<10x96xf32>
    %cst_66 = arith.constant 5.000000e-01 : f32
    %201 = vector.broadcast %cst_66 : f32 to vector<10x96xf32>
    %202 = arith.mulf %201, %200 : vector<10x96xf32>
    %cst_67 = arith.constant 0.707106769 : f32
    %203 = vector.broadcast %cst_67 : f32 to vector<10x96xf32>
    %204 = arith.mulf %200, %203 : vector<10x96xf32>
    %205 = math.erf %204 : vector<10x96xf32>
    %cst_68 = arith.constant 1.000000e+00 : f32
    %206 = vector.broadcast %cst_68 : f32 to vector<10x96xf32>
    %207 = arith.addf %206, %205 : vector<10x96xf32>
    %208 = arith.mulf %202, %207 : vector<10x96xf32>
    %c0_69 = arith.constant 0 : index
    %c0_70 = arith.constant 0 : index
    %209 = vector.load %arg12[%c0_69, %c0_70] : memref<96x48xf32, #tpu.memory_space<vmem>>, vector<96x48xf32>
    %cst_71 = arith.constant dense<0.000000e+00> : vector<10x48xf32>
    %210 = tpu.matmul %208, %209, %cst_71 {dimension_numbers = #tpu.dot_dimension_numbers<[1], [0], [0], [1], [0, 0, 1, 1], [], []>} : vector<10x96xf32>, vector<96x48xf32>, vector<10x48xf32> -> vector<10x48xf32>
    %c0_72 = arith.constant 0 : index
    %c0_73 = arith.constant 0 : index
    %211 = vector.load %arg13[%c0_72, %c0_73] : memref<1x48xf32, #tpu.memory_space<vmem>>, vector<1x48xf32>
    %212 = vector.broadcast %211 : vector<1x48xf32> to vector<10x48xf32>
    %213 = arith.addf %210, %212 : vector<10x48xf32>
    %214 = arith.addf %171, %213 : vector<10x48xf32>
    %c0_74 = arith.constant 0 : index
    %c0_75 = arith.constant 0 : index
    %215 = vector.load %arg14[%c0_74, %c0_75] : memref<10x48xf32, #tpu.memory_space<vmem>>, vector<10x48xf32>
    tpu.vector_store %arg14[%c0_74, %c0_75], %214 {strides = array<i32>} : memref<10x48xf32, #tpu.memory_space<vmem>>, vector<10x48xf32>,
    return
  }
  func.func @transform_0(%arg0: i32) -> (i32, i32) {
    %c0_i32 = arith.constant 0 : i32
    %c0_i32_0 = arith.constant 0 : i32
    %c0_i32_1 = arith.constant 0 : i32
    return %c0_i32, %c0_i32_0 : i32, i32
  }
  func.func @transform_1(%arg0: i32) -> (i32, i32) {
    %c0_i32 = arith.constant 0 : i32
    %c0_i32_0 = arith.constant 0 : i32
    %c0_i32_1 = arith.constant 0 : i32
    return %c0_i32, %c0_i32_0 : i32, i32
  }
  func.func @transform_2(%arg0: i32) -> (i32, i32) {
    %c0_i32 = arith.constant 0 : i32
    %c0_i32_0 = arith.constant 0 : i32
    %c0_i32_1 = arith.constant 0 : i32
    return %c0_i32, %c0_i32_0 : i32, i32
  }
  func.func @transform_3(%arg0: i32) -> (i32, i32) {
    %c0_i32 = arith.constant 0 : i32
    %c0_i32_0 = arith.constant 0 : i32
    %c0_i32_1 = arith.constant 0 : i32
    return %c0_i32, %c0_i32_0 : i32, i32
  }
  func.func @transform_4(%arg0: i32) -> (i32, i32) {
    %c0_i32 = arith.constant 0 : i32
    %c0_i32_0 = arith.constant 0 : i32
    %c0_i32_1 = arith.constant 0 : i32
    return %c0_i32, %c0_i32_0 : i32, i32
  }
  func.func @transform_5(%arg0: i32) -> (i32, i32) {
    %c0_i32 = arith.constant 0 : i32
    %c0_i32_0 = arith.constant 0 : i32
    %c0_i32_1 = arith.constant 0 : i32
    return %c0_i32, %c0_i32_0 : i32, i32
  }
  func.func @transform_6(%arg0: i32) -> (i32, i32) {
    %c0_i32 = arith.constant 0 : i32
    %c0_i32_0 = arith.constant 0 : i32
    %c0_i32_1 = arith.constant 0 : i32
    return %c0_i32, %c0_i32_0 : i32, i32
  }
  func.func @transform_7(%arg0: i32) -> (i32, i32) {
    %c0_i32 = arith.constant 0 : i32
    %c0_i32_0 = arith.constant 0 : i32
    %c0_i32_1 = arith.constant 0 : i32
    return %c0_i32, %c0_i32_0 : i32, i32
  }
  func.func @transform_8(%arg0: i32) -> (i32, i32) {
    %c0_i32 = arith.constant 0 : i32
    %c0_i32_0 = arith.constant 0 : i32
    %c0_i32_1 = arith.constant 0 : i32
    return %c0_i32, %c0_i32_0 : i32, i32
  }
  func.func @transform_9(%arg0: i32) -> (i32, i32) {
    %c0_i32 = arith.constant 0 : i32
    %c0_i32_0 = arith.constant 0 : i32
    %c0_i32_1 = arith.constant 0 : i32
    return %c0_i32, %c0_i32_0 : i32, i32
  }
  func.func @transform_10(%arg0: i32) -> (i32, i32) {
    %c0_i32 = arith.constant 0 : i32
    %c0_i32_0 = arith.constant 0 : i32
    %c0_i32_1 = arith.constant 0 : i32
    return %c0_i32, %c0_i32_0 : i32, i32
  }
  func.func @transform_11(%arg0: i32) -> (i32, i32) {
    %c0_i32 = arith.constant 0 : i32
    %c0_i32_0 = arith.constant 0 : i32
    %c0_i32_1 = arith.constant 0 : i32
    return %c0_i32, %c0_i32_0 : i32, i32
  }
  func.func @transform_12(%arg0: i32) -> (i32, i32) {
    %c0_i32 = arith.constant 0 : i32
    %c0_i32_0 = arith.constant 0 : i32
    %c0_i32_1 = arith.constant 0 : i32
    return %c0_i32, %c0_i32_0 : i32, i32
  }
  func.func @transform_13(%arg0: i32) -> (i32, i32) {
    %c0_i32 = arith.constant 0 : i32
    %c0_i32_0 = arith.constant 0 : i32
    %c0_i32_1 = arith.constant 0 : i32
    return %c0_i32, %c0_i32_0 : i32, i32
  }
}

module attributes {stable_mosaic.version = 11 : i64} {
  func.func @_tail_kernel(%arg0: i32, %arg1: memref<10x48xf32, #tpu.memory_space<vmem>>, %arg2: memref<1x48xf32, #tpu.memory_space<vmem>>, %arg3: memref<1x48xf32, #tpu.memory_space<vmem>>, %arg4: memref<48x40xf32, #tpu.memory_space<vmem>>, %arg5: memref<1x40xf32, #tpu.memory_space<vmem>>, %arg6: memref<40x40xf32, #tpu.memory_space<vmem>>, %arg7: memref<1x40xf32, #tpu.memory_space<vmem>>, %arg8: memref<40x80xf32, #tpu.memory_space<vmem>>, %arg9: memref<1x80xf32, #tpu.memory_space<vmem>>, %arg10: memref<40x40xf32, #tpu.memory_space<vmem>>, %arg11: memref<1x40xf32, #tpu.memory_space<vmem>>, %arg12: memref<40x1xf32, #tpu.memory_space<vmem>>, %arg13: memref<1x1xf32, #tpu.memory_space<vmem>>, %arg14: memref<1x1xf32, #tpu.memory_space<vmem>>) attributes {dimension_semantics = [#tpu.dimension_semantics<arbitrary>], iteration_bounds = array<i64: 1>, scalar_prefetch = 0 : i64, scratch_operands = 0 : i64, tpu.core_type = #tpu.core_type<tc>, window_params = [{pipeline_mode = #tpu.pipeline_mode<synchronous>, transform_indices = @transform_0, window_bounds = array<i64: 10, 48>}, {pipeline_mode = #tpu.pipeline_mode<synchronous>, transform_indices = @transform_1, window_bounds = array<i64: 1, 48>}, {pipeline_mode = #tpu.pipeline_mode<synchronous>, transform_indices = @transform_2, window_bounds = array<i64: 1, 48>}, {pipeline_mode = #tpu.pipeline_mode<synchronous>, transform_indices = @transform_3, window_bounds = array<i64: 48, 40>}, {pipeline_mode = #tpu.pipeline_mode<synchronous>, transform_indices = @transform_4, window_bounds = array<i64: 1, 40>}, {pipeline_mode = #tpu.pipeline_mode<synchronous>, transform_indices = @transform_5, window_bounds = array<i64: 40, 40>}, {pipeline_mode = #tpu.pipeline_mode<synchronous>, transform_indices = @transform_6, window_bounds = array<i64: 1, 40>}, {pipeline_mode = #tpu.pipeline_mode<synchronous>, transform_indices = @transform_7, window_bounds = array<i64: 40, 80>}, {pipeline_mode = #tpu.pipeline_mode<synchronous>, transform_indices = @transform_8, window_bounds = array<i64: 1, 80>}, {pipeline_mode = #tpu.pipeline_mode<synchronous>, transform_indices = @transform_9, window_bounds = array<i64: 40, 40>}, {pipeline_mode = #tpu.pipeline_mode<synchronous>, transform_indices = @transform_10, window_bounds = array<i64: 1, 40>}, {pipeline_mode = #tpu.pipeline_mode<synchronous>, transform_indices = @transform_11, window_bounds = array<i64: 40, 1>}, {pipeline_mode = #tpu.pipeline_mode<synchronous>, transform_indices = @transform_12, window_bounds = array<i64: 1, 1>}, {pipeline_mode = #tpu.pipeline_mode<synchronous>, transform_indices = @transform_13, window_bounds = array<i64: 1, 1>}]} {
    %c0 = arith.constant 0 : index
    %c0_0 = arith.constant 0 : index
    %0 = vector.load %arg1[%c0, %c0_0] : memref<10x48xf32, #tpu.memory_space<vmem>>, vector<10x48xf32>
    %c0_1 = arith.constant 0 : index
    %c0_2 = arith.constant 0 : index
    %1 = vector.load %arg2[%c0_1, %c0_2] : memref<1x48xf32, #tpu.memory_space<vmem>>, vector<1x48xf32>
    %c0_3 = arith.constant 0 : index
    %c0_4 = arith.constant 0 : index
    %2 = vector.load %arg3[%c0_3, %c0_4] : memref<1x48xf32, #tpu.memory_space<vmem>>, vector<1x48xf32>
    %cst = arith.constant dense<0.000000e+00> : vector<10xf32>
    %3 = vector.multi_reduction <add>, %0, %cst [1] : vector<10x48xf32> to vector<10xf32>
    %4 = vector.shape_cast %3 : vector<10xf32> to vector<10x1xf32>
    %cst_5 = arith.constant 4.800000e+01 : f32
    %5 = vector.broadcast %cst_5 : f32 to vector<10x1xf32>
    %6 = arith.divf %4, %5 : vector<10x1xf32>
    %7 = vector.broadcast %6 : vector<10x1xf32> to vector<10x48xf32>
    %8 = arith.subf %0, %7 : vector<10x48xf32>
    %9 = arith.mulf %8, %8 : vector<10x48xf32>
    %cst_6 = arith.constant dense<0.000000e+00> : vector<10xf32>
    %10 = vector.multi_reduction <add>, %9, %cst_6 [1] : vector<10x48xf32> to vector<10xf32>
    %11 = vector.shape_cast %10 : vector<10xf32> to vector<10x1xf32>
    %cst_7 = arith.constant 4.800000e+01 : f32
    %12 = vector.broadcast %cst_7 : f32 to vector<10x1xf32>
    %13 = arith.divf %11, %12 : vector<10x1xf32>
    %14 = vector.broadcast %6 : vector<10x1xf32> to vector<10x48xf32>
    %15 = arith.subf %0, %14 : vector<10x48xf32>
    %cst_8 = arith.constant 9.99999997E-7 : f32
    %16 = vector.broadcast %cst_8 : f32 to vector<10x1xf32>
    %17 = arith.addf %13, %16 : vector<10x1xf32>
    %18 = math.rsqrt %17 : vector<10x1xf32>
    %19 = vector.broadcast %18 : vector<10x1xf32> to vector<10x48xf32>
    %20 = arith.mulf %15, %19 : vector<10x48xf32>
    %21 = vector.broadcast %1 : vector<1x48xf32> to vector<10x48xf32>
    %22 = arith.mulf %20, %21 : vector<10x48xf32>
    %23 = vector.broadcast %2 : vector<1x48xf32> to vector<10x48xf32>
    %24 = arith.addf %22, %23 : vector<10x48xf32>
    %25 = vector.extract_strided_slice %24 {offsets = [0, 0], sizes = [1, 48], strides = [1, 1]} : vector<10x48xf32> to vector<1x48xf32>
    %26 = vector.extract_strided_slice %24 {offsets = [5, 0], sizes = [1, 48], strides = [1, 1]} : vector<10x48xf32> to vector<1x48xf32>
    %27 = tpu.concatenate %25, %26 in 0 : vector<1x48xf32>, vector<1x48xf32> -> vector<2x48xf32>
    %c0_9 = arith.constant 0 : index
    %c0_10 = arith.constant 0 : index
    %28 = vector.load %arg4[%c0_9, %c0_10] : memref<48x40xf32, #tpu.memory_space<vmem>>, vector<48x40xf32>
    %cst_11 = arith.constant dense<0.000000e+00> : vector<2x40xf32>
    %29 = tpu.matmul %27, %28, %cst_11 {dimension_numbers = #tpu.dot_dimension_numbers<[1], [0], [0], [1], [0, 0, 1, 1], [], []>} : vector<2x48xf32>, vector<48x40xf32>, vector<2x40xf32> -> vector<2x40xf32>
    %c0_12 = arith.constant 0 : index
    %c0_13 = arith.constant 0 : index
    %30 = vector.load %arg5[%c0_12, %c0_13] : memref<1x40xf32, #tpu.memory_space<vmem>>, vector<1x40xf32>
    %31 = vector.broadcast %30 : vector<1x40xf32> to vector<2x40xf32>
    %32 = arith.addf %29, %31 : vector<2x40xf32>
    %cst_14 = arith.constant dense<0.000000e+00> : vector<40xf32>
    %33 = vector.multi_reduction <add>, %32, %cst_14 [0] : vector<2x40xf32> to vector<40xf32>
    %34 = vector.shape_cast %33 : vector<40xf32> to vector<1x40xf32>
    %cst_15 = arith.constant 2.000000e+00 : f32
    %35 = vector.broadcast %cst_15 : f32 to vector<1x40xf32>
    %36 = arith.divf %34, %35 : vector<1x40xf32>
    %c0_16 = arith.constant 0 : index
    %c0_17 = arith.constant 0 : index
    %37 = vector.load %arg6[%c0_16, %c0_17] : memref<40x40xf32, #tpu.memory_space<vmem>>, vector<40x40xf32>
    %cst_18 = arith.constant dense<0.000000e+00> : vector<1x40xf32>
    %38 = tpu.matmul %36, %37, %cst_18 {dimension_numbers = #tpu.dot_dimension_numbers<[1], [0], [0], [1], [0, 0, 1, 1], [], []>} : vector<1x40xf32>, vector<40x40xf32>, vector<1x40xf32> -> vector<1x40xf32>
    %c0_19 = arith.constant 0 : index
    %c0_20 = arith.constant 0 : index
    %39 = vector.load %arg7[%c0_19, %c0_20] : memref<1x40xf32, #tpu.memory_space<vmem>>, vector<1x40xf32>
    %40 = arith.addf %38, %39 : vector<1x40xf32>
    %cst_21 = arith.constant 5.000000e-01 : f32
    %41 = vector.broadcast %cst_21 : f32 to vector<1x40xf32>
    %42 = arith.mulf %40, %41 : vector<1x40xf32>
    %c0_22 = arith.constant 0 : index
    %c0_23 = arith.constant 0 : index
    %43 = vector.load %arg8[%c0_22, %c0_23] : memref<40x80xf32, #tpu.memory_space<vmem>>, vector<40x80xf32>
    %cst_24 = arith.constant dense<0.000000e+00> : vector<2x80xf32>
    %44 = tpu.matmul %32, %43, %cst_24 {dimension_numbers = #tpu.dot_dimension_numbers<[1], [0], [0], [1], [0, 0, 1, 1], [], []>} : vector<2x40xf32>, vector<40x80xf32>, vector<2x80xf32> -> vector<2x80xf32>
    %c0_25 = arith.constant 0 : index
    %c0_26 = arith.constant 0 : index
    %45 = vector.load %arg9[%c0_25, %c0_26] : memref<1x80xf32, #tpu.memory_space<vmem>>, vector<1x80xf32>
    %46 = vector.broadcast %45 : vector<1x80xf32> to vector<2x80xf32>
    %47 = arith.addf %44, %46 : vector<2x80xf32>
    %48 = vector.extract_strided_slice %47 {offsets = [0, 0], sizes = [2, 40], strides = [1, 1]} : vector<2x80xf32> to vector<2x40xf32>
    %49 = vector.extract_strided_slice %47 {offsets = [0, 40], sizes = [2, 40], strides = [1, 1]} : vector<2x80xf32> to vector<2x40xf32>
    %50 = vector.extract_strided_slice %42 {offsets = [0, 0], sizes = [1, 4], strides = [1, 1]} : vector<1x40xf32> to vector<1x4xf32>
    %51 = vector.extract_strided_slice %48 {offsets = [0, 0], sizes = [2, 4], strides = [1, 1]} : vector<2x40xf32> to vector<2x4xf32>
    %52 = vector.extract_strided_slice %49 {offsets = [0, 0], sizes = [2, 4], strides = [1, 1]} : vector<2x40xf32> to vector<2x4xf32>
    %53 = tpu.transpose %51, [1, 0] : vector<2x4xf32> -> vector<4x2xf32>
    %cst_27 = arith.constant dense<0.000000e+00> : vector<1x2xf32>
    %54 = tpu.matmul %50, %53, %cst_27 {dimension_numbers = #tpu.dot_dimension_numbers<[1], [0], [0], [1], [0, 0, 1, 1], [], []>} : vector<1x4xf32>, vector<4x2xf32>, vector<1x2xf32> -> vector<1x2xf32>
    %cst_28 = arith.constant dense<0xFF800000> : vector<1xf32>
    %55 = vector.multi_reduction <maximumf>, %54, %cst_28 [1] : vector<1x2xf32> to vector<1xf32>
    %56 = vector.shape_cast %55 : vector<1xf32> to vector<1x1xf32>
    %57 = vector.broadcast %56 : vector<1x1xf32> to vector<1x2xf32>
    %58 = arith.subf %54, %57 : vector<1x2xf32>
    %59 = math.exp %58 : vector<1x2xf32>
    %cst_29 = arith.constant dense<0.000000e+00> : vector<1xf32>
    %60 = vector.multi_reduction <add>, %59, %cst_29 [1] : vector<1x2xf32> to vector<1xf32>
    %61 = vector.shape_cast %60 : vector<1xf32> to vector<1x1xf32>
    %62 = tpu.reciprocal %61 {approx = true} : vector<1x1xf32> -> vector<1x1xf32>
    %63 = vector.broadcast %62 : vector<1x1xf32> to vector<1x2xf32>
    %64 = arith.mulf %59, %63 : vector<1x2xf32>
    %cst_30 = arith.constant dense<0.000000e+00> : vector<1x4xf32>
    %65 = tpu.matmul %64, %52, %cst_30 {dimension_numbers = #tpu.dot_dimension_numbers<[1], [0], [0], [1], [0, 0, 1, 1], [], []>} : vector<1x2xf32>, vector<2x4xf32>, vector<1x4xf32> -> vector<1x4xf32>
    %66 = vector.extract_strided_slice %42 {offsets = [0, 4], sizes = [1, 4], strides = [1, 1]} : vector<1x40xf32> to vector<1x4xf32>
    %67 = vector.extract_strided_slice %48 {offsets = [0, 4], sizes = [2, 4], strides = [1, 1]} : vector<2x40xf32> to vector<2x4xf32>
    %68 = vector.extract_strided_slice %49 {offsets = [0, 4], sizes = [2, 4], strides = [1, 1]} : vector<2x40xf32> to vector<2x4xf32>
    %69 = tpu.transpose %67, [1, 0] : vector<2x4xf32> -> vector<4x2xf32>
    %cst_31 = arith.constant dense<0.000000e+00> : vector<1x2xf32>
    %70 = tpu.matmul %66, %69, %cst_31 {dimension_numbers = #tpu.dot_dimension_numbers<[1], [0], [0], [1], [0, 0, 1, 1], [], []>} : vector<1x4xf32>, vector<4x2xf32>, vector<1x2xf32> -> vector<1x2xf32>
    %cst_32 = arith.constant dense<0xFF800000> : vector<1xf32>
    %71 = vector.multi_reduction <maximumf>, %70, %cst_32 [1] : vector<1x2xf32> to vector<1xf32>
    %72 = vector.shape_cast %71 : vector<1xf32> to vector<1x1xf32>
    %73 = vector.broadcast %72 : vector<1x1xf32> to vector<1x2xf32>
    %74 = arith.subf %70, %73 : vector<1x2xf32>
    %75 = math.exp %74 : vector<1x2xf32>
    %cst_33 = arith.constant dense<0.000000e+00> : vector<1xf32>
    %76 = vector.multi_reduction <add>, %75, %cst_33 [1] : vector<1x2xf32> to vector<1xf32>
    %77 = vector.shape_cast %76 : vector<1xf32> to vector<1x1xf32>
    %78 = tpu.reciprocal %77 {approx = true} : vector<1x1xf32> -> vector<1x1xf32>
    %79 = vector.broadcast %78 : vector<1x1xf32> to vector<1x2xf32>
    %80 = arith.mulf %75, %79 : vector<1x2xf32>
    %cst_34 = arith.constant dense<0.000000e+00> : vector<1x4xf32>
    %81 = tpu.matmul %80, %68, %cst_34 {dimension_numbers = #tpu.dot_dimension_numbers<[1], [0], [0], [1], [0, 0, 1, 1], [], []>} : vector<1x2xf32>, vector<2x4xf32>, vector<1x4xf32> -> vector<1x4xf32>
    %82 = vector.extract_strided_slice %42 {offsets = [0, 8], sizes = [1, 4], strides = [1, 1]} : vector<1x40xf32> to vector<1x4xf32>
    %83 = vector.extract_strided_slice %48 {offsets = [0, 8], sizes = [2, 4], strides = [1, 1]} : vector<2x40xf32> to vector<2x4xf32>
    %84 = vector.extract_strided_slice %49 {offsets = [0, 8], sizes = [2, 4], strides = [1, 1]} : vector<2x40xf32> to vector<2x4xf32>
    %85 = tpu.transpose %83, [1, 0] : vector<2x4xf32> -> vector<4x2xf32>
    %cst_35 = arith.constant dense<0.000000e+00> : vector<1x2xf32>
    %86 = tpu.matmul %82, %85, %cst_35 {dimension_numbers = #tpu.dot_dimension_numbers<[1], [0], [0], [1], [0, 0, 1, 1], [], []>} : vector<1x4xf32>, vector<4x2xf32>, vector<1x2xf32> -> vector<1x2xf32>
    %cst_36 = arith.constant dense<0xFF800000> : vector<1xf32>
    %87 = vector.multi_reduction <maximumf>, %86, %cst_36 [1] : vector<1x2xf32> to vector<1xf32>
    %88 = vector.shape_cast %87 : vector<1xf32> to vector<1x1xf32>
    %89 = vector.broadcast %88 : vector<1x1xf32> to vector<1x2xf32>
    %90 = arith.subf %86, %89 : vector<1x2xf32>
    %91 = math.exp %90 : vector<1x2xf32>
    %cst_37 = arith.constant dense<0.000000e+00> : vector<1xf32>
    %92 = vector.multi_reduction <add>, %91, %cst_37 [1] : vector<1x2xf32> to vector<1xf32>
    %93 = vector.shape_cast %92 : vector<1xf32> to vector<1x1xf32>
    %94 = tpu.reciprocal %93 {approx = true} : vector<1x1xf32> -> vector<1x1xf32>
    %95 = vector.broadcast %94 : vector<1x1xf32> to vector<1x2xf32>
    %96 = arith.mulf %91, %95 : vector<1x2xf32>
    %cst_38 = arith.constant dense<0.000000e+00> : vector<1x4xf32>
    %97 = tpu.matmul %96, %84, %cst_38 {dimension_numbers = #tpu.dot_dimension_numbers<[1], [0], [0], [1], [0, 0, 1, 1], [], []>} : vector<1x2xf32>, vector<2x4xf32>, vector<1x4xf32> -> vector<1x4xf32>
    %98 = vector.extract_strided_slice %42 {offsets = [0, 12], sizes = [1, 4], strides = [1, 1]} : vector<1x40xf32> to vector<1x4xf32>
    %99 = vector.extract_strided_slice %48 {offsets = [0, 12], sizes = [2, 4], strides = [1, 1]} : vector<2x40xf32> to vector<2x4xf32>
    %100 = vector.extract_strided_slice %49 {offsets = [0, 12], sizes = [2, 4], strides = [1, 1]} : vector<2x40xf32> to vector<2x4xf32>
    %101 = tpu.transpose %99, [1, 0] : vector<2x4xf32> -> vector<4x2xf32>
    %cst_39 = arith.constant dense<0.000000e+00> : vector<1x2xf32>
    %102 = tpu.matmul %98, %101, %cst_39 {dimension_numbers = #tpu.dot_dimension_numbers<[1], [0], [0], [1], [0, 0, 1, 1], [], []>} : vector<1x4xf32>, vector<4x2xf32>, vector<1x2xf32> -> vector<1x2xf32>
    %cst_40 = arith.constant dense<0xFF800000> : vector<1xf32>
    %103 = vector.multi_reduction <maximumf>, %102, %cst_40 [1] : vector<1x2xf32> to vector<1xf32>
    %104 = vector.shape_cast %103 : vector<1xf32> to vector<1x1xf32>
    %105 = vector.broadcast %104 : vector<1x1xf32> to vector<1x2xf32>
    %106 = arith.subf %102, %105 : vector<1x2xf32>
    %107 = math.exp %106 : vector<1x2xf32>
    %cst_41 = arith.constant dense<0.000000e+00> : vector<1xf32>
    %108 = vector.multi_reduction <add>, %107, %cst_41 [1] : vector<1x2xf32> to vector<1xf32>
    %109 = vector.shape_cast %108 : vector<1xf32> to vector<1x1xf32>
    %110 = tpu.reciprocal %109 {approx = true} : vector<1x1xf32> -> vector<1x1xf32>
    %111 = vector.broadcast %110 : vector<1x1xf32> to vector<1x2xf32>
    %112 = arith.mulf %107, %111 : vector<1x2xf32>
    %cst_42 = arith.constant dense<0.000000e+00> : vector<1x4xf32>
    %113 = tpu.matmul %112, %100, %cst_42 {dimension_numbers = #tpu.dot_dimension_numbers<[1], [0], [0], [1], [0, 0, 1, 1], [], []>} : vector<1x2xf32>, vector<2x4xf32>, vector<1x4xf32> -> vector<1x4xf32>
    %114 = vector.extract_strided_slice %42 {offsets = [0, 16], sizes = [1, 4], strides = [1, 1]} : vector<1x40xf32> to vector<1x4xf32>
    %115 = vector.extract_strided_slice %48 {offsets = [0, 16], sizes = [2, 4], strides = [1, 1]} : vector<2x40xf32> to vector<2x4xf32>
    %116 = vector.extract_strided_slice %49 {offsets = [0, 16], sizes = [2, 4], strides = [1, 1]} : vector<2x40xf32> to vector<2x4xf32>
    %117 = tpu.transpose %115, [1, 0] : vector<2x4xf32> -> vector<4x2xf32>
    %cst_43 = arith.constant dense<0.000000e+00> : vector<1x2xf32>
    %118 = tpu.matmul %114, %117, %cst_43 {dimension_numbers = #tpu.dot_dimension_numbers<[1], [0], [0], [1], [0, 0, 1, 1], [], []>} : vector<1x4xf32>, vector<4x2xf32>, vector<1x2xf32> -> vector<1x2xf32>
    %cst_44 = arith.constant dense<0xFF800000> : vector<1xf32>
    %119 = vector.multi_reduction <maximumf>, %118, %cst_44 [1] : vector<1x2xf32> to vector<1xf32>
    %120 = vector.shape_cast %119 : vector<1xf32> to vector<1x1xf32>
    %121 = vector.broadcast %120 : vector<1x1xf32> to vector<1x2xf32>
    %122 = arith.subf %118, %121 : vector<1x2xf32>
    %123 = math.exp %122 : vector<1x2xf32>
    %cst_45 = arith.constant dense<0.000000e+00> : vector<1xf32>
    %124 = vector.multi_reduction <add>, %123, %cst_45 [1] : vector<1x2xf32> to vector<1xf32>
    %125 = vector.shape_cast %124 : vector<1xf32> to vector<1x1xf32>
    %126 = tpu.reciprocal %125 {approx = true} : vector<1x1xf32> -> vector<1x1xf32>
    %127 = vector.broadcast %126 : vector<1x1xf32> to vector<1x2xf32>
    %128 = arith.mulf %123, %127 : vector<1x2xf32>
    %cst_46 = arith.constant dense<0.000000e+00> : vector<1x4xf32>
    %129 = tpu.matmul %128, %116, %cst_46 {dimension_numbers = #tpu.dot_dimension_numbers<[1], [0], [0], [1], [0, 0, 1, 1], [], []>} : vector<1x2xf32>, vector<2x4xf32>, vector<1x4xf32> -> vector<1x4xf32>
    %130 = vector.extract_strided_slice %42 {offsets = [0, 20], sizes = [1, 4], strides = [1, 1]} : vector<1x40xf32> to vector<1x4xf32>
    %131 = vector.extract_strided_slice %48 {offsets = [0, 20], sizes = [2, 4], strides = [1, 1]} : vector<2x40xf32> to vector<2x4xf32>
    %132 = vector.extract_strided_slice %49 {offsets = [0, 20], sizes = [2, 4], strides = [1, 1]} : vector<2x40xf32> to vector<2x4xf32>
    %133 = tpu.transpose %131, [1, 0] : vector<2x4xf32> -> vector<4x2xf32>
    %cst_47 = arith.constant dense<0.000000e+00> : vector<1x2xf32>
    %134 = tpu.matmul %130, %133, %cst_47 {dimension_numbers = #tpu.dot_dimension_numbers<[1], [0], [0], [1], [0, 0, 1, 1], [], []>} : vector<1x4xf32>, vector<4x2xf32>, vector<1x2xf32> -> vector<1x2xf32>
    %cst_48 = arith.constant dense<0xFF800000> : vector<1xf32>
    %135 = vector.multi_reduction <maximumf>, %134, %cst_48 [1] : vector<1x2xf32> to vector<1xf32>
    %136 = vector.shape_cast %135 : vector<1xf32> to vector<1x1xf32>
    %137 = vector.broadcast %136 : vector<1x1xf32> to vector<1x2xf32>
    %138 = arith.subf %134, %137 : vector<1x2xf32>
    %139 = math.exp %138 : vector<1x2xf32>
    %cst_49 = arith.constant dense<0.000000e+00> : vector<1xf32>
    %140 = vector.multi_reduction <add>, %139, %cst_49 [1] : vector<1x2xf32> to vector<1xf32>
    %141 = vector.shape_cast %140 : vector<1xf32> to vector<1x1xf32>
    %142 = tpu.reciprocal %141 {approx = true} : vector<1x1xf32> -> vector<1x1xf32>
    %143 = vector.broadcast %142 : vector<1x1xf32> to vector<1x2xf32>
    %144 = arith.mulf %139, %143 : vector<1x2xf32>
    %cst_50 = arith.constant dense<0.000000e+00> : vector<1x4xf32>
    %145 = tpu.matmul %144, %132, %cst_50 {dimension_numbers = #tpu.dot_dimension_numbers<[1], [0], [0], [1], [0, 0, 1, 1], [], []>} : vector<1x2xf32>, vector<2x4xf32>, vector<1x4xf32> -> vector<1x4xf32>
    %146 = vector.extract_strided_slice %42 {offsets = [0, 24], sizes = [1, 4], strides = [1, 1]} : vector<1x40xf32> to vector<1x4xf32>
    %147 = vector.extract_strided_slice %48 {offsets = [0, 24], sizes = [2, 4], strides = [1, 1]} : vector<2x40xf32> to vector<2x4xf32>
    %148 = vector.extract_strided_slice %49 {offsets = [0, 24], sizes = [2, 4], strides = [1, 1]} : vector<2x40xf32> to vector<2x4xf32>
    %149 = tpu.transpose %147, [1, 0] : vector<2x4xf32> -> vector<4x2xf32>
    %cst_51 = arith.constant dense<0.000000e+00> : vector<1x2xf32>
    %150 = tpu.matmul %146, %149, %cst_51 {dimension_numbers = #tpu.dot_dimension_numbers<[1], [0], [0], [1], [0, 0, 1, 1], [], []>} : vector<1x4xf32>, vector<4x2xf32>, vector<1x2xf32> -> vector<1x2xf32>
    %cst_52 = arith.constant dense<0xFF800000> : vector<1xf32>
    %151 = vector.multi_reduction <maximumf>, %150, %cst_52 [1] : vector<1x2xf32> to vector<1xf32>
    %152 = vector.shape_cast %151 : vector<1xf32> to vector<1x1xf32>
    %153 = vector.broadcast %152 : vector<1x1xf32> to vector<1x2xf32>
    %154 = arith.subf %150, %153 : vector<1x2xf32>
    %155 = math.exp %154 : vector<1x2xf32>
    %cst_53 = arith.constant dense<0.000000e+00> : vector<1xf32>
    %156 = vector.multi_reduction <add>, %155, %cst_53 [1] : vector<1x2xf32> to vector<1xf32>
    %157 = vector.shape_cast %156 : vector<1xf32> to vector<1x1xf32>
    %158 = tpu.reciprocal %157 {approx = true} : vector<1x1xf32> -> vector<1x1xf32>
    %159 = vector.broadcast %158 : vector<1x1xf32> to vector<1x2xf32>
    %160 = arith.mulf %155, %159 : vector<1x2xf32>
    %cst_54 = arith.constant dense<0.000000e+00> : vector<1x4xf32>
    %161 = tpu.matmul %160, %148, %cst_54 {dimension_numbers = #tpu.dot_dimension_numbers<[1], [0], [0], [1], [0, 0, 1, 1], [], []>} : vector<1x2xf32>, vector<2x4xf32>, vector<1x4xf32> -> vector<1x4xf32>
    %162 = vector.extract_strided_slice %42 {offsets = [0, 28], sizes = [1, 4], strides = [1, 1]} : vector<1x40xf32> to vector<1x4xf32>
    %163 = vector.extract_strided_slice %48 {offsets = [0, 28], sizes = [2, 4], strides = [1, 1]} : vector<2x40xf32> to vector<2x4xf32>
    %164 = vector.extract_strided_slice %49 {offsets = [0, 28], sizes = [2, 4], strides = [1, 1]} : vector<2x40xf32> to vector<2x4xf32>
    %165 = tpu.transpose %163, [1, 0] : vector<2x4xf32> -> vector<4x2xf32>
    %cst_55 = arith.constant dense<0.000000e+00> : vector<1x2xf32>
    %166 = tpu.matmul %162, %165, %cst_55 {dimension_numbers = #tpu.dot_dimension_numbers<[1], [0], [0], [1], [0, 0, 1, 1], [], []>} : vector<1x4xf32>, vector<4x2xf32>, vector<1x2xf32> -> vector<1x2xf32>
    %cst_56 = arith.constant dense<0xFF800000> : vector<1xf32>
    %167 = vector.multi_reduction <maximumf>, %166, %cst_56 [1] : vector<1x2xf32> to vector<1xf32>
    %168 = vector.shape_cast %167 : vector<1xf32> to vector<1x1xf32>
    %169 = vector.broadcast %168 : vector<1x1xf32> to vector<1x2xf32>
    %170 = arith.subf %166, %169 : vector<1x2xf32>
    %171 = math.exp %170 : vector<1x2xf32>
    %cst_57 = arith.constant dense<0.000000e+00> : vector<1xf32>
    %172 = vector.multi_reduction <add>, %171, %cst_57 [1] : vector<1x2xf32> to vector<1xf32>
    %173 = vector.shape_cast %172 : vector<1xf32> to vector<1x1xf32>
    %174 = tpu.reciprocal %173 {approx = true} : vector<1x1xf32> -> vector<1x1xf32>
    %175 = vector.broadcast %174 : vector<1x1xf32> to vector<1x2xf32>
    %176 = arith.mulf %171, %175 : vector<1x2xf32>
    %cst_58 = arith.constant dense<0.000000e+00> : vector<1x4xf32>
    %177 = tpu.matmul %176, %164, %cst_58 {dimension_numbers = #tpu.dot_dimension_numbers<[1], [0], [0], [1], [0, 0, 1, 1], [], []>} : vector<1x2xf32>, vector<2x4xf32>, vector<1x4xf32> -> vector<1x4xf32>
    %178 = vector.extract_strided_slice %42 {offsets = [0, 32], sizes = [1, 4], strides = [1, 1]} : vector<1x40xf32> to vector<1x4xf32>
    %179 = vector.extract_strided_slice %48 {offsets = [0, 32], sizes = [2, 4], strides = [1, 1]} : vector<2x40xf32> to vector<2x4xf32>
    %180 = vector.extract_strided_slice %49 {offsets = [0, 32], sizes = [2, 4], strides = [1, 1]} : vector<2x40xf32> to vector<2x4xf32>
    %181 = tpu.transpose %179, [1, 0] : vector<2x4xf32> -> vector<4x2xf32>
    %cst_59 = arith.constant dense<0.000000e+00> : vector<1x2xf32>
    %182 = tpu.matmul %178, %181, %cst_59 {dimension_numbers = #tpu.dot_dimension_numbers<[1], [0], [0], [1], [0, 0, 1, 1], [], []>} : vector<1x4xf32>, vector<4x2xf32>, vector<1x2xf32> -> vector<1x2xf32>
    %cst_60 = arith.constant dense<0xFF800000> : vector<1xf32>
    %183 = vector.multi_reduction <maximumf>, %182, %cst_60 [1] : vector<1x2xf32> to vector<1xf32>
    %184 = vector.shape_cast %183 : vector<1xf32> to vector<1x1xf32>
    %185 = vector.broadcast %184 : vector<1x1xf32> to vector<1x2xf32>
    %186 = arith.subf %182, %185 : vector<1x2xf32>
    %187 = math.exp %186 : vector<1x2xf32>
    %cst_61 = arith.constant dense<0.000000e+00> : vector<1xf32>
    %188 = vector.multi_reduction <add>, %187, %cst_61 [1] : vector<1x2xf32> to vector<1xf32>
    %189 = vector.shape_cast %188 : vector<1xf32> to vector<1x1xf32>
    %190 = tpu.reciprocal %189 {approx = true} : vector<1x1xf32> -> vector<1x1xf32>
    %191 = vector.broadcast %190 : vector<1x1xf32> to vector<1x2xf32>
    %192 = arith.mulf %187, %191 : vector<1x2xf32>
    %cst_62 = arith.constant dense<0.000000e+00> : vector<1x4xf32>
    %193 = tpu.matmul %192, %180, %cst_62 {dimension_numbers = #tpu.dot_dimension_numbers<[1], [0], [0], [1], [0, 0, 1, 1], [], []>} : vector<1x2xf32>, vector<2x4xf32>, vector<1x4xf32> -> vector<1x4xf32>
    %194 = vector.extract_strided_slice %42 {offsets = [0, 36], sizes = [1, 4], strides = [1, 1]} : vector<1x40xf32> to vector<1x4xf32>
    %195 = vector.extract_strided_slice %48 {offsets = [0, 36], sizes = [2, 4], strides = [1, 1]} : vector<2x40xf32> to vector<2x4xf32>
    %196 = vector.extract_strided_slice %49 {offsets = [0, 36], sizes = [2, 4], strides = [1, 1]} : vector<2x40xf32> to vector<2x4xf32>
    %197 = tpu.transpose %195, [1, 0] : vector<2x4xf32> -> vector<4x2xf32>
    %cst_63 = arith.constant dense<0.000000e+00> : vector<1x2xf32>
    %198 = tpu.matmul %194, %197, %cst_63 {dimension_numbers = #tpu.dot_dimension_numbers<[1], [0], [0], [1], [0, 0, 1, 1], [], []>} : vector<1x4xf32>, vector<4x2xf32>, vector<1x2xf32> -> vector<1x2xf32>
    %cst_64 = arith.constant dense<0xFF800000> : vector<1xf32>
    %199 = vector.multi_reduction <maximumf>, %198, %cst_64 [1] : vector<1x2xf32> to vector<1xf32>
    %200 = vector.shape_cast %199 : vector<1xf32> to vector<1x1xf32>
    %201 = vector.broadcast %200 : vector<1x1xf32> to vector<1x2xf32>
    %202 = arith.subf %198, %201 : vector<1x2xf32>
    %203 = math.exp %202 : vector<1x2xf32>
    %cst_65 = arith.constant dense<0.000000e+00> : vector<1xf32>
    %204 = vector.multi_reduction <add>, %203, %cst_65 [1] : vector<1x2xf32> to vector<1xf32>
    %205 = vector.shape_cast %204 : vector<1xf32> to vector<1x1xf32>
    %206 = tpu.reciprocal %205 {approx = true} : vector<1x1xf32> -> vector<1x1xf32>
    %207 = vector.broadcast %206 : vector<1x1xf32> to vector<1x2xf32>
    %208 = arith.mulf %203, %207 : vector<1x2xf32>
    %cst_66 = arith.constant dense<0.000000e+00> : vector<1x4xf32>
    %209 = tpu.matmul %208, %196, %cst_66 {dimension_numbers = #tpu.dot_dimension_numbers<[1], [0], [0], [1], [0, 0, 1, 1], [], []>} : vector<1x2xf32>, vector<2x4xf32>, vector<1x4xf32> -> vector<1x4xf32>
    %210 = tpu.concatenate %65, %81, %97, %113, %129, %145, %161, %177, %193, %209 in 1 : vector<1x4xf32>, vector<1x4xf32>, vector<1x4xf32>, vector<1x4xf32>, vector<1x4xf32>, vector<1x4xf32>, vector<1x4xf32>, vector<1x4xf32>, vector<1x4xf32>, vector<1x4xf32> -> vector<1x40xf32>
    %c0_67 = arith.constant 0 : index
    %c0_68 = arith.constant 0 : index
    %211 = vector.load %arg10[%c0_67, %c0_68] : memref<40x40xf32, #tpu.memory_space<vmem>>, vector<40x40xf32>
    %cst_69 = arith.constant dense<0.000000e+00> : vector<1x40xf32>
    %212 = tpu.matmul %210, %211, %cst_69 {dimension_numbers = #tpu.dot_dimension_numbers<[1], [0], [0], [1], [0, 0, 1, 1], [], []>} : vector<1x40xf32>, vector<40x40xf32>, vector<1x40xf32> -> vector<1x40xf32>
    %c0_70 = arith.constant 0 : index
    %c0_71 = arith.constant 0 : index
    %213 = vector.load %arg11[%c0_70, %c0_71] : memref<1x40xf32, #tpu.memory_space<vmem>>, vector<1x40xf32>
    %214 = arith.addf %212, %213 : vector<1x40xf32>
    %c0_72 = arith.constant 0 : index
    %c0_73 = arith.constant 0 : index
    %215 = vector.load %arg12[%c0_72, %c0_73] : memref<40x1xf32, #tpu.memory_space<vmem>>, vector<40x1xf32>
    %cst_74 = arith.constant dense<0.000000e+00> : vector<1x1xf32>
    %216 = tpu.matmul %214, %215, %cst_74 {dimension_numbers = #tpu.dot_dimension_numbers<[1], [0], [0], [1], [0, 0, 1, 1], [], []>} : vector<1x40xf32>, vector<40x1xf32>, vector<1x1xf32> -> vector<1x1xf32>
    %c0_75 = arith.constant 0 : index
    %c0_76 = arith.constant 0 : index
    %217 = vector.load %arg13[%c0_75, %c0_76] : memref<1x1xf32, #tpu.memory_space<vmem>>, vector<1x1xf32>
    %218 = arith.addf %216, %217 : vector<1x1xf32>
    %c0_77 = arith.constant 0 : index
    %c0_78 = arith.constant 0 : index
    %219 = vector.load %arg14[%c0_77, %c0_78] : memref<1x1xf32, #tpu.memory_space<vmem>>, vector<1x1xf32>
    tpu.vector_store %arg14[%c0_77, %c0_78], %218 {strides = array<i32>} : memref<1x1xf32, #tpu.memory_space<vmem>>, vector<1x1xf32>,
    return
  }
  func.func @transform_0(%arg0: i32) -> (i32, i32) {
    %c0_i32 = arith.constant 0 : i32
    %c0_i32_0 = arith.constant 0 : i32
    %c0_i32_1 = arith.constant 0 : i32
    return %c0_i32, %c0_i32_0 : i32, i32
  }
  func.func @transform_1(%arg0: i32) -> (i32, i32) {
    %c0_i32 = arith.constant 0 : i32
    %c0_i32_0 = arith.constant 0 : i32
    %c0_i32_1 = arith.constant 0 : i32
    return %c0_i32, %c0_i32_0 : i32, i32
  }
  func.func @transform_2(%arg0: i32) -> (i32, i32) {
    %c0_i32 = arith.constant 0 : i32
    %c0_i32_0 = arith.constant 0 : i32
    %c0_i32_1 = arith.constant 0 : i32
    return %c0_i32, %c0_i32_0 : i32, i32
  }
  func.func @transform_3(%arg0: i32) -> (i32, i32) {
    %c0_i32 = arith.constant 0 : i32
    %c0_i32_0 = arith.constant 0 : i32
    %c0_i32_1 = arith.constant 0 : i32
    return %c0_i32, %c0_i32_0 : i32, i32
  }
  func.func @transform_4(%arg0: i32) -> (i32, i32) {
    %c0_i32 = arith.constant 0 : i32
    %c0_i32_0 = arith.constant 0 : i32
    %c0_i32_1 = arith.constant 0 : i32
    return %c0_i32, %c0_i32_0 : i32, i32
  }
  func.func @transform_5(%arg0: i32) -> (i32, i32) {
    %c0_i32 = arith.constant 0 : i32
    %c0_i32_0 = arith.constant 0 : i32
    %c0_i32_1 = arith.constant 0 : i32
    return %c0_i32, %c0_i32_0 : i32, i32
  }
  func.func @transform_6(%arg0: i32) -> (i32, i32) {
    %c0_i32 = arith.constant 0 : i32
    %c0_i32_0 = arith.constant 0 : i32
    %c0_i32_1 = arith.constant 0 : i32
    return %c0_i32, %c0_i32_0 : i32, i32
  }
  func.func @transform_7(%arg0: i32) -> (i32, i32) {
    %c0_i32 = arith.constant 0 : i32
    %c0_i32_0 = arith.constant 0 : i32
    %c0_i32_1 = arith.constant 0 : i32
    return %c0_i32, %c0_i32_0 : i32, i32
  }
  func.func @transform_8(%arg0: i32) -> (i32, i32) {
    %c0_i32 = arith.constant 0 : i32
    %c0_i32_0 = arith.constant 0 : i32
    %c0_i32_1 = arith.constant 0 : i32
    return %c0_i32, %c0_i32_0 : i32, i32
  }
  func.func @transform_9(%arg0: i32) -> (i32, i32) {
    %c0_i32 = arith.constant 0 : i32
    %c0_i32_0 = arith.constant 0 : i32
    %c0_i32_1 = arith.constant 0 : i32
    return %c0_i32, %c0_i32_0 : i32, i32
  }
  func.func @transform_10(%arg0: i32) -> (i32, i32) {
    %c0_i32 = arith.constant 0 : i32
    %c0_i32_0 = arith.constant 0 : i32
    %c0_i32_1 = arith.constant 0 : i32
    return %c0_i32, %c0_i32_0 : i32, i32
  }
  func.func @transform_11(%arg0: i32) -> (i32, i32) {
    %c0_i32 = arith.constant 0 : i32
    %c0_i32_0 = arith.constant 0 : i32
    %c0_i32_1 = arith.constant 0 : i32
    return %c0_i32, %c0_i32_0 : i32, i32
  }
  func.func @transform_12(%arg0: i32) -> (i32, i32) {
    %c0_i32 = arith.constant 0 : i32
    %c0_i32_0 = arith.constant 0 : i32
    %c0_i32_1 = arith.constant 0 : i32
    return %c0_i32, %c0_i32_0 : i32, i32
  }
  func.func @transform_13(%arg0: i32) -> (i32, i32) {
    %c0_i32 = arith.constant 0 : i32
    %c0_i32_0 = arith.constant 0 : i32
    %c0_i32_1 = arith.constant 0 : i32
    return %c0_i32, %c0_i32_0 : i32, i32
  }
}

</mosaic_0001>

<bundles_post_ra>
// kernel: vit_mha_forward.4
= control target key start
LH: loop header
LB: loop body
LE: loop exit
PB: predicated region body
PF: predicated region fallthrough
CT: control target
= control target key end

     0   :  { %12 = vsyncpa [#allocation3], 0  ;;  %s358_s0 = inlined_call_operand.vmem [shape: f32[1,3], index: 0, kind: input, shape index: {}]   ;;  %s359_s1 = inlined_call_operand.vmem [shape: f32[1,3], index: 1, kind: input, shape index: {}]   ;;  %s360_s2 = inlined_call_operand.vmem [shape: f32[8,64], index: 2, kind: input, shape index: {}]   ;;  %s361_s3 = inlined_call_operand.vmem [shape: f32[192,48], index: 3, kind: input, shape index: {}]   ;;  %s362_s4 = inlined_call_operand.vmem [shape: f32[1,48], index: 4, kind: input, shape index: {}]   ;;  %s363_s5 = inlined_call_operand.vmem [shape: f32[1,48], index: 5, kind: input, shape index: {}]   ;;  %s364_s6 = inlined_call_operand.vmem [shape: f32[5,48], index: 6, kind: input, shape index: {}]   ;;  %s365_s7 = inlined_call_operand.vmem [shape: f32[10,48], index: 7, kind: output, shape index: {}]  }
   0x1   :  { %s19_s26 = sshll.u32 %s358_s0, 4  ;;  %s20_s26 = int_to_ptr.vmem [resolvable:$true] %s19_s26 }
   0x2   :  { %13 = vsyncpa [#allocation5], 0  ;;  %s28_s29 = sshll.u32 %s359_s1, 4  ;;  %s219_s30 = smov [#allocation2]   ;;  %s29_s29 = int_to_ptr.vmem [resolvable:$true] %s28_s29 }
   0x3   :  { %22 = dma.vmem_to_smem %s20_s26, 16, %s219_s30, [#allocation3]  }
   0x4   :  { %s220_s8 = smov [#allocation4]  }
   0x5   :  { %31 = dma.vmem_to_smem %s29_s29, 16, %s220_s8, [#allocation5]  }
   0x6   :  { %215 = dma.done.wait [#allocation3], 16  }
   0x7   :  { %216 = vsyncadd [#allocation3], 4294967280 }
   0x8   :  { %217 = dma.done.wait [#allocation5], 16  }
   0x9   :  { %218 = vsyncadd [#allocation5], 4294967280 }
   0xa   :  { %50 = sfence }
   0xb   :  { %s182_s9 = sld [smem:[#allocation2 + $0x1]]  ;;  %v91_v0 = vld [vmem:[%s361_s3 + $0x78] sm:$0xff]  ;;  %v90_v1 = vld [vmem:[%s361_s3 + $0x70] sm:$0xff]  ;;  %v89_v2 = vld [vmem:[%s361_s3 + $0x68] sm:$0xff]  ;;  %s221_s11 = smov 64   ;;  %vm74_vm0 = vcmask 523264  }
   0xc   :  { %s183_s1 = sld [smem:[#allocation4 + $0x1]]  ;;  %107 = vmatpush.msra.mxu0 %v91_v0  ;;  %v99_v3 = vld [vmem:[%s361_s3 + $0xb8] sm:$0xff]  ;;  %v51_v4 = vld [vmem:[%s360_s2] sm:$0xff]  ;;  %v98_v6 = vld [vmem:[%s361_s3 + $0xb0] sm:$0xff]  ;;  %vm166_vm1 = vcmask 1040384   ;;  %vm174_vm2 = vcmask 386048  }
   0xd   :  { %v88_v5 = vld [vmem:[%s361_s3 + $0x60] sm:$0xff]  ;;  %135 = vmatpush.msra.mxu1 %v99_v3  ;;  %v97_v7 = vld [vmem:[%s361_s3 + $0xa8] sm:$0xff]  ;;  %v87_v9 = vld [vmem:[%s361_s3 + $0x58] sm:$0xff]  ;;  %s184_s27 = sld [smem:[#allocation2 + $0x2]]  ;;  %vm168_vm3 = vcmask 1044480   ;;  %vm170_vm4 = vcmask 1045504  }
   0xe   :  { %108 = vmatpush.msra.mxu0 %v90_v1  ;;  %v96_v12 = vld [vmem:[%s361_s3 + $0xa0] sm:$0xff]  ;;  %v86_v13 = vld [vmem:[%s361_s3 + $0x50] sm:$0xff]  ;;  %v95_v15 = vld [vmem:[%s361_s3 + $0x98] sm:$0xff]  ;;  %s185_s28 = sld [smem:[#allocation4 + $0x2]]  ;;  %vm172_vm5 = vcmask 392192  }
   0xf   :  { %136 = vmatpush.msra.mxu1 %v98_v6  ;;  %v85_v16 = vld [vmem:[%s361_s3 + $0x48] sm:$0xff]  ;;  %v94_v17 = vld [vmem:[%s361_s3 + $0x90] sm:$0xff]  ;;  %v84_v18 = vld [vmem:[%s361_s3 + $0x40] sm:$0xff]  ;;  %s52_s0 = sld [smem:[#allocation2]] }
  0x10   :  { %109 = vmatpush.msra.mxu0 %v89_v2  ;;  %v83_v19 = vld [vmem:[%s361_s3 + $0x38] sm:$0xff]  ;;  %v82_v20 = vld [vmem:[%s361_s3 + $0x30] sm:$0xff]  ;;  %v81_v21 = vld [vmem:[%s361_s3 + $0x28] sm:$0xff]  ;;  %s55_s12 = sld [smem:[#allocation4]] }
  0x11   :  { %v59_v8 = vstv %s182_s9  ;;  %137 = vmatpush.msra.mxu1 %v97_v7  ;;  %v80_v22 = vld [vmem:[%s361_s3 + $0x20] sm:$0xff]  ;;  %v79_v23 = vld [vmem:[%s361_s3 + $0x18] sm:$0xff]  ;;  %v78_v24 = vld [vmem:[%s361_s3 + $0x10] sm:$0xff] }
  0x12   :  { %v60_v10 = vmul.f32 %v59_v8, %v51_v4  ;;  %v62_v11 = vstv %s183_s1  ;;  %110 = vmatpush.msra.mxu0 %v88_v5  ;;  %v77_v25 = vld [vmem:[%s361_s3 + $0x8] sm:$0xff]  ;;  %v76_v27 = vld [vmem:[%s361_s3] sm:$0xff] }
  0x13   :  { %138 = vmatpush.msra.mxu1 %v96_v12  ;;  %v65_v26 = vstv %s184_s27  ;;  %v93_v28 = vld [vmem:[%s361_s3 + $0x88] sm:$0xff]  ;;  %v92_v31 = vld [vmem:[%s361_s3 + $0x80] sm:$0xff] }
  0x14   :  { %v63_v14 = vadd.f32 %v62_v11, %v60_v10  ;;  %111 = vmatpush.msra.mxu0 %v87_v9  ;;  %v66_v29 = vmul.f32 %v65_v26, %v51_v4  ;;  %v68_v30 = vstv %s185_s28  ;;  %v190_v39 = vld [vmem:[%s362_s4] ss:$0 sm:$0xff] }
  0x15   :  { %139 = vmatpush.msra.mxu1 %v95_v15  ;;  %v53_v33 = vstv %s52_s0  ;;  %v147_v40 = vld [vmem:[%s364_s6] sm:$0x1f] }
  0x16   :  { %71 = vrot.lane.b32.xlu0 %v63_v14, %s221_s11  ;;  %112 = vmatpush.msra.mxu0 %v86_v13  ;;  %v69_v32 = vadd.f32 %v68_v30, %v66_v29  ;;  %v54_v34 = vmul.f32 %v53_v33, %v51_v4  ;;  %v56_v35 = vstv %s55_s12  ;;  %v148_v41 = vld [vmem:[%s363_s5] sm:$0x1]  ;;  %v151_v45 = vrot.slane %v147_v40, 1 }
  0x17   :  { %140 = vmatpush.msra.mxu1 %v94_v17  ;;  %v154_v46 = vrot.slane %v147_v40, 5  ;;  %v149_v47 = vadd.f32 %v148_v41, %v147_v40 }
  0x18   :  { %113 = vmatpush.msra.mxu0 %v85_v16  ;;  %v57_v36 = vadd.f32 %v56_v35, %v54_v34 }
  0x19   :  { %141 = vmatpush.msra.mxu1 %v93_v28  ;;  %v161_v51 = vperm.slane %v149_v47, 0 }
  0x1a   :  { %114 = vmatpush.msra.mxu0 %v84_v18 }
  0x1b   :  { %142 = vmatpush.msra.mxu1 %v92_v31 }
  0x1c   :  { %115 = vmatpush.msra.mxu0 %v83_v19  ;;  %186 = vmatmul.msk.f32.vlgmr.msra.gmra.mxu1 %vm74_vm0, %v69_v32 }
  0x1e   :  { %116 = vmatpush.msra.mxu0 %v82_v20 }
  0x20   :  { %117 = vmatpush.msra.mxu0 %v81_v21 }
  0x22   :  { %118 = vmatpush.msra.mxu0 %v80_v22 }
  0x24   :  { %119 = vmatpush.msra.mxu0 %v79_v23 }
  0x26   :  { %120 = vmatpush.msra.mxu0 %v78_v24 }
  0x28   :  { %121 = vmatpush.msra.mxu0 %v77_v25 }
  0x2a   :  { %122 = vmatpush.msra.mxu0 %v76_v27 }
  0x88   :  { %v72_v37 = vpop.permute.xlu0 %71 }
  0x89   :  { %v75_v38 = vsel %vm74_vm0, %v57_v36, %v72_v37 }
  0x8a   :  { %123 = vmatmul.f32.vlgmr.msra.gmra.mxu0 %v75_v38 }
  0x99   :  { %v144_v43 = vpop.f32.mrf.mxu1 }
 0x107   :  { %v124_v42 = vpop.f32.mrf.mxu0 }
 0x108   :  { %v125_v44 = vadd.f32 %v190_v39, %v124_v42 }
 0x10a   :  { %v145_v48 = vadd.f32 %v144_v43, %v125_v44 }
 0x10c   :  { %v153_v49 = vadd.f32 %v151_v45, %v145_v48  ;;  %v156_v50 = vadd.f32 %v154_v46, %v145_v48 }
 0x10e   :  { %v158_v52 = vrot.slane %v153_v49, 7  ;;  %v164_v53 = vrot.slane %v156_v50, 6 }
 0x110   :  { %v167_v54 = vsel %vm166_vm1, %v149_v47, %v158_v52  ;;  %175 = vst.msk [vmem:[%s365_s7 + $0x8] sm:$0x3] %vm174_vm2, %v164_v53 }
 0x111   :  { %v169_v55 = vsel %vm168_vm3, %v167_v54, %v161_v51 }
 0x112   :  { %v171_v56 = vsel %vm170_vm4, %v169_v55, %v164_v53 }
 0x113   :  { %173 = vst.msk [vmem:[%s365_s7] sm:$0xff] %vm172_vm5, %v171_v56 }
 0x114   :  { %180 = vsyncpa [#allocation3], 1 }
 0x115   :  { %181 = vsyncpa [#allocation5], 1 }

// kernel: vit_mha_forward.5
= control target key start
LH: loop header
LB: loop body
LE: loop exit
PB: predicated region body
PF: predicated region fallthrough
CT: control target
= control target key end

     0   :  { %vm48_vm0 = vcmask 392192   ;;  %v1159_v2 = vmov 48.0   ;;  %s1163_s22 = smov 92   ;;  %vm52_vm5 = vcmask 386048   ;;  %s1164_s25 = smov 44   ;;  %vm186_vm6 = vcmask 97280   ;;  %s1592_s0 = inlined_call_operand.vmem [shape: f32[10,48], index: 0, kind: input, shape index: {}]   ;;  %s1593_s1 = inlined_call_operand.vmem [shape: f32[1,48], index: 1, kind: input, shape index: {}]   ;;  %s1594_s2 = inlined_call_operand.vmem [shape: f32[1,48], index: 2, kind: input, shape index: {}]   ;;  %s1595_s3 = inlined_call_operand.vmem [shape: f32[48,144], index: 3, kind: input, shape index: {}]   ;;  %s1596_s4 = inlined_call_operand.vmem [shape: f32[1,144], index: 4, kind: input, shape index: {}]   ;;  %s1597_s6 = inlined_call_operand.vmem [shape: f32[1,48], index: 6, kind: input, shape index: {}]   ;;  %s1598_s5 = inlined_call_operand.vmem [shape: f32[48,48], index: 5, kind: input, shape index: {}]   ;;  %s1599_s7 = inlined_call_operand.vmem [shape: f32[1,48], index: 7, kind: input, shape index: {}]   ;;  %s1600_s8 = inlined_call_operand.vmem [shape: f32[1,48], index: 8, kind: input, shape index: {}]   ;;  %s1601_s10 = inlined_call_operand.vmem [shape: f32[1,96], index: 10, kind: input, shape index: {}]   ;;  %s1602_s9 = inlined_call_operand.vmem [shape: f32[48,96], index: 9, kind: input, shape index: {}]   ;;  %s1603_s12 = inlined_call_operand.vmem [shape: f32[1,48], index: 12, kind: input, shape index: {}]   ;;  %s1604_s11 = inlined_call_operand.vmem [shape: f32[96,48], index: 11, kind: input, shape index: {}]   ;;  %s1605_s13 = inlined_call_operand.vmem [shape: f32[10,48], index: 13, kind: output, shape index: {}]  }
   0x1   :  { %v1247_v0 = vld [vmem:[%s1592_s0] sm:$0xff]  ;;  %1113 = vrcp.f32 %v1159_v2  ;;  %v121_v14 = vld [vmem:[%s1595_s3 + $0x50] sm:$0xff]  ;;  %v122_v15 = vld [vmem:[%s1595_s3 + $0x58] sm:$0xff]  ;;  %vm212_vm7 = vcmask 36864   ;;  %s1166_s26 = smov 56   ;;  %s1167_s27 = smov 104  }
   0x2   :  { %v49_v1 = vsel %vm48_vm0, %v1247_v0, 0.0  ;;  %145 = vmatpush.msra.mxu0 %v121_v14  ;;  %168 = vmatpush.msra.mxu1 %v122_v15  ;;  %v119_v16 = vld [vmem:[%s1595_s3 + $0x40] sm:$0xff]  ;;  %v120_v17 = vld [vmem:[%s1595_s3 + $0x48] sm:$0xff]  ;;  %v117_v18 = vld [vmem:[%s1595_s3 + $0x30] sm:$0xff]  ;;  %vm230_vm11 = vcmask 1044480   ;;  %vm474_vm12 = vcmask 1042432  }
   0x3   :  { %50 = vadd.xlane.f32.xlu0 %v49_v1  ;;  %v118_v19 = vld [vmem:[%s1595_s3 + $0x38] sm:$0xff]  ;;  %v115_v20 = vld [vmem:[%s1595_s3 + $0x20] sm:$0xff]  ;;  %v116_v21 = vld [vmem:[%s1595_s3 + $0x28] sm:$0xff]  ;;  %vm226_vm13 = vcmask 39936   ;;  %s1168_s28 = smov 8   ;;  %s1169_s29 = smov 124  }
   0x4   :  { %146 = vmatpush.msra.mxu0 %v119_v16  ;;  %169 = vmatpush.msra.mxu1 %v120_v17  ;;  %v113_v22 = vld [vmem:[%s1595_s3 + $0x10] sm:$0xff]  ;;  %v114_v23 = vld [vmem:[%s1595_s3 + $0x18] sm:$0xff]  ;;  %v111_v24 = vld [vmem:[%s1595_s3] sm:$0xff]  ;;  %s1170_s30 = smov 20   ;;  %vm363_vm14 = vcmask 64512   ;;  %s1171_s14 = smov 12  }
   0x5   :  { %v112_v25 = vld [vmem:[%s1595_s3 + $0x8] sm:$0xff]  ;;  %v1296_v35 = vld [vmem:[%s1593_s1] ss:$0 sm:$0xff]  ;;  %s1160_s1 = smov 68   ;;  %s1172_s15 = smov 24   ;;  %vm469_vm15 = vcmask 195584  }
   0x6   :  { %147 = vmatpush.msra.mxu0 %v117_v18  ;;  %170 = vmatpush.msra.mxu1 %v118_v19  ;;  %v1107_v38 = vld [vmem:[%s1594_s2] ss:$0 sm:$0xff]  ;;  %s1161_s2 = smov 80   ;;  %v1328_v46 = vld [vmem:[%s1592_s0 + $0x8] sm:$0x3]  ;;  %s1165_s0 = smov 32  }
   0x7   :  { %v1114_v3 = vpop.eup %1113  ;;  %v1307_v41 = vld [vmem:[%s1596_s4] sm:$0x3]  ;;  %s1162_s4 = smov 116   ;;  %v53_v47 = vsel %vm52_vm5, %v1328_v46, 0.0  ;;  %s1173_s16 = smov 36  }
   0x8   :  { %v57_v4 = vmul.f32 48.0, %v1114_v3  ;;  %vm61_vm1 = vweird.f32 %v1114_v3  ;;  %148 = vmatpush.msra.mxu0 %v115_v20  ;;  %171 = vmatpush.msra.mxu1 %v116_v21  ;;  %v125_v42 = vperm.slane %v1307_v41, 0 }
   0xa   :  { %v58_v5 = vsub.f32 1.0, %v57_v4  ;;  %149 = vmatpush.msra.mxu0 %v113_v22  ;;  %172 = vmatpush.msra.mxu1 %v114_v23 }
   0xc   :  { %v59_v6 = vmul.f32 %v1114_v3, %v58_v5  ;;  %150 = vmatpush.msra.mxu0 %v111_v24  ;;  %173 = vmatpush.msra.mxu1 %v112_v25 }
   0xe   :  { %v60_v7 = vadd.f32 %v1114_v3, %v59_v6 }
  0x10   :  { %v1251_v8 = vsel %vm61_vm1, %v1114_v3, %v60_v7  ;;  %vm471_vm1 = vcmask 293888  }
  0x76   :  { %v51_v9 = vpop.xlane.xlu0 %50 }
  0x77   :  { %v63_v10 = vmul.f32 %v1251_v8, %v51_v9 }
  0x79   :  { %v65_v11 = vsub.f32 %v1247_v0, %v63_v10 }
  0x7b   :  { %v67_v12 = vmul.f32 %v65_v11, %v65_v11 }
  0x7d   :  { %v69_v13 = vsel %vm48_vm0, %v67_v12, 0.0 }
  0x7e   :  { %70 = vadd.xlane.f32.xlu0 %v69_v13 }
  0xf1   :  { %v71_v26 = vpop.xlane.xlu0 %70 }
  0xf2   :  { %v75_v27 = vmul.f32 %v71_v26, %v1251_v8 }
  0xf4   :  { %v77_v28 = vadd.f32 1e-06, %v75_v27 }
  0xf6   :  { %1115 = vrsqrt.f32 %v77_v28  ;;  %vm85_vm3 = vweird.f32 %v77_v28 }
  0xfc   :  { %v1116_v29 = vpop.eup %1115 }
  0xfd   :  { %v80_v30 = vmul.f32 %v1116_v29, %v77_v28  ;;  %vm86_vm2 = vweird.f32 %v1116_v29 }
  0xfe   :  { %vm87_vm4 = vmor %vm85_vm3, %vm86_vm2 }
  0xff   :  { %v81_v31 = vmul.f32 %v1116_v29, %v80_v30 }
 0x101   :  { %v82_v32 = vmul.f32 0.5, %v81_v31 }
 0x103   :  { %v83_v33 = vsub.f32 1.5, %v82_v32 }
 0x105   :  { %v84_v34 = vmul.f32 %v1116_v29, %v83_v33 }
 0x107   :  { %v88_v36 = vsel %vm87_vm4, %v1116_v29, %v84_v34 }
 0x108   :  { %v99_v37 = vmul.f32 %v88_v36, %v65_v11 }
 0x10a   :  { %v104_v39 = vmul.f32 %v1296_v35, %v99_v37 }
 0x10c   :  { %v109_v40 = vadd.f32 %v1107_v38, %v104_v39 }
 0x10e   :  { %1047 = vmatmul.msk.f32.vlgmr.msra.gmra.mxu0 %vm48_vm0, %v109_v40  ;;  %1049 = vmatmul.msk.f32.vlgmr.msra.gmra.mxu1 %vm48_vm0, %v109_v40 }
 0x18b   :  { %v152_v43 = vpop.f32.mrf.mxu0 }
 0x18c   :  { %v1312_v44 = vadd.f32 %v152_v43, %v125_v42  ;;  %v175_v43 = vpop.f32.mrf.mxu1 }
 0x18e   :  { %255 = vrot.lane.b32.xlu0 %v1312_v44, %s1160_s1  ;;  %184 = vrot.lane.b32.xlu1 %v1312_v44, %s1161_s2  ;;  %v1319_v45 = vmul.f32 0.28867513, %v1312_v44  ;;  %v479_v18 = vrot.slane %v1312_v44, 5 }
 0x190   :  { %v475_v22 = vrot.slane %v1319_v45, 5 }
 0x196   :  { %253 = vrot.lane.b32.xlu0 %v1319_v45, %s1162_s4 }
 0x19e   :  { %390 = vrot.lane.b32.xlu0 %v1319_v45, %s1163_s22 }
 0x1b8   :  { %54 = vadd.xlane.f32.xlu1 %v53_v47 }
 0x1d1   :  { %392 = vrot.lane.b32.xlu1 %v1312_v44, %s1164_s25 }
 0x200   :  { %v185_v48 = vpop.permute.xlu1 %184  ;;  %v256_v9 = vpop.permute.xlu0 %255 }
 0x201   :  { %1051 = vmatpush.xpose.msk.msra.mxu2 %vm186_vm6, %v185_v48 }
 0x204   :  { %1052 = vmatmul.msk.f32.vlgmr.msra.gmra.mxu2 %vm186_vm6, %v1319_v45 }
 0x208   :  { %v254_v12 = vpop.permute.xlu0 %253 }
 0x210   :  { %v391_v14 = vpop.permute.xlu0 %390 }
 0x22b   :  { %v55_v49 = vpop.xlane.xlu1 %54 }
 0x22c   :  { %v64_v50 = vmul.f32 %v1251_v8, %v55_v49 }
 0x22e   :  { %v66_v51 = vsub.f32 %v1328_v46, %v64_v50 }
 0x230   :  { %v68_v52 = vmul.f32 %v66_v51, %v66_v51 }
 0x232   :  { %v72_v53 = vsel %vm52_vm5, %v68_v52, 0.0 }
 0x233   :  { %73 = vadd.xlane.f32.xlu2 %v72_v53 }
 0x243   :  { %v393_v11 = vpop.permute.xlu1 %392 }
 0x287   :  { %v209_v54 = vpop.f32.mrf.mxu2 }
 0x288   :  { %v213_v55 = vsel %vm212_vm7, %v209_v54, -inf }
 0x289   :  { %214 = vmax.xlane.f32.xlu2 %v213_v55 }
 0x2a1   :  { %224 = vrot.lane.b32.xlu2 %v1312_v44, %s1165_s0 }
 0x2a6   :  { %v74_v56 = vpop.xlane.xlu2 %73 }
 0x2a7   :  { %v76_v57 = vmul.f32 %v74_v56, %v1251_v8  ;;  %v126_v56 = vperm.slane %v1307_v41, 1 }
 0x2a9   :  { %v78_v58 = vadd.f32 1e-06, %v76_v57  ;;  %321 = vrot.lane.b32.xlu2 %v1312_v44, %s1166_s26  ;;  %v176_v57 = vadd.f32 %v175_v43, %v126_v56 }
 0x2ab   :  { %1117 = vrsqrt.f32 %v78_v58  ;;  %vm95_vm9 = vweird.f32 %v78_v58 }
 0x2b1   :  { %v1118_v59 = vpop.eup %1117  ;;  %319 = vrot.lane.b32.xlu2 %v1319_v45, %s1167_s27 }
 0x2b2   :  { %v90_v60 = vmul.f32 %v1118_v59, %v78_v58  ;;  %vm96_vm8 = vweird.f32 %v1118_v59 }
 0x2b3   :  { %vm97_vm10 = vmor %vm95_vm9, %vm96_vm8 }
 0x2b4   :  { %v91_v61 = vmul.f32 %v1118_v59, %v90_v60 }
 0x2b6   :  { %v92_v62 = vmul.f32 0.5, %v91_v61 }
 0x2b8   :  { %v93_v63 = vsub.f32 1.5, %v92_v62 }
 0x2ba   :  { %v94_v1 = vmul.f32 %v1118_v59, %v93_v63 }
 0x2bc   :  { %v98_v2 = vsel %vm97_vm10, %v1118_v59, %v94_v1 }
 0x2bd   :  { %v100_v3 = vmul.f32 %v98_v2, %v66_v51 }
 0x2bf   :  { %v105_v4 = vmul.f32 %v1296_v35, %v100_v3 }
 0x2c1   :  { %v110_v5 = vadd.f32 %v1107_v38, %v105_v4 }
 0x2c3   :  { %1048 = vmatmul.msk.f32.gmra.mxu0 %vm48_vm0, %v110_v5  ;;  %1050 = vmatmul.msk.f32.gmra.mxu1 %vm48_vm0, %v110_v5 }
 0x2fc   :  { %v215_v6 = vpop.xlane.xlu2 %214 }
 0x2fd   :  { %v216_v24 = vsub.f32 %v209_v54, %v215_v6 }
 0x2ff   :  { %v217_v25 = vmul.f32 1.442695, %v216_v24  ;;  %v652_v24 = vrot.slane %v176_v57, 5 }
 0x301   :  { %1119 = vpow2.f32 %v217_v25 }
 0x304   :  { %v225_v7 = vpop.permute.xlu2 %224 }
 0x305   :  { %1053 = vmatpush.msk.msrb.mxu0 %vm230_vm11, %v225_v7 }
 0x307   :  { %1055 = vmatpush.xpose.msk.msra.mxu0 %vm186_vm6, %v256_v9  ;;  %v1120_v26 = vpop.eup %1119 }
 0x308   :  { %v219_v27 = vsel %vm212_vm7, %v1120_v26, 0.0 }
 0x30c   :  { %v322_v10 = vpop.permute.xlu2 %321 }
 0x30d   :  { %1059 = vmatpush.xpose.msk.msra.mxu3 %vm186_vm6, %v322_v10 }
 0x311   :  { %1063 = vmatpush.xpose.msk.msrb.mxu3 %vm186_vm6, %v393_v11 }
 0x314   :  { %v320_v13 = vpop.permute.xlu2 %319 }
 0x315   :  { %1060 = vmatmul.msk.f32.vlgmr.msra.gmra.mxu3 %vm186_vm6, %v320_v13 }
 0x31d   :  { %1064 = vmatmul.msk.f32.vlgmr.msrb.gmra.mxu3 %vm186_vm6, %v391_v14 }
 0x340   :  { %v155_v15 = vpop.f32.mrf.mxu0  ;;  %v178_v45 = vpop.f32.mrf.mxu1 }
 0x341   :  { %v156_v16 = vadd.f32 %v155_v15, %v125_v42 }
 0x343   :  { %v182_v17 = vmul.f32 0.28867513, %v156_v16  ;;  %v480_v19 = vrot.slane %v156_v16, 5 }
 0x345   :  { %v476_v20 = vrot.slane %v182_v17, 5  ;;  %v1361_v21 = vsel %vm474_vm12, %v479_v18, %v480_v19 }
 0x346   :  { %548 = vrot.lane.b32.xlu0 %v1361_v21, %s1160_s1  ;;  %482 = vrot.lane.b32.xlu2 %v1361_v21, %s1161_s2 }
 0x347   :  { %v477_v23 = vsel %vm474_vm12, %v475_v22, %v476_v20  ;;  %v179_v22 = vadd.f32 %v178_v45, %v126_v56 }
 0x348   :  { %612 = vrot.lane.b32.xlu1 %v477_v23, %s1167_s27 }
 0x34e   :  { %546 = vrot.lane.b32.xlu2 %v477_v23, %s1162_s4 }
 0x356   :  { %687 = vrot.lane.b32.xlu2 %v1361_v21, %s1164_s25 }
 0x370   :  { %220 = vadd.xlane.f32.xlu0 %v219_v27 }
 0x384   :  { %614 = vrot.lane.b32.xlu0 %v1361_v21, %s1166_s26 }
 0x38c   :  { %685 = vrot.lane.b32.xlu0 %v477_v23, %s1163_s22 }
 0x398   :  { %v344_v28 = vpop.f32.mrf.mxu3 }
 0x399   :  { %v347_v29 = vsel %vm212_vm7, %v344_v28, -inf }
 0x39a   :  { %348 = vmax.xlane.f32.xlu1 %v347_v29 }
 0x3a0   :  { %v483_v30 = vpop.permute.xlu2 %482  ;;  %v415_v32 = vpop.f32.mrf.mxu3 }
 0x3a1   :  { %1067 = vmatpush.xpose.msk.msrb.mxu1 %vm186_vm6, %v483_v30  ;;  %v418_v33 = vsel %vm212_vm7, %v415_v32, -inf }
 0x3a4   :  { %1068 = vmatmul.msk.f32.vlgmr.msrb.gmra.mxu1 %vm186_vm6, %v477_v23  ;;  %v653_v23 = vrot.slane %v179_v22, 5 }
 0x3a8   :  { %v547_v31 = vpop.permute.xlu2 %546 }
 0x3b0   :  { %v688_v35 = vpop.permute.xlu2 %687 }
 0x3b6   :  { %419 = vmax.xlane.f32.xlu0 %v418_v33 }
 0x3b8   :  { %v549_v34 = vpop.permute.xlu0 %548 }
 0x3b9   :  { %1071 = vmatpush.xpose.msk.msra.mxu3 %vm186_vm6, %v549_v34 }
 0x3ba   :  { %v613_v40 = vpop.permute.xlu1 %612 }
 0x3bc   :  { %1072 = vmatmul.msk.f32.vlgmr.msra.gmra.mxu3 %vm186_vm6, %v547_v31 }
 0x3bd   :  { %1079 = vmatpush.xpose.msk.msrb.mxu3 %vm186_vm6, %v688_v35 }
 0x3e3   :  { %v221_v36 = vpop.xlane.xlu0 %220 }
 0x3e4   :  { %1121 = vrcp.f32 %v221_v36 }
 0x3ea   :  { %v1122_v37 = vpop.eup %1121 }
 0x3eb   :  { %v223_v38 = vmul.f32 %v1122_v37, %v1120_v26  ;;  %v654_v26 = vsel %vm474_vm12, %v652_v24, %v653_v23 }
 0x3ed   :  { %1054 = vmatmul.msk.f32.vlgmr.msrb.gmra.mxu0 %vm226_vm13, %v223_v38 }
 0x3f5   :  { %1056 = vmatmul.msk.f32.vlgmr.msra.gmra.mxu0 %vm186_vm6, %v254_v12 }
 0x3f6   :  { %v615_v39 = vpop.permute.xlu0 %614 }
 0x3f7   :  { %1075 = vmatpush.xpose.msk.msra.mxu1 %vm186_vm6, %v615_v39 }
 0x3fa   :  { %1076 = vmatmul.msk.f32.vlgmr.msra.gmra.mxu1 %vm186_vm6, %v613_v40 }
 0x3fe   :  { %v686_v42 = vpop.permute.xlu0 %685 }
 0x3ff   :  { %1080 = vmatmul.msk.f32.vlgmr.msrb.gmra.mxu3 %vm186_vm6, %v686_v42 }
 0x40d   :  { %v349_v58 = vpop.xlane.xlu1 %348 }
 0x40e   :  { %v350_v59 = vsub.f32 %v344_v28, %v349_v58 }
 0x410   :  { %v351_v60 = vmul.f32 1.442695, %v350_v59 }
 0x421   :  { %v505_v47 = vpop.f32.mrf.mxu1 }
 0x422   :  { %v508_v48 = vsel %vm212_vm7, %v505_v47, -inf }
 0x423   :  { %509 = vmax.xlane.f32.xlu2 %v508_v48 }
 0x429   :  { %v420_v49 = vpop.xlane.xlu0 %419 }
 0x42a   :  { %v421_v50 = vsub.f32 %v415_v32, %v420_v49 }
 0x42c   :  { %v422_v51 = vmul.f32 1.442695, %v421_v50 }
 0x42e   :  { %1123 = vpow2.f32 %v422_v51 }
 0x42f   :  { %1125 = vpow2.f32 %v351_v60 }
 0x434   :  { %v1124_v54 = vpop.eup %1123 }
 0x435   :  { %v424_v55 = vsel %vm212_vm7, %v1124_v54, 0.0  ;;  %v1396_v63 = vpop.eup %1125 }
 0x436   :  { %v353_v41 = vsel %vm212_vm7, %v1396_v63, 0.0 }
 0x43f   :  { %v571_v52 = vpop.f32.mrf.mxu3 }
 0x440   :  { %v574_v53 = vsel %vm212_vm7, %v571_v52, -inf }
 0x441   :  { %575 = vmax.xlane.f32.xlu1 %v574_v53 }
 0x449   :  { %425 = vadd.xlane.f32.xlu1 %v424_v55 }
 0x462   :  { %361 = vrot.lane.b32.xlu1 %v176_v57, %s1168_s28 }
 0x46a   :  { %429 = vrot.lane.b32.xlu1 %v176_v57, %s1169_s29  ;;  %v1398_v1 = vpop.f32.mrf.mxu0 }
 0x472   :  { %v278_v4 = vpop.f32.mrf.mxu0 }
 0x473   :  { %v281_v5 = vsel %vm212_vm7, %v278_v4, -inf }
 0x477   :  { %v637_v61 = vpop.f32.mrf.mxu1 }
 0x478   :  { %v640_v62 = vsel %vm212_vm7, %v637_v61, -inf }
 0x479   :  { %641 = vmax.xlane.f32.xlu0 %v640_v62 }
 0x481   :  { %354 = vadd.xlane.f32.xlu0 %v353_v41 }
 0x482   :  { %v710_v2 = vpop.f32.mrf.mxu3 }
 0x483   :  { %v713_v3 = vsel %vm212_vm7, %v710_v2, -inf }
 0x484   :  { %714 = vmax.xlane.f32.xlu2 %v713_v3 }
 0x48c   :  { %282 = vmax.xlane.f32.xlu2 %v281_v5 }
 0x495   :  { %359 = vrot.lane.b32.xlu0 %v1312_v44, %s1168_s28 }
 0x496   :  { %v510_v10 = vpop.xlane.xlu2 %509 }
 0x497   :  { %v511_v11 = vsub.f32 %v505_v47, %v510_v10 }
 0x499   :  { %v512_v13 = vmul.f32 1.442695, %v511_v11 }
 0x4a4   :  { %292 = vrot.lane.b32.xlu2 %v1312_v44, %s1170_s30 }
 0x4b4   :  { %v576_v6 = vpop.xlane.xlu1 %575 }
 0x4b5   :  { %v577_v7 = vsub.f32 %v571_v52, %v576_v6 }
 0x4b7   :  { %v578_v9 = vmul.f32 1.442695, %v577_v7 }
 0x4b9   :  { %1127 = vpow2.f32 %v578_v9 }
 0x4ba   :  { %1129 = vpow2.f32 %v512_v13 }
 0x4bc   :  { %v426_v16 = vpop.xlane.xlu1 %425 }
 0x4bd   :  { %1131 = vrcp.f32 %v426_v16  ;;  %v774_v16 = vld [vmem:[%s1598_s5 + $0x20] sm:$0xff] }
 0x4bf   :  { %v1408_v12 = vpop.eup %1127 }
 0x4c0   :  { %v580_v14 = vsel %vm212_vm7, %v1408_v12, 0.0  ;;  %v1412_v15 = vpop.eup %1129 }
 0x4c1   :  { %581 = vadd.xlane.f32.xlu0 %v580_v14  ;;  %v514_v44 = vsel %vm212_vm7, %v1412_v15, 0.0 }
 0x4c3   :  { %v1132_v18 = vpop.eup %1131 }
 0x4c4   :  { %v428_v19 = vmul.f32 %v1132_v18, %v1124_v54  ;;  %v771_v18 = vld [vmem:[%s1598_s5 + $0x8] sm:$0xff] }
 0x4cd   :  { %515 = vadd.xlane.f32.xlu2 %v514_v44  ;;  %v773_v44 = vld [vmem:[%s1598_s5 + $0x18] sm:$0xff] }
 0x4d4   :  { %v362_v17 = vpop.permute.xlu1 %361 }
 0x4dc   :  { %v430_v20 = vpop.permute.xlu1 %429 }
 0x4dd   :  { %1065 = vmatpush.msk.msrb.mxu0 %vm230_vm11, %v430_v20 }
 0x4de   :  { %1066 = vmatmul.msk.f32.vlgmr.msrb.gmra.mxu0 %vm226_vm13, %v428_v19  ;;  %v770_v19 = vld [vmem:[%s1598_s5] sm:$0xff] }
 0x4e5   :  { %519 = vrot.lane.b32.xlu2 %v1361_v21, %s1165_s0 }
 0x4ec   :  { %v642_v25 = vpop.xlane.xlu0 %641 }
 0x4ed   :  { %v643_v27 = vsub.f32 %v637_v61, %v642_v25  ;;  %657 = vrot.lane.b32.xlu2 %v654_v26, %s1168_s28 }
 0x4ef   :  { %v644_v28 = vmul.f32 1.442695, %v643_v27 }
 0x4f1   :  { %1133 = vpow2.f32 %v644_v28 }
 0x4f4   :  { %v355_v34 = vpop.xlane.xlu0 %354 }
 0x4f7   :  { %v1422_v29 = vpop.eup %1133  ;;  %v715_v30 = vpop.xlane.xlu2 %714 }
 0x4f8   :  { %v716_v31 = vsub.f32 %v710_v2, %v715_v30  ;;  %v646_v32 = vsel %vm212_vm7, %v1422_v29, 0.0 }
 0x4f9   :  { %647 = vadd.xlane.f32.xlu1 %v646_v32 }
 0x4fa   :  { %v717_v33 = vmul.f32 1.442695, %v716_v31 }
 0x4fc   :  { %1135 = vpow2.f32 %v717_v33 }
 0x4ff   :  { %v283_v35 = vpop.xlane.xlu2 %282 }
 0x500   :  { %v284_v36 = vsub.f32 %v278_v4, %v283_v35  ;;  %v1108_v35 = vld [vmem:[%s1597_s6] ss:$0 sm:$0xff] }
 0x502   :  { %v1136_v37 = vpop.eup %1135  ;;  %v285_v38 = vmul.f32 1.442695, %v284_v36 }
 0x503   :  { %v719_v39 = vsel %vm212_vm7, %v1136_v37, 0.0 }
 0x504   :  { %1137 = vpow2.f32 %v285_v38  ;;  %720 = vadd.xlane.f32.xlu0 %v719_v39 }
 0x507   :  { %v360_v40 = vpop.permute.xlu0 %359  ;;  %v293_v42 = vpop.permute.xlu2 %292 }
 0x508   :  { %v364_v43 = vsel %vm363_vm14, %v360_v40, %v362_v17  ;;  %1057 = vmatpush.msk.msrb.mxu2 %vm230_vm11, %v293_v42  ;;  %v772_v17 = vld [vmem:[%s1598_s5 + $0x10] sm:$0xff] }
 0x50a   :  { %1061 = vmatpush.msk.msra.mxu2 %vm230_vm11, %v364_v43  ;;  %v1138_v45 = vpop.eup %1137 }
 0x50b   :  { %v287_v47 = vsel %vm212_vm7, %v1138_v45, 0.0 }
 0x50c   :  { %288 = vadd.xlane.f32.xlu1 %v287_v47 }
 0x518   :  { %585 = vrot.lane.b32.xlu0 %v1361_v21, %s1170_s30 }
 0x520   :  { %724 = vrot.lane.b32.xlu0 %v654_v26, %s1169_s29 }
 0x525   :  { %655 = vrot.lane.b32.xlu1 %v1361_v21, %s1168_s28 }
 0x534   :  { %v582_v49 = vpop.xlane.xlu0 %581 }
 0x540   :  { %v516_v50 = vpop.xlane.xlu2 %515 }
 0x548   :  { %v520_v56 = vpop.permute.xlu2 %519 }
 0x550   :  { %v658_v3 = vpop.permute.xlu2 %657 }
 0x55b   :  { %v453_v7 = vpop.f32.mrf.mxu0 }
 0x56c   :  { %v648_v48 = vpop.xlane.xlu1 %647 }
 0x577   :  { %v721_v52 = vpop.xlane.xlu0 %720 }
 0x57f   :  { %v289_v51 = vpop.xlane.xlu1 %288 }
 0x580   :  { %1139 = vrcp.f32 %v289_v51 }
 0x581   :  { %1141 = vrcp.f32 %v582_v49 }
 0x582   :  { %1143 = vrcp.f32 %v355_v34 }
 0x583   :  { %1145 = vrcp.f32 %v721_v52 }
 0x584   :  { %1147 = vrcp.f32 %v516_v50 }
 0x585   :  { %1149 = vrcp.f32 %v648_v48 }
 0x586   :  { %v1140_v53 = vpop.eup %1139 }
 0x587   :  { %v1142_v54 = vpop.eup %1141  ;;  %v291_v55 = vmul.f32 %v1140_v53, %v1138_v45 }
 0x588   :  { %v584_v57 = vmul.f32 %v1142_v54, %v1408_v12  ;;  %v1144_v58 = vpop.eup %1143  ;;  %v871_v54 = vld [vmem:[%s1602_s9 + $0x28] sm:$0xff] }
 0x589   :  { %1058 = vmatmul.msk.f32.vlgmr.msrb.gmra.mxu2 %vm226_vm13, %v291_v55  ;;  %v1146_v59 = vpop.eup %1145  ;;  %v357_v60 = vmul.f32 %v1144_v58, %v1396_v63  ;;  %v870_v55 = vld [vmem:[%s1602_s9 + $0x20] sm:$0xff] }
 0x58a   :  { %1069 = vmatpush.msk.msrb.mxu2 %vm230_vm11, %v520_v56  ;;  %v586_v21 = vpop.permute.xlu0 %585  ;;  %v723_v61 = vmul.f32 %v1146_v59, %v1136_v37  ;;  %v1148_v41 = vpop.eup %1147  ;;  %v869_v56 = vld [vmem:[%s1602_s9 + $0x18] sm:$0xff]  ;;  %v866_v58 = vld [vmem:[%s1602_s9] sm:$0xff] }
 0x58b   :  { %1073 = vmatpush.msk.msra.mxu0 %vm230_vm11, %v586_v21  ;;  %v518_v2 = vmul.f32 %v1148_v41, %v1412_v15  ;;  %v1150_v63 = vpop.eup %1149  ;;  %v775_v15 = vld [vmem:[%s1598_s5 + $0x28] sm:$0xff] }
 0x58c   :  { %1074 = vmatmul.msk.f32.vlgmr.msra.gmra.mxu0 %vm226_vm13, %v584_v57  ;;  %v650_v6 = vmul.f32 %v1150_v63, %v1422_v29  ;;  %795 = vmatpush.msrb.mxu1 %v775_v15  ;;  %v868_v57 = vld [vmem:[%s1602_s9 + $0x10] sm:$0xff]  ;;  %v867_v21 = vld [vmem:[%s1602_s9 + $0x8] sm:$0xff] }
 0x58e   :  { %796 = vmatpush.msrb.mxu1 %v774_v16 }
 0x590   :  { %797 = vmatpush.msrb.mxu1 %v773_v44 }
 0x591   :  { %1062 = vmatmul.msk.f32.vlgmr.msra.gmra.mxu2 %vm226_vm13, %v357_v60 }
 0x592   :  { %v725_v62 = vpop.permute.xlu0 %724  ;;  %798 = vmatpush.msrb.mxu1 %v772_v17 }
 0x593   :  { %1081 = vmatpush.msk.msrb.mxu0 %vm230_vm11, %v725_v62 }
 0x594   :  { %1082 = vmatmul.msk.f32.vlgmr.msrb.gmra.mxu0 %vm226_vm13, %v723_v61  ;;  %799 = vmatpush.msrb.mxu1 %v771_v18 }
 0x596   :  { %800 = vmatpush.msrb.mxu1 %v770_v19 }
 0x597   :  { %v656_v4 = vpop.permute.xlu1 %655 }
 0x598   :  { %v659_v5 = vsel %vm363_vm14, %v656_v4, %v658_v3 }
 0x599   :  { %1070 = vmatmul.msk.f32.vlgmr.msrb.gmra.mxu2 %vm226_vm13, %v518_v2 }
 0x59a   :  { %1077 = vmatpush.msk.msra.mxu2 %vm230_vm11, %v659_v5 }
 0x59c   :  { %892 = vmatpush.msrb.mxu2 %v871_v54 }
 0x59e   :  { %893 = vmatpush.msrb.mxu2 %v870_v55 }
 0x5a0   :  { %894 = vmatpush.msrb.mxu2 %v869_v56 }
 0x5a1   :  { %1078 = vmatmul.msk.f32.vlgmr.msra.gmra.mxu2 %vm226_vm13, %v650_v6 }
 0x5a2   :  { %895 = vmatpush.msrb.mxu2 %v868_v57  ;;  %v995_v57 = vld [vmem:[%s1604_s11 + $0x10] sm:$0xff] }
 0x5a4   :  { %896 = vmatpush.msrb.mxu2 %v867_v21 }
 0x5a6   :  { %897 = vmatpush.msrb.mxu2 %v866_v58 }
 0x609   :  { %v609_v9 = vpop.f32.mrf.mxu0 }
 0x60a   :  { %752 = vrot.lane.b32.xlu2 %v609_v9, %s1171_s14 }
 0x60c   :  { %v316_v10 = vpop.f32.mrf.mxu2 }
 0x611   :  { %v748_v14 = vpop.f32.mrf.mxu0 }
 0x612   :  { %457 = vrot.lane.b32.xlu2 %v316_v10, %s1171_s14 }
 0x614   :  { %v387_v11 = vpop.f32.mrf.mxu2 }
 0x615   :  { %461 = vrot.lane.b32.xlu1 %v387_v11, %s1172_s15  ;;  %v1109_v11 = vld [vmem:[%s1599_s7] ss:$0 sm:$0xff] }
 0x61a   :  { %465 = vrot.lane.b32.xlu2 %v453_v7, %s1173_s16 }
 0x61c   :  { %v543_v12 = vpop.f32.mrf.mxu2 }
 0x624   :  { %v682_v13 = vpop.f32.mrf.mxu2 }
 0x625   :  { %756 = vrot.lane.b32.xlu0 %v682_v13, %s1172_s15 }
 0x62d   :  { %760 = vrot.lane.b32.xlu0 %v748_v14, %s1173_s16  ;;  %v1110_v14 = vld [vmem:[%s1600_s8] ss:$0 sm:$0xff] }
 0x664   :  { %v753_v20 = vpop.permute.xlu2 %752 }
 0x665   :  { %v763_v25 = vsel %vm186_vm6, %v543_v12, %v753_v20 }
 0x66c   :  { %v458_v22 = vpop.permute.xlu2 %457 }
 0x66d   :  { %v468_v26 = vsel %vm186_vm6, %v1398_v1, %v458_v22 }
 0x674   :  { %v466_v31 = vpop.permute.xlu2 %465 }
 0x687   :  { %v462_v24 = vpop.permute.xlu1 %461 }
 0x688   :  { %v470_v27 = vsel %vm469_vm15, %v468_v26, %v462_v24  ;;  %v1111_v24 = vld [vmem:[%s1601_s10] ss:$0 sm:$0xff]  ;;  %v1004_v26 = vld [vmem:[%s1604_s11 + $0x58] sm:$0xff] }
 0x689   :  { %v472_v33 = vsel %vm471_vm1, %v470_v27, %v466_v31  ;;  %1020 = vmatpush.msra.mxu3 %v1004_v26 }
 0x697   :  { %v757_v23 = vpop.permute.xlu0 %756 }
 0x698   :  { %v764_v28 = vsel %vm469_vm15, %v763_v25, %v757_v23  ;;  %vm1009_vm15 = vcmask 785408  }
 0x69f   :  { %v761_v29 = vpop.permute.xlu0 %760 }
 0x6a0   :  { %v765_v30 = vsel %vm471_vm1, %v764_v28, %v761_v29  ;;  %v1003_v28 = vld [vmem:[%s1604_s11 + $0x50] sm:$0xff] }
 0x6a1   :  { %v767_v32 = vrot.slane %v765_v30, 3  ;;  %1021 = vmatpush.msra.mxu3 %v1003_v28  ;;  %v1002_v30 = vld [vmem:[%s1604_s11 + $0x48] sm:$0xff] }
 0x6a3   :  { %v769_v34 = vsel %vm230_vm11, %v472_v33, %v767_v32  ;;  %1022 = vmatpush.msra.mxu3 %v1002_v30 }
 0x6a4   :  { %1083 = vmatmul.msk.f32.vlgmr.msrb.gmra.mxu1 %vm48_vm0, %v769_v34 }
 0x6ac   :  { %1084 = vmatmul.msk.f32.gmra.mxu1 %vm48_vm0, %v767_v32  ;;  %v1001_v32 = vld [vmem:[%s1604_s11 + $0x40] sm:$0xff] }
 0x6ad   :  { %1023 = vmatpush.msra.mxu3 %v1001_v32 }
 0x721   :  { %v802_v36 = vpop.f32.mrf.mxu1 }
 0x722   :  { %v803_v1 = vadd.f32 %v1108_v35, %v802_v36 }
 0x724   :  { %v1479_v37 = vadd.f32 %v803_v1, %v1247_v0 }
 0x726   :  { %v812_v38 = vsel %vm48_vm0, %v1479_v37, 0.0 }
 0x727   :  { %813 = vadd.xlane.f32.xlu0 %v812_v38 }
 0x729   :  { %v805_v39 = vpop.f32.mrf.mxu1 }
 0x72a   :  { %v806_v40 = vadd.f32 %v1108_v35, %v805_v39  ;;  %v1000_v35 = vld [vmem:[%s1604_s11 + $0x38] sm:$0xff]  ;;  %v999_v39 = vld [vmem:[%s1604_s11 + $0x30] sm:$0xff] }
 0x72b   :  { %1024 = vmatpush.msra.mxu3 %v1000_v35 }
 0x72c   :  { %v1484_v42 = vadd.f32 %v806_v40, %v1328_v46 }
 0x72d   :  { %1025 = vmatpush.msra.mxu3 %v999_v39 }
 0x72e   :  { %v815_v43 = vsel %vm52_vm5, %v1484_v42, 0.0 }
 0x72f   :  { %816 = vadd.xlane.f32.xlu1 %v815_v43 }
 0x79a   :  { %v814_v45 = vpop.xlane.xlu0 %813 }
 0x79b   :  { %v818_v47 = vmul.f32 %v814_v45, %v1251_v8 }
 0x79d   :  { %v820_v48 = vsub.f32 %v1479_v37, %v818_v47  ;;  %v998_v47 = vld [vmem:[%s1604_s11 + $0x28] sm:$0xff] }
 0x79e   :  { %1026 = vmatpush.msra.mxu3 %v998_v47 }
 0x79f   :  { %v822_v0 = vmul.f32 %v820_v48, %v820_v48 }
 0x7a1   :  { %v824_v49 = vsel %vm48_vm0, %v822_v0, 0.0 }
 0x7a2   :  { %v817_v50 = vpop.xlane.xlu1 %816  ;;  %825 = vadd.xlane.f32.xlu2 %v824_v49 }
 0x7a3   :  { %v819_v51 = vmul.f32 %v817_v50, %v1251_v8  ;;  %v997_v50 = vld [vmem:[%s1604_s11 + $0x20] sm:$0xff] }
 0x7a4   :  { %1027 = vmatpush.msra.mxu3 %v997_v50 }
 0x7a5   :  { %v821_v52 = vsub.f32 %v1484_v42, %v819_v51 }
 0x7a7   :  { %v823_v46 = vmul.f32 %v821_v52, %v821_v52 }
 0x7a9   :  { %v827_v53 = vsel %vm52_vm5, %v823_v46, 0.0 }
 0x7aa   :  { %828 = vadd.xlane.f32.xlu0 %v827_v53  ;;  %v996_v53 = vld [vmem:[%s1604_s11 + $0x18] sm:$0xff] }
 0x7ab   :  { %1028 = vmatpush.msra.mxu3 %v996_v53 }
 0x7ad   :  { %1029 = vmatpush.msra.mxu3 %v995_v57 }
 0x815   :  { %v826_v59 = vpop.xlane.xlu2 %825 }
 0x816   :  { %v830_v60 = vmul.f32 %v826_v59, %v1251_v8 }
 0x818   :  { %v832_v61 = vadd.f32 1e-06, %v830_v60 }
 0x81a   :  { %1151 = vrsqrt.f32 %v832_v61  ;;  %vm840_vm3 = vweird.f32 %v832_v61 }
 0x81d   :  { %v829_v62 = vpop.xlane.xlu0 %828 }
 0x81e   :  { %v831_v41 = vmul.f32 %v829_v62, %v1251_v8 }
 0x820   :  { %v1152_v2 = vpop.eup %1151  ;;  %v833_v3 = vadd.f32 1e-06, %v831_v41 }
 0x821   :  { %v835_v4 = vmul.f32 %v1152_v2, %v832_v61  ;;  %vm841_vm2 = vweird.f32 %v1152_v2  ;;  %v994_v61 = vld [vmem:[%s1604_s11 + $0x8] sm:$0xff] }
 0x822   :  { %1153 = vrsqrt.f32 %v833_v3  ;;  %vm842_vm4 = vmor %vm840_vm3, %vm841_vm2  ;;  %vm850_vm7 = vweird.f32 %v833_v3  ;;  %1030 = vmatpush.msra.mxu3 %v994_v61 }
 0x823   :  { %v836_v5 = vmul.f32 %v1152_v2, %v835_v4 }
 0x825   :  { %v837_v63 = vmul.f32 0.5, %v836_v5 }
 0x827   :  { %v838_v6 = vsub.f32 1.5, %v837_v63 }
 0x828   :  { %v1154_v7 = vpop.eup %1153 }
 0x829   :  { %v839_v9 = vmul.f32 %v1152_v2, %v838_v6  ;;  %v845_v10 = vmul.f32 %v1154_v7, %v833_v3  ;;  %vm851_vm6 = vweird.f32 %v1154_v7  ;;  %v993_v3 = vld [vmem:[%s1604_s11] sm:$0xff] }
 0x82a   :  { %vm852_vm8 = vmor %vm850_vm7, %vm851_vm6  ;;  %1031 = vmatpush.msra.mxu3 %v993_v3 }
 0x82b   :  { %v843_v12 = vsel %vm842_vm4, %v1152_v2, %v839_v9  ;;  %v846_v13 = vmul.f32 %v1154_v7, %v845_v10 }
 0x82c   :  { %v854_v8 = vmul.f32 %v843_v12, %v820_v48 }
 0x82d   :  { %v847_v15 = vmul.f32 0.5, %v846_v13 }
 0x82e   :  { %v859_v16 = vmul.f32 %v1109_v11, %v854_v8 }
 0x82f   :  { %v848_v44 = vsub.f32 1.5, %v847_v15 }
 0x830   :  { %v864_v17 = vadd.f32 %v1110_v14, %v859_v16 }
 0x831   :  { %v849_v18 = vmul.f32 %v1154_v7, %v848_v44 }
 0x832   :  { %1085 = vmatmul.msk.f32.vlgmr.msrb.gmra.mxu2 %vm48_vm0, %v864_v17 }
 0x833   :  { %v853_v19 = vsel %vm852_vm8, %v1154_v7, %v849_v18 }
 0x834   :  { %v855_v20 = vmul.f32 %v853_v19, %v821_v52 }
 0x836   :  { %v860_v22 = vmul.f32 %v1109_v11, %v855_v20 }
 0x838   :  { %v865_v23 = vadd.f32 %v1110_v14, %v860_v22 }
 0x83a   :  { %1086 = vmatmul.msk.f32.gmra.mxu2 %vm48_vm0, %v865_v23 }
 0x8b5   :  { %v899_v25 = vpop.f32.mrf.mxu2 }
 0x8b6   :  { %v1528_v27 = vadd.f32 %v1111_v24, %v899_v25 }
 0x8b8   :  { %v1534_v29 = vmul.f32 0.70710677, %v1528_v27 }
 0x8ba   :  { %v909_v31 = vmul.f32 %v1534_v29, %v1534_v29 }
 0x8bc   :  { %v910_v33 = vmin.f32 %v909_v31, 16.0 }
 0x8bd   :  { %v902_v34 = vpop.f32.mrf.mxu2 }
 0x8be   :  { %v911_v36 = vmul.f32 2.1237322e-06, %v910_v33  ;;  %v922_v1 = vmul.f32 3.8918573e-05, %v910_v33  ;;  %v1547_v38 = vadd.f32 %v1111_v24, %v902_v34 }
 0x8c0   :  { %v912_v40 = vadd.f32 0.00028619796, %v911_v36  ;;  %v923_v43 = vadd.f32 0.001143296, %v922_v1  ;;  %v1553_v45 = vmul.f32 0.70710677, %v1547_v38 }
 0x8c2   :  { %v913_v48 = vmul.f32 %v912_v40, %v910_v33  ;;  %v924_v0 = vmul.f32 %v923_v43, %v910_v33  ;;  %v949_v49 = vmul.f32 %v1553_v45, %v1553_v45 }
 0x8c4   :  { %v925_v51 = vadd.f32 0.014752088, %v924_v0  ;;  %v914_v52 = vadd.f32 0.0036580483, %v913_v48  ;;  %v950_v46 = vmin.f32 %v949_v49, 16.0 }
 0x8c6   :  { %v926_v54 = vmul.f32 %v925_v51, %v910_v33  ;;  %v951_v55 = vmul.f32 2.1237322e-06, %v950_v46  ;;  %v962_v56 = vmul.f32 3.8918573e-05, %v950_v46  ;;  %v915_v58 = vmul.f32 %v914_v52, %v910_v33 }
 0x8c7   :  { %v905_v51 = vmul.f32 0.5, %v1528_v27  ;;  %v1112_v27 = vld [vmem:[%s1603_s12] ss:$0 sm:$0xff] }
 0x8c8   :  { %v927_v21 = vadd.f32 0.112945676, %v926_v54  ;;  %v952_v59 = vadd.f32 0.00028619796, %v951_v55  ;;  %v963_v60 = vadd.f32 0.001143296, %v962_v56 }
 0x8c9   :  { %v916_v5 = vadd.f32 0.05243302, %v915_v58  ;;  %v906_v58 = vmul.f32 0.5, %v1547_v38 }
 0x8ca   :  { %v928_v62 = vmul.f32 %v927_v21, %v910_v33  ;;  %v953_v41 = vmul.f32 %v952_v59, %v950_v46  ;;  %v964_v2 = vmul.f32 %v963_v60, %v950_v46 }
 0x8cb   :  { %v917_v11 = vmul.f32 %v916_v5, %v910_v33 }
 0x8cc   :  { %v929_v4 = vadd.f32 0.4994258, %v928_v62  ;;  %v965_v63 = vadd.f32 0.014752088, %v964_v2  ;;  %v954_v7 = vadd.f32 0.0036580483, %v953_v41 }
 0x8cd   :  { %v918_v14 = vadd.f32 0.18741608, %v917_v11 }
 0x8ce   :  { %v930_v6 = vmul.f32 %v929_v4, %v910_v33  ;;  %v966_v9 = vmul.f32 %v965_v63, %v950_v46  ;;  %v955_v13 = vmul.f32 %v954_v7, %v950_v46 }
 0x8cf   :  { %v919_v18 = vmul.f32 %v918_v14, %v910_v33 }
 0x8d0   :  { %v931_v10 = vadd.f32 1.0, %v930_v6  ;;  %v967_v12 = vadd.f32 0.112945676, %v966_v9  ;;  %v956_v16 = vadd.f32 0.05243302, %v955_v13 }
 0x8d1   :  { %v920_v25 = vadd.f32 1.1283791, %v919_v18 }
 0x8d2   :  { %1155 = vrcp.f32 %v931_v10  ;;  %v968_v8 = vmul.f32 %v967_v12, %v950_v46  ;;  %v957_v22 = vmul.f32 %v956_v16, %v950_v46  ;;  %v943_v24 = vand.u32 2147483648, %v931_v10 }
 0x8d3   :  { %v941_v28 = vand.u32 2147483647, %v931_v10  ;;  %vm937_vm10 = vweird.f32 %v931_v10  ;;  %v921_v35 = vmul.f32 %v920_v25, %v1534_v29 }
 0x8d4   :  { %v969_v15 = vadd.f32 0.4994258, %v968_v8  ;;  %v958_v30 = vadd.f32 0.18741608, %v957_v22  ;;  %v944_v32 = vor.u32 1.1754944e-38, %v943_v24 }
 0x8d5   :  { %vm942_vm12 = vcmp.eq.f32.partialorder %v941_v28, 8.507059e+37 }
 0x8d6   :  { %v970_v44 = vmul.f32 %v969_v15, %v950_v46  ;;  %v959_v1 = vmul.f32 %v958_v30, %v950_v46 }
 0x8d8   :  { %v1156_v17 = vpop.eup %1155  ;;  %v971_v20 = vadd.f32 1.0, %v970_v44  ;;  %v960_v0 = vadd.f32 1.1283791, %v959_v1 }
 0x8d9   :  { %v933_v19 = vmul.f32 %v1156_v17, %v931_v10  ;;  %vm938_vm9 = vweird.f32 %v1156_v17 }
 0x8da   :  { %1157 = vrcp.f32 %v971_v20  ;;  %vm939_vm11 = vmor %vm937_vm10, %vm938_vm9  ;;  %v983_v48 = vand.u32 2147483648, %v971_v20  ;;  %v981_v50 = vand.u32 2147483647, %v971_v20  ;;  %vm977_vm14 = vweird.f32 %v971_v20 }
 0x8db   :  { %v934_v23 = vsub.f32 1.0, %v933_v19  ;;  %v961_v46 = vmul.f32 %v960_v0, %v1553_v45 }
 0x8dc   :  { %v984_v54 = vor.u32 1.1754944e-38, %v983_v48  ;;  %vm982_vm2 = vcmp.eq.f32.partialorder %v981_v50, 8.507059e+37 }
 0x8dd   :  { %v935_v26 = vmul.f32 %v1156_v17, %v934_v23 }
 0x8df   :  { %v936_v31 = vadd.f32 %v1156_v17, %v935_v26 }
 0x8e0   :  { %v1158_v34 = vpop.eup %1157 }
 0x8e1   :  { %v940_v36 = vsel %vm939_vm11, %v1156_v17, %v936_v31  ;;  %v973_v39 = vmul.f32 %v1158_v34, %v971_v20  ;;  %vm978_vm13 = vweird.f32 %v1158_v34 }
 0x8e2   :  { %v945_v33 = vsel %vm942_vm12, %v944_v32, %v940_v36  ;;  %vm979_vm1 = vmor %vm977_vm14, %vm978_vm13 }
 0x8e3   :  { %v946_v40 = vmul.f32 %v945_v33, %v921_v35  ;;  %v974_v43 = vsub.f32 1.0, %v973_v39 }
 0x8e5   :  { %v1087_v47 = vclamps-f32 %v946_v40, 1.0  ;;  %v975_v49 = vmul.f32 %v1158_v34, %v974_v43 }
 0x8e7   :  { %v989_v52 = vadd.f32 1.0, %v1087_v47  ;;  %v976_v53 = vadd.f32 %v1158_v34, %v975_v49 }
 0x8e9   :  { %v991_v29 = vmul.f32 %v989_v52, %v905_v51  ;;  %v980_v55 = vsel %vm979_vm1, %v1158_v34, %v976_v53 }
 0x8ea   :  { %v985_v56 = vsel %vm982_vm2, %v984_v54, %v980_v55 }
 0x8eb   :  { %1089 = vmatmul.msk.f32.vlgmr.msra.gmra.mxu3 %vm1009_vm15, %v991_v29  ;;  %v986_v57 = vmul.f32 %v985_v56, %v961_v46 }
 0x8ed   :  { %v1088_v21 = vclamps-f32 %v986_v57, 1.0 }
 0x8ef   :  { %v990_v59 = vadd.f32 1.0, %v1088_v21 }
 0x8f1   :  { %v992_v60 = vmul.f32 %v990_v59, %v906_v58 }
 0x8f3   :  { %1090 = vmatmul.msk.f32.gmra.mxu3 %vm1009_vm15, %v992_v60 }
 0x96e   :  { %v1033_v61 = vpop.f32.mrf.mxu3 }
 0x96f   :  { %v1034_v62 = vadd.f32 %v1112_v27, %v1033_v61 }
 0x971   :  { %v1039_v41 = vadd.f32 %v1034_v62, %v1479_v37 }
 0x973   :  { %1041 = vst.msk [vmem:[%s1605_s13] sm:$0xff] %vm48_vm0, %v1039_v41 }
 0x976   :  { %v1036_v45 = vpop.f32.mrf.mxu3 }
 0x977   :  { %v1037_v2 = vadd.f32 %v1112_v27, %v1036_v45 }
 0x979   :  { %v1040_v38 = vadd.f32 %v1037_v2, %v1484_v42 }
 0x97b   :  { %1042 = vst.msk [vmem:[%s1605_s13 + $0x8] sm:$0x3] %vm52_vm5, %v1040_v38 }

// kernel: vit_mha_forward.7
= control target key start
LH: loop header
LB: loop body
LE: loop exit
PB: predicated region body
PF: predicated region fallthrough
CT: control target
= control target key end

     0   :  { %s1468_s0 = inlined_call_operand.vmem [shape: f32[10,48], index: 0, kind: input, shape index: {}]   ;;  %s1469_s1 = inlined_call_operand.vmem [shape: f32[1,48], index: 1, kind: input, shape index: {}]   ;;  %s1470_s2 = inlined_call_operand.vmem [shape: f32[1,48], index: 2, kind: input, shape index: {}]   ;;  %s1471_s3 = inlined_call_operand.vmem [shape: f32[48,40], index: 3, kind: input, shape index: {}]   ;;  %s1472_s4 = inlined_call_operand.vmem [shape: f32[1,40], index: 4, kind: input, shape index: {}]   ;;  %s1473_s5 = inlined_call_operand.vmem [shape: f32[40,40], index: 5, kind: input, shape index: {}]   ;;  %s1474_s6 = inlined_call_operand.vmem [shape: f32[1,40], index: 6, kind: input, shape index: {}]   ;;  %s1475_s7 = inlined_call_operand.vmem [shape: f32[40,80], index: 7, kind: input, shape index: {}]   ;;  %s1476_s8 = inlined_call_operand.vmem [shape: f32[1,80], index: 8, kind: input, shape index: {}]   ;;  %s1477_s9 = inlined_call_operand.vmem [shape: f32[40,40], index: 9, kind: input, shape index: {}]   ;;  %s1478_s10 = inlined_call_operand.vmem [shape: f32[1,40], index: 10, kind: input, shape index: {}]   ;;  %s1479_s11 = inlined_call_operand.vmem [shape: f32[40,1], index: 11, kind: input, shape index: {}]   ;;  %s1480_s12 = inlined_call_operand.<no memory space> [shape: f32[1,1], index: 12, kind: input, shape index: {}]   ;;  %s1481_s13 = inlined_call_operand.hbm [shape: f32[1,1], index: 13, kind: output, shape index: {}]  }
   0x1   :  { %v18_v0 = vstv %s1480_s12 }
   0x2   :  { %19 = vst [vmem:[#allocation2] sm:$0x1] %v18_v0 }
   0x3   :  { %v47_v1 = vld [vmem:[%s1468_s0] sm:$0xff]  ;;  %vm50_vm0 = vcmask 392192  }
   0x4   :  { %v51_v2 = vsel %vm50_vm0, %v47_v1, 0.0 }
   0x5   :  { %52 = vadd.xlane.f32.xlu0 %v51_v2 }
   0x6   :  { %20 = vsyncpa [#allocation4], 0  ;;  %v1148_v3 = vmov 48.0   ;;  %v98_v15 = vld [vmem:[%s1471_s3 + $0x28] sm:$0xff]  ;;  %v97_v16 = vld [vmem:[%s1471_s3 + $0x20] sm:$0xff]  ;;  %vm91_vm5 = vcmask 1040384  }
   0x7   :  { %1076 = vrcp.f32 %v1148_v3  ;;  %116 = vmatpush.msra.mxu0 %v98_v15  ;;  %v96_v17 = vld [vmem:[%s1471_s3 + $0x18] sm:$0xff]  ;;  %v95_v18 = vld [vmem:[%s1471_s3 + $0x10] sm:$0xff]  ;;  %v94_v19 = vld [vmem:[%s1471_s3 + $0x8] sm:$0xff]  ;;  %v1149_v48 = vmov 2.0   ;;  %vm126_vm6 = vcmask 320512   ;;  %vm148_vm7 = vcmask 326656  }
   0x8   :  { %v93_v20 = vld [vmem:[%s1471_s3] sm:$0xff]  ;;  %v176_v23 = vld [vmem:[%s1475_s7 + $0x18] sm:$0xff]  ;;  %v175_v25 = vld [vmem:[%s1475_s7 + $0x10] sm:$0xff]  ;;  %vm205_vm9 = vcmask 31744   ;;  %s1150_s25 = smov 120   ;;  %s1151_s26 = smov 124  }
   0x9   :  { %117 = vmatpush.msra.mxu0 %v97_v16  ;;  %v177_v22 = vld [vmem:[%s1475_s7 + $0x20] sm:$0xff]  ;;  %v174_v41 = vld [vmem:[%s1475_s7 + $0x8] sm:$0xff]  ;;  %v145_v44 = vld [vmem:[%s1473_s5 + $0x18] sm:$0xff]  ;;  %s1153_s28 = smov 112   ;;  %s1154_s0 = smov 100   ;;  %vm232_vm10 = vcmask 8192  }
   0xa   :  { %196 = vmatpush.msra.mxu2 %v177_v22  ;;  %v1072_v33 = vld [vmem:[%s1469_s1] ss:$0 sm:$0xff]  ;;  %v144_v45 = vld [vmem:[%s1473_s5 + $0x10] sm:$0xff]  ;;  %v143_v46 = vld [vmem:[%s1473_s5 + $0x8] sm:$0xff]  ;;  %s1155_s12 = smov 108   ;;  %s1157_s29 = smov 96  }
   0xb   :  { %118 = vmatpush.msra.mxu0 %v96_v17  ;;  %v1073_v36 = vld [vmem:[%s1470_s2] ss:$0 sm:$0xff]  ;;  %s1158_s30 = smov 92   ;;  %s1159_s14 = smov 80   ;;  %vm250_vm11 = vcmask 1041408   ;;  %vm246_vm12 = vcmask 15360  }
   0xc   :  { %197 = vmatpush.msra.mxu2 %v176_v23  ;;  %v173_v42 = vld [vmem:[%s1475_s7] sm:$0xff]  ;;  %s1160_s1 = smov 72   ;;  %s1161_s15 = smov 84   ;;  %vm904_vm13 = vcmask 64512   ;;  %vm906_vm14 = vcmask 97280   ;;  %vm908_vm15 = vcmask 130048  }
   0xd   :  { %v1077_v4 = vpop.eup %1076  ;;  %119 = vmatpush.msra.mxu0 %v95_v18  ;;  %v146_v43 = vld [vmem:[%s1473_s5 + $0x20] sm:$0xff]  ;;  %s1162_s16 = smov 88   ;;  %s1163_s2 = smov 76  }
   0xe   :  { %v55_v5 = vmul.f32 48.0, %v1077_v4  ;;  %vm59_vm1 = vweird.f32 %v1077_v4  ;;  %198 = vmatpush.msra.mxu2 %v175_v25  ;;  %163 = vmatpush.msra.mxu1 %v146_v43  ;;  %v142_v47 = vld [vmem:[%s1473_s5] sm:$0xff]  ;;  %s1164_s17 = smov 68   ;;  %s1165_s18 = smov 60  }
   0xf   :  { %120 = vmatpush.msra.mxu0 %v94_v19  ;;  %v1074_v50 = vld [vmem:[%s1472_s4] ss:$0 sm:$0xff]  ;;  %s1166_s19 = smov 52   ;;  %s1167_s20 = smov 56  }
  0x10   :  { %v56_v6 = vsub.f32 1.0, %v55_v5  ;;  %199 = vmatpush.msra.mxu2 %v174_v41  ;;  %164 = vmatpush.msra.mxu1 %v145_v44  ;;  %v1075_v2 = vld [vmem:[%s1476_s8] ss:$0 sm:$0xff]  ;;  %s1152_s8 = smov 116   ;;  %s1168_s21 = smov 64  }
  0x11   :  { %121 = vmatpush.msra.mxu0 %v93_v20  ;;  %v147_v5 = vld [vmem:[%s1474_s6] sm:$0x1]  ;;  %s1156_s6 = smov 104   ;;  %s1169_s7 = smov 8  }
  0x12   :  { %v57_v7 = vmul.f32 %v1077_v4, %v56_v6  ;;  %200 = vmatpush.msra.mxu2 %v173_v42  ;;  %165 = vmatpush.msra.mxu1 %v144_v45  ;;  %s1170_s22 = smov 4   ;;  %s1171_s23 = smov 12  }
  0x13   :  { %s1172_s24 = smov 16   ;;  %s1173_s4 = smov 20  }
  0x14   :  { %v58_v8 = vadd.f32 %v1077_v4, %v57_v7  ;;  %166 = vmatpush.msra.mxu1 %v143_v46  ;;  %s1174_s5 = smov 24   ;;  %s1177_s27 = smov 32  }
  0x16   :  { %v60_v9 = vsel %vm59_vm1, %v1077_v4, %v58_v8  ;;  %167 = vmatpush.msra.mxu1 %v142_v47  ;;  %vm912_vm1 = vcmask 195584  }
  0x78   :  { %v53_v10 = vpop.xlane.xlu0 %52 }
  0x79   :  { %v61_v11 = vmul.f32 %v60_v9, %v53_v10 }
  0x7b   :  { %v62_v12 = vsub.f32 %v47_v1, %v61_v11 }
  0x7d   :  { %v63_v13 = vmul.f32 %v62_v12, %v62_v12 }
  0x7f   :  { %v64_v14 = vsel %vm50_vm0, %v63_v13, 0.0 }
  0x80   :  { %65 = vadd.xlane.f32.xlu0 %v64_v14 }
  0xf3   :  { %v66_v21 = vpop.xlane.xlu0 %65 }
  0xf4   :  { %v67_v24 = vmul.f32 %v66_v21, %v60_v9 }
  0xf6   :  { %v68_v26 = vadd.f32 1e-06, %v67_v24 }
  0xf8   :  { %1078 = vrsqrt.f32 %v68_v26  ;;  %vm75_vm3 = vweird.f32 %v68_v26 }
  0xf9   :  { %1080 = vrcp.f32 %v1149_v48 }
  0xfe   :  { %v1079_v27 = vpop.eup %1078 }
  0xff   :  { %v70_v28 = vmul.f32 %v1079_v27, %v68_v26  ;;  %vm76_vm2 = vweird.f32 %v1079_v27  ;;  %v1081_v49 = vpop.eup %1080 }
 0x100   :  { %vm77_vm4 = vmor %vm75_vm3, %vm76_vm2  ;;  %v135_v51 = vmul.f32 2.0, %v1081_v49  ;;  %vm139_vm8 = vweird.f32 %v1081_v49  ;;  %vm914_vm2 = vcmask 228352   ;;  %vm916_vm3 = vcmask 261120  }
 0x101   :  { %v71_v29 = vmul.f32 %v1079_v27, %v70_v28 }
 0x102   :  { %v136_v54 = vsub.f32 1.0, %v135_v51 }
 0x103   :  { %v72_v30 = vmul.f32 0.5, %v71_v29 }
 0x104   :  { %v137_v57 = vmul.f32 %v1081_v49, %v136_v54 }
 0x105   :  { %v73_v31 = vsub.f32 1.5, %v72_v30 }
 0x106   :  { %v138_v60 = vadd.f32 %v1081_v49, %v137_v57 }
 0x107   :  { %v74_v32 = vmul.f32 %v1079_v27, %v73_v31 }
 0x108   :  { %v140_v63 = vsel %vm139_vm8, %v1081_v49, %v138_v60 }
 0x109   :  { %v78_v34 = vsel %vm77_vm4, %v1079_v27, %v74_v32  ;;  %vm918_vm4 = vcmask 293888  }
 0x10a   :  { %v79_v35 = vmul.f32 %v78_v34, %v62_v12 }
 0x10c   :  { %v83_v37 = vmul.f32 %v1072_v33, %v79_v35 }
 0x10e   :  { %v87_v38 = vadd.f32 %v1073_v36, %v83_v37 }
 0x110   :  { %v89_v39 = vrot.slane %v87_v38, 4 }
 0x112   :  { %v92_v40 = vsel %vm91_vm5, %v87_v38, %v89_v39  ;;  %vm978_vm5 = vcmask 0  }
 0x113   :  { %996 = vmatmul.msk.f32.vlgmr.msra.gmra.mxu0 %vm50_vm0, %v92_v40  ;;  %vm910_vm0 = vcmask 162816  }
 0x190   :  { %v123_v52 = vpop.f32.mrf.mxu0 }
 0x191   :  { %v124_v53 = vadd.f32 %v1074_v50, %v123_v52 }
 0x193   :  { %v127_v55 = vsel %vm126_vm6, %v124_v53, 0.0  ;;  %998 = vmatmul.msk.f32.vlgmr.msra.gmra.mxu2 %vm148_vm7, %v124_v53 }
 0x194   :  { %v128_v56 = vrot.slane %v127_v55, 4 }
 0x196   :  { %v129_v58 = vadd.f32 %v128_v56, %v127_v55 }
 0x198   :  { %v130_v59 = vrot.slane %v129_v58, 2 }
 0x19a   :  { %v131_v61 = vadd.f32 %v130_v59, %v129_v58 }
 0x19c   :  { %v132_v62 = vrot.slane %v131_v61, 1 }
 0x19e   :  { %v133_v0 = vadd.f32 %v132_v62, %v131_v61 }
 0x1a0   :  { %v141_v1 = vmul.f32 %v140_v63, %v133_v0 }
 0x1a2   :  { %997 = vmatmul.msk.f32.vlgmr.msra.gmra.mxu1 %vm148_vm7, %v141_v1 }
 0x216   :  { %v202_v3 = vpop.f32.mrf.mxu2 }
 0x217   :  { %v1320_v4 = vadd.f32 %v1075_v2, %v202_v3 }
 0x219   :  { %341 = vrot.lane.b32.xlu2 %v1320_v4, %s1150_s25  ;;  %275 = vrot.lane.b32.xlu1 %v1320_v4, %s1151_s26 }
 0x21a   :  { %999 = vmatpush.xpose.msk.msra.mxu3 %vm205_vm9, %v1320_v4 }
 0x21f   :  { %v169_v6 = vpop.f32.mrf.mxu1 }
 0x220   :  { %v170_v7 = vadd.f32 %v169_v6, %v147_v5 }
 0x221   :  { %407 = vrot.lane.b32.xlu2 %v1320_v4, %s1152_s8 }
 0x222   :  { %v172_v8 = vmul.f32 0.5, %v170_v7 }
 0x224   :  { %339 = vrot.lane.b32.xlu0 %v172_v8, %s1150_s25  ;;  %273 = vrot.lane.b32.xlu1 %v172_v8, %s1151_s26  ;;  %s1175_s25 = smov 28   ;;  %s1176_s26 = smov 36  }
 0x225   :  { %1000 = vmatmul.msk.f32.vlgmr.msra.gmra.mxu3 %vm205_vm9, %v172_v8 }
 0x229   :  { %473 = vrot.lane.b32.xlu2 %v1320_v4, %s1153_s28 }
 0x22c   :  { %671 = vrot.lane.b32.xlu0 %v1320_v4, %s1154_s0  ;;  %539 = vrot.lane.b32.xlu1 %v1320_v4, %s1155_s12 }
 0x231   :  { %605 = vrot.lane.b32.xlu2 %v1320_v4, %s1156_s6 }
 0x234   :  { %737 = vrot.lane.b32.xlu0 %v1320_v4, %s1157_s29  ;;  %405 = vrot.lane.b32.xlu1 %v172_v8, %s1152_s8 }
 0x239   :  { %471 = vrot.lane.b32.xlu2 %v172_v8, %s1153_s28 }
 0x23c   :  { %801 = vrot.lane.b32.xlu0 %v172_v8, %s1158_s30  ;;  %537 = vrot.lane.b32.xlu1 %v172_v8, %s1155_s12 }
 0x241   :  { %669 = vrot.lane.b32.xlu2 %v172_v8, %s1154_s0 }
 0x244   :  { %378 = vrot.lane.b32.xlu0 %v1320_v4, %s1159_s14  ;;  %603 = vrot.lane.b32.xlu1 %v172_v8, %s1156_s6 }
 0x249   :  { %735 = vrot.lane.b32.xlu2 %v172_v8, %s1157_s29 }
 0x24c   :  { %510 = vrot.lane.b32.xlu0 %v1320_v4, %s1160_s1  ;;  %803 = vrot.lane.b32.xlu1 %v1320_v4, %s1158_s30 }
 0x251   :  { %312 = vrot.lane.b32.xlu2 %v1320_v4, %s1161_s15 }
 0x254   :  { %244 = vrot.lane.b32.xlu1 %v1320_v4, %s1162_s16 }
 0x259   :  { %444 = vrot.lane.b32.xlu2 %v1320_v4, %s1163_s2 }
 0x273   :  { %v342_v9 = vpop.permute.xlu2 %341 }
 0x274   :  { %1007 = vmatpush.xpose.msk.msrb.mxu0 %vm205_vm9, %v342_v9 }
 0x27b   :  { %v408_v10 = vpop.permute.xlu2 %407 }
 0x283   :  { %v474_v11 = vpop.permute.xlu2 %473 }
 0x284   :  { %1015 = vmatpush.xpose.msk.msra.mxu0 %vm205_vm9, %v474_v11 }
 0x28b   :  { %v606_v12 = vpop.permute.xlu2 %605  ;;  %v276_v13 = vpop.permute.xlu1 %275 }
 0x28c   :  { %1003 = vmatpush.xpose.msk.msrb.mxu1 %vm205_vm9, %v276_v13 }
 0x290   :  { %1011 = vmatpush.xpose.msk.msra.mxu1 %vm205_vm9, %v408_v10 }
 0x293   :  { %v472_v14 = vpop.permute.xlu2 %471 }
 0x296   :  { %v340_v15 = vpop.permute.xlu0 %339  ;;  %v274_v16 = vpop.permute.xlu1 %273 }
 0x297   :  { %1004 = vmatmul.msk.f32.vlgmr.msrb.gmra.mxu1 %vm205_vm9, %v274_v16  ;;  %1008 = vmatmul.msk.f32.vlgmr.msrb.gmra.mxu0 %vm205_vm9, %v340_v15 }
 0x298   :  { %1023 = vmatpush.xpose.msk.msrb.mxu0 %vm205_vm9, %v606_v12 }
 0x29b   :  { %v670_v17 = vpop.permute.xlu2 %669 }
 0x29e   :  { %v672_v18 = vpop.permute.xlu0 %671  ;;  %v540_v19 = vpop.permute.xlu1 %539 }
 0x29f   :  { %1016 = vmatmul.msk.f32.vlgmr.msra.gmra.mxu0 %vm205_vm9, %v472_v14  ;;  %1019 = vmatpush.xpose.msk.msrb.mxu1 %vm205_vm9, %v540_v19 }
 0x2a3   :  { %v736_v20 = vpop.permute.xlu2 %735 }
 0x2a6   :  { %v738_v21 = vpop.permute.xlu0 %737  ;;  %v406_v22 = vpop.permute.xlu1 %405 }
 0x2a7   :  { %1012 = vmatmul.msk.f32.vlgmr.msra.gmra.mxu1 %vm205_vm9, %v406_v22  ;;  %1031 = vmatpush.xpose.msk.msra.mxu0 %vm205_vm9, %v738_v21 }
 0x2a8   :  { %v229_v23 = vpop.f32.mrf.mxu3  ;;  %1027 = vmatpush.xpose.msk.msra.mxu1 %vm205_vm9, %v672_v18 }
 0x2a9   :  { %v233_v24 = vsel %vm232_vm10, %v229_v23, -inf }
 0x2aa   :  { %234 = vmax.xlane.f32.xlu1 %v233_v24 }
 0x2ab   :  { %v313_v25 = vpop.permute.xlu2 %312 }
 0x2ac   :  { %1005 = vmatpush.msk.msrb.mxu2 %vm250_vm11, %v313_v25 }
 0x2ae   :  { %v538_v26 = vpop.permute.xlu1 %537  ;;  %v802_v29 = vpop.permute.xlu0 %801 }
 0x2af   :  { %1020 = vmatmul.msk.f32.vlgmr.msrb.gmra.mxu1 %vm205_vm9, %v538_v26 }
 0x2b3   :  { %v445_v27 = vpop.permute.xlu2 %444 }
 0x2b4   :  { %1013 = vmatpush.msk.msra.mxu2 %vm250_vm11, %v445_v27 }
 0x2b6   :  { %v604_v28 = vpop.permute.xlu1 %603  ;;  %v379_v32 = vpop.permute.xlu0 %378 }
 0x2b7   :  { %1024 = vmatmul.msk.f32.vlgmr.msrb.gmra.mxu0 %vm205_vm9, %v604_v28  ;;  %1028 = vmatmul.msk.f32.vlgmr.msra.gmra.mxu1 %vm205_vm9, %v670_v17 }
 0x2be   :  { %v804_v30 = vpop.permute.xlu1 %803  ;;  %v511_v56 = vpop.permute.xlu0 %510 }
 0x2bf   :  { %1032 = vmatmul.msk.f32.vlgmr.msra.gmra.mxu0 %vm205_vm9, %v736_v20  ;;  %1035 = vmatpush.xpose.msk.msrb.mxu1 %vm205_vm9, %v804_v30 }
 0x2c2   :  { %1036 = vmatmul.msk.f32.vlgmr.msrb.gmra.mxu1 %vm205_vm9, %v802_v29 }
 0x2c6   :  { %v245_v31 = vpop.permute.xlu1 %244 }
 0x2c7   :  { %1001 = vmatpush.msk.msrb.mxu3 %vm250_vm11, %v245_v31 }
 0x2c9   :  { %1009 = vmatpush.msk.msra.mxu3 %vm250_vm11, %v379_v32 }
 0x314   :  { %v298_v33 = vpop.f32.mrf.mxu1  ;;  %v364_v34 = vpop.f32.mrf.mxu0 }
 0x315   :  { %v367_v35 = vsel %vm232_vm10, %v364_v34, -inf  ;;  %v301_v36 = vsel %vm232_vm10, %v298_v33, -inf }
 0x316   :  { %368 = vmax.xlane.f32.xlu0 %v367_v35  ;;  %302 = vmax.xlane.f32.xlu2 %v301_v36 }
 0x31c   :  { %v496_v37 = vpop.f32.mrf.mxu0 }
 0x31d   :  { %v235_v38 = vpop.xlane.xlu1 %234  ;;  %v499_v39 = vsel %vm232_vm10, %v496_v37, -inf }
 0x31e   :  { %v236_v40 = vsub.f32 %v229_v23, %v235_v38  ;;  %500 = vmax.xlane.f32.xlu1 %v499_v39 }
 0x320   :  { %v237_v41 = vmul.f32 1.442695, %v236_v40 }
 0x322   :  { %1082 = vpow2.f32 %v237_v41 }
 0x324   :  { %v430_v42 = vpop.f32.mrf.mxu1 }
 0x325   :  { %v433_v43 = vsel %vm232_vm10, %v430_v42, -inf }
 0x326   :  { %434 = vmax.xlane.f32.xlu2 %v433_v43 }
 0x328   :  { %v1083_v44 = vpop.eup %1082 }
 0x329   :  { %v239_v45 = vsel %vm232_vm10, %v1083_v44, 0.0 }
 0x32a   :  { %240 = vadd.xlane.f32.xlu1 %v239_v45 }
 0x32c   :  { %v562_v46 = vpop.f32.mrf.mxu1 }
 0x32d   :  { %v565_v47 = vsel %vm232_vm10, %v562_v46, -inf }
 0x32e   :  { %566 = vmax.xlane.f32.xlu0 %v565_v47 }
 0x334   :  { %v628_v48 = vpop.f32.mrf.mxu0  ;;  %v694_v49 = vpop.f32.mrf.mxu1 }
 0x335   :  { %v631_v50 = vsel %vm232_vm10, %v628_v48, -inf  ;;  %v697_v51 = vsel %vm232_vm10, %v694_v49, -inf }
 0x336   :  { %632 = vmax.xlane.f32.xlu2 %v631_v50  ;;  %698 = vmax.xlane.f32.xlu1 %v697_v51 }
 0x33c   :  { %v760_v52 = vpop.f32.mrf.mxu0 }
 0x33d   :  { %v763_v53 = vsel %vm232_vm10, %v760_v52, -inf }
 0x33e   :  { %764 = vmax.xlane.f32.xlu0 %v763_v53 }
 0x33f   :  { %v1374_v54 = vpop.f32.mrf.mxu1 }
 0x340   :  { %v829_v55 = vsel %vm232_vm10, %v1374_v54, -inf }
 0x341   :  { %830 = vmax.xlane.f32.xlu2 %v829_v55 }
 0x34f   :  { %576 = vrot.lane.b32.xlu1 %v1320_v4, %s1164_s17 }
 0x389   :  { %v369_v57 = vpop.xlane.xlu0 %368  ;;  %v303_v58 = vpop.xlane.xlu2 %302 }
 0x38a   :  { %v370_v59 = vsub.f32 %v364_v34, %v369_v57  ;;  %v304_v60 = vsub.f32 %v298_v33, %v303_v58 }
 0x38c   :  { %v371_v61 = vmul.f32 1.442695, %v370_v59  ;;  %v305_v62 = vmul.f32 1.442695, %v304_v60 }
 0x38e   :  { %1084 = vpow2.f32 %v371_v61 }
 0x38f   :  { %1086 = vpow2.f32 %v305_v62 }
 0x391   :  { %v501_v1 = vpop.xlane.xlu1 %500 }
 0x392   :  { %v502_v7 = vsub.f32 %v496_v37, %v501_v1 }
 0x394   :  { %v1379_v63 = vpop.eup %1084  ;;  %v503_v10 = vmul.f32 1.442695, %v502_v7 }
 0x395   :  { %v1381_v0 = vpop.eup %1086  ;;  %v373_v2 = vsel %vm232_vm10, %v1379_v63, 0.0 }
 0x396   :  { %v307_v3 = vsel %vm232_vm10, %v1381_v0, 0.0  ;;  %374 = vadd.xlane.f32.xlu2 %v373_v2 }
 0x397   :  { %308 = vadd.xlane.f32.xlu0 %v307_v3 }
 0x399   :  { %v435_v5 = vpop.xlane.xlu2 %434 }
 0x39a   :  { %v436_v6 = vsub.f32 %v430_v42, %v435_v5 }
 0x39c   :  { %v437_v8 = vmul.f32 1.442695, %v436_v6 }
 0x39d   :  { %v241_v9 = vpop.xlane.xlu1 %240 }
 0x39e   :  { %1088 = vpow2.f32 %v437_v8 }
 0x39f   :  { %1090 = vrcp.f32 %v241_v9 }
 0x3a0   :  { %1092 = vpow2.f32 %v503_v10 }
 0x3a1   :  { %v567_v11 = vpop.xlane.xlu0 %566 }
 0x3a2   :  { %v568_v12 = vsub.f32 %v562_v46, %v567_v11 }
 0x3a4   :  { %v1387_v13 = vpop.eup %1088  ;;  %v569_v14 = vmul.f32 1.442695, %v568_v12 }
 0x3a5   :  { %v1091_v15 = vpop.eup %1090  ;;  %v439_v16 = vsel %vm232_vm10, %v1387_v13, 0.0 }
 0x3a6   :  { %1094 = vpow2.f32 %v569_v14  ;;  %440 = vadd.xlane.f32.xlu0 %v439_v16  ;;  %v243_v17 = vmul.f32 %v1091_v15, %v1083_v44  ;;  %v1393_v20 = vpop.eup %1092 }
 0x3a7   :  { %v505_v27 = vsel %vm232_vm10, %v1393_v20, 0.0 }
 0x3a8   :  { %1002 = vmatmul.msk.f32.vlgmr.msrb.gmra.mxu3 %vm246_vm12, %v243_v17 }
 0x3a9   :  { %1017 = vmatpush.msk.msrb.mxu3 %vm250_vm11, %v511_v56  ;;  %v633_v18 = vpop.xlane.xlu2 %632  ;;  %v699_v19 = vpop.xlane.xlu1 %698 }
 0x3aa   :  { %v634_v21 = vsub.f32 %v628_v48, %v633_v18  ;;  %v700_v22 = vsub.f32 %v694_v49, %v699_v19 }
 0x3ac   :  { %v1095_v23 = vpop.eup %1094  ;;  %v635_v24 = vmul.f32 1.442695, %v634_v21  ;;  %v701_v25 = vmul.f32 1.442695, %v700_v22  ;;  %v923_v21 = vld [vmem:[%s1477_s9 + $0x18] sm:$0xff]  ;;  %v922_v22 = vld [vmem:[%s1477_s9 + $0x10] sm:$0xff] }
 0x3ad   :  { %v571_v26 = vsel %vm232_vm10, %v1095_v23, 0.0 }
 0x3ae   :  { %1096 = vpow2.f32 %v635_v24  ;;  %572 = vadd.xlane.f32.xlu1 %v571_v26  ;;  %506 = vadd.xlane.f32.xlu0 %v505_v27  ;;  %v920_v24 = vld [vmem:[%s1477_s9] sm:$0xff]  ;;  %v952_v26 = vld [vmem:[%s1479_s11 + $0x18] sm:$0xff]  ;;  %v951_v27 = vld [vmem:[%s1479_s11 + $0x10] sm:$0xff] }
 0x3af   :  { %1098 = vpow2.f32 %v701_v25  ;;  %v953_v25 = vld [vmem:[%s1479_s11 + $0x20] sm:$0xff] }
 0x3b1   :  { %v765_v28 = vpop.xlane.xlu0 %764 }
 0x3b2   :  { %v766_v29 = vsub.f32 %v760_v52, %v765_v28 }
 0x3b4   :  { %v1097_v30 = vpop.eup %1096  ;;  %v767_v31 = vmul.f32 1.442695, %v766_v29  ;;  %v831_v32 = vpop.xlane.xlu2 %830 }
 0x3b5   :  { %v1099_v33 = vpop.eup %1098  ;;  %v832_v34 = vsub.f32 %v1374_v54, %v831_v32  ;;  %v637_v35 = vsel %vm232_vm10, %v1097_v30, 0.0 }
 0x3b6   :  { %1100 = vpow2.f32 %v767_v31  ;;  %638 = vadd.xlane.f32.xlu2 %v637_v35  ;;  %v703_v36 = vsel %vm232_vm10, %v1099_v33, 0.0 }
 0x3b7   :  { %v833_v37 = vmul.f32 1.442695, %v832_v34  ;;  %704 = vadd.xlane.f32.xlu0 %v703_v36 }
 0x3b9   :  { %1102 = vpow2.f32 %v833_v37 }
 0x3bc   :  { %v1401_v38 = vpop.eup %1100 }
 0x3bd   :  { %v769_v39 = vsel %vm232_vm10, %v1401_v38, 0.0 }
 0x3be   :  { %770 = vadd.xlane.f32.xlu2 %v769_v39 }
 0x3bf   :  { %v1103_v40 = vpop.eup %1102 }
 0x3c0   :  { %v835_v41 = vsel %vm232_vm10, %v1103_v40, 0.0 }
 0x3c1   :  { %836 = vadd.xlane.f32.xlu0 %v835_v41  ;;  %v577_v48 = vpop.permute.xlu1 %576 }
 0x3c7   :  { %708 = vrot.lane.b32.xlu1 %v1320_v4, %s1165_s18 }
 0x3cf   :  { %840 = vrot.lane.b32.xlu1 %v1320_v4, %s1166_s19 }
 0x3d5   :  { %774 = vrot.lane.b32.xlu0 %v1320_v4, %s1167_s20 }
 0x3d6   :  { %642 = vrot.lane.b32.xlu2 %v1320_v4, %s1168_s21 }
 0x409   :  { %v375_v42 = vpop.xlane.xlu2 %374 }
 0x40a   :  { %v309_v43 = vpop.xlane.xlu0 %308  ;;  %1104 = vrcp.f32 %v375_v42 }
 0x40b   :  { %1106 = vrcp.f32 %v309_v43 }
 0x410   :  { %v1105_v44 = vpop.eup %1104 }
 0x411   :  { %v1107_v45 = vpop.eup %1106  ;;  %v377_v46 = vmul.f32 %v1105_v44, %v1379_v63 }
 0x412   :  { %v311_v47 = vmul.f32 %v1107_v45, %v1381_v0 }
 0x413   :  { %1010 = vmatmul.msk.f32.vlgmr.msra.gmra.mxu3 %vm246_vm12, %v377_v46  ;;  %v950_v46 = vld [vmem:[%s1479_s11 + $0x8] sm:$0xff] }
 0x414   :  { %1006 = vmatmul.msk.f32.vlgmr.msrb.gmra.mxu2 %vm246_vm12, %v311_v47  ;;  %v949_v47 = vld [vmem:[%s1479_s11] sm:$0xff] }
 0x415   :  { %1021 = vmatpush.msk.msrb.mxu2 %vm250_vm11, %v577_v48  ;;  %v925_v48 = vld [vmem:[%s1478_s10] sm:$0x1] }
 0x419   :  { %v441_v49 = vpop.xlane.xlu0 %440 }
 0x41a   :  { %1108 = vrcp.f32 %v441_v49 }
 0x420   :  { %v1109_v4 = vpop.eup %1108 }
 0x421   :  { %v443_v50 = vmul.f32 %v1109_v4, %v1387_v13  ;;  %v507_v51 = vpop.xlane.xlu0 %506  ;;  %v573_v52 = vpop.xlane.xlu1 %572 }
 0x422   :  { %1110 = vrcp.f32 %v507_v51 }
 0x423   :  { %1112 = vrcp.f32 %v573_v52  ;;  %1014 = vmatmul.msk.f32.vlgmr.msra.gmra.mxu2 %vm246_vm12, %v443_v50  ;;  %v954_v50 = vld [vmem:[#allocation2] sm:$0x1] }
 0x428   :  { %v1111_v53 = vpop.eup %1110 }
 0x429   :  { %v1113_v54 = vpop.eup %1112  ;;  %v509_v55 = vmul.f32 %v1111_v53, %v1393_v20  ;;  %v639_v56 = vpop.xlane.xlu2 %638  ;;  %v924_v20 = vld [vmem:[%s1477_s9 + $0x20] sm:$0xff] }
 0x42a   :  { %v575_v57 = vmul.f32 %v1113_v54, %v1095_v23  ;;  %v705_v58 = vpop.xlane.xlu0 %704  ;;  %1114 = vrcp.f32 %v639_v56  ;;  %940 = vmatpush.msrb.mxu0 %v924_v20  ;;  %v921_v23 = vld [vmem:[%s1477_s9 + $0x8] sm:$0xff] }
 0x42b   :  { %1018 = vmatmul.msk.f32.vlgmr.msrb.gmra.mxu3 %vm246_vm12, %v509_v55  ;;  %1116 = vrcp.f32 %v705_v58  ;;  %v270_v10 = vpop.f32.mrf.mxu3 }
 0x42c   :  { %1022 = vmatmul.msk.f32.vlgmr.msrb.gmra.mxu2 %vm246_vm12, %v575_v57  ;;  %941 = vmatpush.msrb.mxu0 %v923_v21 }
 0x42e   :  { %942 = vmatpush.msrb.mxu0 %v922_v22 }
 0x430   :  { %v1115_v60 = vpop.eup %1114  ;;  %943 = vmatpush.msrb.mxu0 %v921_v23 }
 0x431   :  { %v771_v59 = vpop.xlane.xlu2 %770  ;;  %v1117_v62 = vpop.eup %1116  ;;  %v641_v63 = vmul.f32 %v1115_v60, %v1097_v30 }
 0x432   :  { %v707_v0 = vmul.f32 %v1117_v62, %v1099_v33  ;;  %944 = vmatpush.msrb.mxu0 %v920_v24 }
 0x434   :  { %v837_v61 = vpop.xlane.xlu0 %836 }
 0x435   :  { %1118 = vrcp.f32 %v837_v61 }
 0x436   :  { %1120 = vrcp.f32 %v771_v59 }
 0x439   :  { %v643_v1 = vpop.permute.xlu2 %642  ;;  %v709_v2 = vpop.permute.xlu1 %708 }
 0x43a   :  { %1025 = vmatpush.msk.msra.mxu3 %vm250_vm11, %v643_v1  ;;  %1029 = vmatpush.msk.msra.mxu2 %vm250_vm11, %v709_v2 }
 0x43b   :  { %1026 = vmatmul.msk.f32.vlgmr.msra.gmra.mxu3 %vm246_vm12, %v641_v63  ;;  %1030 = vmatmul.msk.f32.vlgmr.msra.gmra.mxu2 %vm246_vm12, %v707_v0  ;;  %v1119_v3 = vpop.eup %1118 }
 0x43c   :  { %v839_v5 = vmul.f32 %v1119_v3, %v1103_v40  ;;  %v1121_v7 = vpop.eup %1120 }
 0x43d   :  { %v773_v8 = vmul.f32 %v1121_v7, %v1401_v38 }
 0x441   :  { %v841_v6 = vpop.permute.xlu1 %840 }
 0x442   :  { %1037 = vmatpush.msk.msrb.mxu2 %vm250_vm11, %v841_v6 }
 0x443   :  { %1038 = vmatmul.msk.f32.vlgmr.msrb.gmra.mxu2 %vm246_vm12, %v839_v5 }
 0x447   :  { %v775_v9 = vpop.permute.xlu0 %774 }
 0x448   :  { %1033 = vmatpush.msk.msrb.mxu3 %vm250_vm11, %v775_v9 }
 0x449   :  { %1034 = vmatmul.msk.f32.vlgmr.msrb.gmra.mxu3 %vm246_vm12, %v773_v8 }
 0x44a   :  { %969 = vmatpush.msra.mxu3 %v953_v25 }
 0x44c   :  { %970 = vmatpush.msra.mxu3 %v952_v26 }
 0x44e   :  { %971 = vmatpush.msra.mxu3 %v951_v27 }
 0x450   :  { %972 = vmatpush.msra.mxu3 %v950_v46 }
 0x452   :  { %973 = vmatpush.msra.mxu3 %v949_v47 }
 0x496   :  { %v402_v11 = vpop.f32.mrf.mxu3 }
 0x497   :  { %v336_v12 = vpop.f32.mrf.mxu2  ;;  %872 = vrot.lane.b32.xlu2 %v402_v11, %s1169_s7 }
 0x498   :  { %868 = vrot.lane.b32.xlu1 %v336_v12, %s1170_s22 }
 0x4a6   :  { %v468_v13 = vpop.f32.mrf.mxu2 }
 0x4a7   :  { %876 = vrot.lane.b32.xlu1 %v468_v13, %s1171_s23 }
 0x4ae   :  { %v534_v14 = vpop.f32.mrf.mxu3 }
 0x4af   :  { %v600_v15 = vpop.f32.mrf.mxu2  ;;  %880 = vrot.lane.b32.xlu0 %v534_v14, %s1172_s24  ;;  %s1178_s24 = smov [#allocation3]  }
 0x4b0   :  { %884 = vrot.lane.b32.xlu2 %v600_v15, %s1173_s4  ;;  %s985_s4 = sshll.u32 %s1178_s24, 4  ;;  %s986_s4 = int_to_ptr.vmem [resolvable:$true] %s985_s4 }
 0x4be   :  { %v666_v16 = vpop.f32.mrf.mxu3  ;;  %v732_v17 = vpop.f32.mrf.mxu2 }
 0x4bf   :  { %888 = vrot.lane.b32.xlu1 %v666_v16, %s1174_s5  ;;  %892 = vrot.lane.b32.xlu0 %v732_v17, %s1175_s25 }
 0x4c6   :  { %v864_v18 = vpop.f32.mrf.mxu2 }
 0x4c7   :  { %900 = vrot.lane.b32.xlu1 %v864_v18, %s1176_s26  ;;  %s987_s26 = sshll.u32 %s1481_s13, 4  ;;  %s988_s26 = int_to_ptr.hbm [resolvable:$true] %s987_s26 }
 0x4cc   :  { %v798_v19 = vpop.f32.mrf.mxu3 }
 0x4cd   :  { %896 = vrot.lane.b32.xlu2 %v798_v19, %s1177_s27 }
 0x4f1   :  { %v873_v29 = vpop.permute.xlu2 %872 }
 0x50a   :  { %v869_v28 = vpop.permute.xlu1 %868  ;;  %v885_v36 = vpop.permute.xlu2 %884 }
 0x50b   :  { %v903_v31 = vsel %vm205_vm9, %v270_v10, %v869_v28 }
 0x50c   :  { %v905_v33 = vsel %vm904_vm13, %v903_v31, %v873_v29 }
 0x519   :  { %v877_v30 = vpop.permute.xlu1 %876 }
 0x51a   :  { %v907_v34 = vsel %vm906_vm14, %v905_v33, %v877_v30 }
 0x521   :  { %v881_v32 = vpop.permute.xlu0 %880 }
 0x522   :  { %v909_v35 = vsel %vm908_vm15, %v907_v34, %v881_v32 }
 0x523   :  { %v911_v38 = vsel %vm910_vm0, %v909_v35, %v885_v36 }
 0x527   :  { %v897_v42 = vpop.permute.xlu2 %896 }
 0x531   :  { %v889_v37 = vpop.permute.xlu1 %888  ;;  %v893_v39 = vpop.permute.xlu0 %892 }
 0x532   :  { %v913_v40 = vsel %vm912_vm1, %v911_v38, %v889_v37 }
 0x533   :  { %v915_v41 = vsel %vm914_vm2, %v913_v40, %v893_v39 }
 0x534   :  { %v917_v43 = vsel %vm916_vm3, %v915_v41, %v897_v42 }
 0x539   :  { %v901_v44 = vpop.permute.xlu1 %900 }
 0x53a   :  { %v919_v45 = vsel %vm918_vm4, %v917_v43, %v901_v44 }
 0x53b   :  { %1039 = vmatmul.msk.f32.vlgmr.msrb.gmra.mxu0 %vm148_vm7, %v919_v45 }
 0x5b8   :  { %v946_v49 = vpop.f32.mrf.mxu0 }
 0x5b9   :  { %v947_v4 = vadd.f32 %v946_v49, %v925_v48 }
 0x5bb   :  { %1040 = vmatmul.msk.f32.vlgmr.msra.gmra.mxu3 %vm148_vm7, %v947_v4 }
 0x63e   :  { %v975_v51 = vpop.f32.mrf.mxu3 }
 0x63f   :  { %v976_v52 = vadd.f32 %v975_v51, %v954_v50 }
 0x641   :  { %979 = vst.msk [vmem:[#allocation3] sm:$0x1] %vm978_vm5, %v976_v52 }
 0x642   :  { %990 = dma.vmem_to_hbm [thread:$0]  %s986_s4, 16, %s988_s26, [#allocation4]  }
 0x643   :  { %1146 = dma.done.wait [#allocation4], 16  }
 0x644   :  { %1147 = vsyncadd [#allocation4], 4294967280 }
 0x645   :  { %995 = vsyncpa [#allocation4], 1 }

</bundles_post_ra>
